<compile_context>
chip_gen: v6e
topology: v6e:2x2x1
jax: 0.10.0
libtpu: 0.0.40
codegen_flags: <defaults>
</compile_context>

<pallas_src>
import jax
import jax.numpy as jnp
from jax.experimental import pallas as pl
from jax.experimental.pallas import tpu as pltpu

LANES = 128
EPS = 1e-5
VMEM_LIMIT = 32 * 1024 * 1024


def _full_spec(shape):
    zeros = (0,) * len(shape)
    return pl.BlockSpec(shape, lambda i, _z=zeros: _z)


# ------------------- fused conv + BN + ReLU + 2x2 maxpool kernel -------------------

def _conv_bn_relu_pool_kernel(lhs_ref, w_ref, c_ref, o_ref):
    """One grid step = imgs_per_step images.

    lhs_ref : (4*G, Kp)  bf16  im2col rows; 4 stacked pool-offset groups of G = I*Ppad rows
    w_ref   : (Kp, 128)  bf16  conv weight with BN scale folded in (zero padded K and OC)
    c_ref   : (1, 128)   f32   folded bias/BN shift (padded lanes are exactly 0)
    o_ref   : (G, 128)   bf16  pooled activation, channels in lanes (lane-dense store)
    """
    acc = jnp.dot(lhs_ref[...], w_ref[...], preferred_element_type=jnp.float32)
    G = o_ref.shape[0]
    m = jnp.maximum(jnp.maximum(acc[0 * G:1 * G], acc[1 * G:2 * G]),
                    jnp.maximum(acc[2 * G:3 * G], acc[3 * G:4 * G]))
    # max over pool taps commutes with the monotone (+c, ReLU) epilogue.
    o_ref[...] = jnp.maximum(m + c_ref[...], 0.0).astype(o_ref.dtype)


# ----------------------------- fused fc head kernel --------------------------------

def _fc_head_kernel(x_ref, w1_ref, s1_ref, b1_ref, w2_ref, b2_ref, w3_ref, b3_ref, o_ref):
    """fc1+ReLU -> fc2+ReLU -> fc3 in one launch; intermediates never touch HBM.

    w1_ref is int8 (per-output-column quantized); dequant to bf16 in-kernel and apply the
    per-column scale to the f32 accumulator (portable across v5e/v6e/v7x).
    """
    w1 = w1_ref[...].astype(jnp.bfloat16)
    h1 = jnp.dot(x_ref[...], w1, preferred_element_type=jnp.float32)
    h1 = jnp.maximum(h1 * s1_ref[...] + b1_ref[...], 0.0).astype(jnp.bfloat16)
    h2 = jnp.dot(h1, w2_ref[...], preferred_element_type=jnp.float32) + b2_ref[...]
    h2 = jnp.maximum(h2, 0.0).astype(jnp.bfloat16)
    o_ref[...] = jnp.dot(h2, w3_ref[...], preferred_element_type=jnp.float32) + b3_ref[...]


# --------------------------------- stage wrappers -----------------------------------

def _conv_stage(x_bhwc, wm, c_vec, k_pad, imgs_per_step):
    """x: (B, H, W, C) -> (B, PH, PW, 128) bf16 after conv3x3 + BN + ReLU + pool2x2."""
    B, H, W, C = x_bhwc.shape
    OH, OW = H - 2, W - 2
    PH, PW = OH // 2, OW // 2          # floor, matches PyTorch MaxPool2d default
    P = PH * PW
    Ppad = ((P + 7) // 8) * 8          # sublane-tile align each image's row group
    K = C * 9

    n_steps = -(-B // imgs_per_step)
    Bpad = n_steps * imgs_per_step
    G = imgs_per_step * Ppad

    # im2col (XLA glue, fused under jit). K order = c*9 + kh*3 + kw == torch w.reshape(OC,-1).
    pats = jnp.stack([x_bhwc[:, kh:kh + OH, kw:kw + OW, :]
                      for kh in range(3) for kw in range(3)], axis=-1)   # (B,OH,OW,C,9)
    pats = pats.reshape(B, OH, OW, K)

    # 4 pool-offset im2col matrices, stacked so the kernel does ONE matmul per step.
    offs = [pats[:, dh:dh + 2 * PH:2, dw:dw + 2 * PW:2, :].reshape(B, P, K)
            for dh in range(2) for dw in range(2)]                       # 4 x (B,P,K)
    lhs = jnp.stack(offs, axis=0)                                        # (4,B,P,K)
    lhs = jnp.pad(lhs, ((0, 0), (0, Bpad - B), (0, Ppad - P), (0, k_pad - K)))
    lhs = lhs.reshape(4, n_steps, imgs_per_step, Ppad, k_pad).transpose(1, 0, 2, 3, 4)
    lhs = lhs.reshape(n_steps * 4 * G, k_pad).astype(jnp.bfloat16)       # (steps*4G, Kp)

    out = pl.pallas_call(
        _conv_bn_relu_pool_kernel,
        out_shape=jax.ShapeDtypeStruct((n_steps * G, LANES), jnp.bfloat16),
        grid=(n_steps,),
        in_specs=[
            pl.BlockSpec((4 * G, k_pad), lambda s: (s, 0)),
            pl.BlockSpec((k_pad, LANES), lambda s: (0, 0)),
            pl.BlockSpec((1, LANES), lambda s: (0, 0)),
        ],
        out_specs=pl.BlockSpec((G, LANES), lambda s: (s, 0)),
        compiler_params=pltpu.CompilerParams(
            dimension_semantics=("parallel",),        # feeds both TCs on v7x when n_steps >= 2
            vmem_limit_bytes=VMEM_LIMIT),
    )(lhs, wm, c_vec)

    out = out.reshape(Bpad, Ppad, LANES)[:B, :P]                          # drop pad rows/images
    return out.reshape(B, PH, PW, LANES)


def _fc_head(xf, pp):
    """xf: (B, 1250) -> (B, 10) f32."""
    B, K = xf.shape
    Mp = max(8, ((B + 7) // 8) * 8)    # pad sublanes
    Kp = 1280                          # 1250 -> multiple of 128
    x_pad = jnp.pad(xf, ((0, Mp - B), (0, Kp - K))).astype(jnp.bfloat16)

    out = pl.pallas_call(
        _fc_head_kernel,
        out_shape=jax.ShapeDtypeStruct((Mp, LANES), jnp.float32),
        grid=(1,),
        in_specs=[
            _full_spec((Mp, Kp)),
            _full_spec((Kp, 1024)),       # int8 quantized fc1 weight
            _full_spec((1, 1024)),        # per-column dequant scale
            _full_spec((1, 1024)),        # fc1 bias
            _full_spec((1024, LANES)),
            _full_spec((1, LANES)),
            _full_spec((LANES, LANES)),
            _full_spec((1, LANES)),
        ],
        out_specs=_full_spec((Mp, LANES)),
        compiler_params=pltpu.CompilerParams(
            dimension_semantics=("arbitrary",),
            vmem_limit_bytes=VMEM_LIMIT),
    )(x_pad, pp["fc1_w"], pp["fc1_s"], pp["fc1_b"], pp["fc2_w"], pp["fc2_b"],
      pp["fc3_w"], pp["fc3_b"])

    return out[:B, :10]


# ------------------------------------ model -----------------------------------------

def init_params(key):
    """Torch-layout parameters (same shapes/semantics as the nn.Module)."""
    ks = jax.random.split(key, 10)
    p = {}
    p["conv1_w"] = 0.1 * jax.random.normal(ks[0], (25, 1, 3, 3), jnp.float32)
    p["conv1_b"] = 0.1 * jax.random.normal(ks[1], (25,), jnp.float32)
    p["bn1_gamma"] = jnp.ones((25,), jnp.float32)
    p["bn1_beta"] = jnp.zeros((25,), jnp.float32)
    p["bn1_mean"] = jnp.zeros((25,), jnp.float32)
    p["bn1_var"] = jnp.ones((25,), jnp.float32)

    p["conv2_w"] = 0.05 * jax.random.normal(ks[2], (50, 25, 3, 3), jnp.float32)
    p["conv2_b"] = 0.05 * jax.random.normal(ks[3], (50,), jnp.float32)
    p["bn2_gamma"] = jnp.ones((50,), jnp.float32)
    p["bn2_beta"] = jnp.zeros((50,), jnp.float32)
    p["bn2_mean"] = jnp.zeros((50,), jnp.float32)
    p["bn2_var"] = jnp.ones((50,), jnp.float32)

    p["fc1_w"] = 0.02 * jax.random.normal(ks[4], (1024, 50 * 5 * 5), jnp.float32)
    p["fc1_b"] = 0.02 * jax.random.normal(ks[5], (1024,), jnp.float32)
    p["fc2_w"] = 0.02 * jax.random.normal(ks[6], (128, 1024), jnp.float32)
    p["fc2_b"] = 0.02 * jax.random.normal(ks[7], (128,), jnp.float32)
    p["fc3_w"] = 0.05 * jax.random.normal(ks[8], (10, 128), jnp.float32)
    p["fc3_b"] = 0.05 * jax.random.normal(ks[9], (10,), jnp.float32)
    return p


def prepare_params(p):
    """One-time packing: transpose/reshape, fold BN into weights, pad lane-dense, quantize fc1."""
    pp = {}

    def conv_pack(w, b, gamma, beta, mean, var, k_pad):
        oc = w.shape[0]
        k = w.shape[1] * 9
        scale = gamma / jnp.sqrt(var + EPS)                      # (oc,)
        shift = b * scale + beta - mean * scale                  # (oc,)
        wm = (w.reshape(oc, k) * scale[:, None]).T               # BN scale folded into W, (K, OC)
        wm = jnp.pad(wm, ((0, k_pad - k), (0, LANES - oc))).astype(jnp.bfloat16)
        c = jnp.pad(shift, (0, LANES - oc)).reshape(1, LANES).astype(jnp.float32)
        return wm, c

    pp["w1"], pp["c1"] = conv_pack(p["conv1_w"], p["conv1_b"], p["bn1_gamma"],
                                   p["bn1_beta"], p["bn1_mean"], p["bn1_var"], 16)
    pp["w2"], pp["c2"] = conv_pack(p["conv2_w"], p["conv2_b"], p["bn2_gamma"],
                                   p["bn2_beta"], p["bn2_mean"], p["bn2_var"], 256)

    # fc1: permute columns from torch (c, h, w) flatten order to our (h, w, c) activation
    # order, transpose to (K, N), pad K 1250 -> 1280, then per-output-column int8 quantize.
    w1 = p["fc1_w"].reshape(1024, 50, 5, 5).transpose(0, 2, 3, 1).reshape(1024, 1250).T
    w1 = jnp.pad(w1, ((0, 1280 - 1250), (0, 0)))                                  # (1280, 1024)
    s1 = jnp.maximum(jnp.max(jnp.abs(w1), axis=0, keepdims=True) / 127.0, 1e-8)   # (1, 1024)
    pp["fc1_w"] = jnp.clip(jnp.round(w1 / s1), -127.0, 127.0).astype(jnp.int8)
    pp["fc1_s"] = s1.astype(jnp.float32)
    pp["fc1_b"] = p["fc1_b"].reshape(1, 1024).astype(jnp.float32)

    pp["fc2_w"] = p["fc2_w"].T.astype(jnp.bfloat16)                               # (1024, 128)
    pp["fc2_b"] = p["fc2_b"].reshape(1, 128).astype(jnp.float32)

    w3 = jnp.pad(p["fc3_w"].T, ((0, 0), (0, LANES - 10)))                         # (128, 128)
    pp["fc3_w"] = w3.astype(jnp.bfloat16)
    pp["fc3_b"] = jnp.pad(p["fc3_b"], (0, LANES - 10)).reshape(1, LANES).astype(jnp.float32)
    return pp


@jax.jit
def alexnet_forward(pp, x):
    # x: (B, 1, 28, 28) NCHW f32
    B = x.shape[0]
    # Batched grid steps, but keep >= 2 steps whenever B > 1 so v7x's second TC is fed.
    imgs_per_step = max(1, min(8, -(-B // 2)))
    x = x.transpose(0, 2, 3, 1)                                          # NHWC (channels-last)
    a1 = _conv_stage(x, pp["w1"], pp["c1"], 16, imgs_per_step)           # (B,13,13,128) bf16
    a2 = _conv_stage(a1[..., :25], pp["w2"], pp["c2"], 256, imgs_per_step)  # (B,5,5,128) bf16
    xf = a2[..., :50].reshape(B, 5 * 5 * 50)                             # (B,1250), (h,w,c)
    return _fc_head(xf, pp)                                              # (B,10) f32


if __name__ == "__main__":
    key = jax.random.PRNGKey(0)
    pkey, xkey = jax.random.split(key)
    params = init_params(pkey)
    prepped = prepare_params(params)          # one-time weight packing (outside jit path)
    # Batch=2; spatial 28x28 is required by the 50*5*5 flatten dimension in the fc head.
    x = jax.random.normal(xkey, (2, 1, 28, 28), jnp.float32)

    out = alexnet_forward(prepped, x)
    out = jax.block_until_ready(out)
    assert out.shape == (2, 10) and out.dtype == jnp.float32
    assert bool(jnp.all(jnp.isfinite(out)))
    print("KERNEL_OK")
</pallas_src>

<mosaic_0001>
module attributes {stable_mosaic.version = 11 : i64} {
  func.func @_conv_bn_relu_pool_kernel(%arg0: i32, %arg1: memref<704x16xbf16, #tpu.memory_space<vmem>>, %arg2: memref<16x128xbf16, #tpu.memory_space<vmem>>, %arg3: memref<1x128xf32, #tpu.memory_space<vmem>>, %arg4: memref<176x128xbf16, #tpu.memory_space<vmem>>) attributes {dimension_semantics = [#tpu.dimension_semantics<parallel>], iteration_bounds = array<i64: 2>, scalar_prefetch = 0 : i64, scratch_operands = 0 : i64, tpu.core_type = #tpu.core_type<tc>, window_params = [{transform_indices = @transform_0, window_bounds = array<i64: 704, 16>}, {pipeline_mode = #tpu.pipeline_mode<synchronous>, transform_indices = @transform_1, window_bounds = array<i64: 16, 128>}, {pipeline_mode = #tpu.pipeline_mode<synchronous>, transform_indices = @transform_2, window_bounds = array<i64: 1, 128>}, {transform_indices = @transform_3, window_bounds = array<i64: 176, 128>}]} {
    %c0 = arith.constant 0 : index
    %c0_0 = arith.constant 0 : index
    %0 = vector.load %arg1[%c0, %c0_0] : memref<704x16xbf16, #tpu.memory_space<vmem>>, vector<704x16xbf16>
    %c0_1 = arith.constant 0 : index
    %c0_2 = arith.constant 0 : index
    %1 = vector.load %arg2[%c0_1, %c0_2] : memref<16x128xbf16, #tpu.memory_space<vmem>>, vector<16x128xbf16>
    %cst = arith.constant dense<0.000000e+00> : vector<704x128xf32>
    %2 = tpu.matmul %0, %1, %cst {dimension_numbers = #tpu.dot_dimension_numbers<[1], [0], [0], [1], [0, 0, 1, 1], [], []>} : vector<704x16xbf16>, vector<16x128xbf16>, vector<704x128xf32> -> vector<704x128xf32>
    %3 = vector.extract_strided_slice %2 {offsets = [0, 0], sizes = [176, 128], strides = [1, 1]} : vector<704x128xf32> to vector<176x128xf32>
    %4 = vector.extract_strided_slice %2 {offsets = [176, 0], sizes = [176, 128], strides = [1, 1]} : vector<704x128xf32> to vector<176x128xf32>
    %5 = arith.maximumf %3, %4 : vector<176x128xf32>
    %6 = vector.extract_strided_slice %2 {offsets = [352, 0], sizes = [176, 128], strides = [1, 1]} : vector<704x128xf32> to vector<176x128xf32>
    %7 = vector.extract_strided_slice %2 {offsets = [528, 0], sizes = [176, 128], strides = [1, 1]} : vector<704x128xf32> to vector<176x128xf32>
    %8 = arith.maximumf %6, %7 : vector<176x128xf32>
    %9 = arith.maximumf %5, %8 : vector<176x128xf32>
    %c0_3 = arith.constant 0 : index
    %c0_4 = arith.constant 0 : index
    %10 = vector.load %arg3[%c0_3, %c0_4] : memref<1x128xf32, #tpu.memory_space<vmem>>, vector<1x128xf32>
    %11 = vector.broadcast %10 : vector<1x128xf32> to vector<176x128xf32>
    %12 = arith.addf %9, %11 : vector<176x128xf32>
    %cst_5 = arith.constant 0.000000e+00 : f32
    %13 = vector.broadcast %cst_5 : f32 to vector<176x128xf32>
    %14 = arith.maximumf %12, %13 : vector<176x128xf32>
    %15 = arith.truncf %14 : vector<176x128xf32> to vector<176x128xbf16>
    %c0_6 = arith.constant 0 : index
    %c0_7 = arith.constant 0 : index
    %16 = vector.load %arg4[%c0_6, %c0_7] : memref<176x128xbf16, #tpu.memory_space<vmem>>, vector<176x128xbf16>
    tpu.vector_store %arg4[%c0_6, %c0_7], %15 {strides = array<i32>} : memref<176x128xbf16, #tpu.memory_space<vmem>>, vector<176x128xbf16>,
    return
  }
  func.func @transform_0(%arg0: i32) -> (i32, i32) {
    %c0_i32 = arith.constant 0 : i32
    %c0_i32_0 = arith.constant 0 : i32
    return %arg0, %c0_i32 : i32, i32
  }
  func.func @transform_1(%arg0: i32) -> (i32, i32) {
    %c0_i32 = arith.constant 0 : i32
    %c0_i32_0 = arith.constant 0 : i32
    %c0_i32_1 = arith.constant 0 : i32
    return %c0_i32, %c0_i32_0 : i32, i32
  }
  func.func @transform_2(%arg0: i32) -> (i32, i32) {
    %c0_i32 = arith.constant 0 : i32
    %c0_i32_0 = arith.constant 0 : i32
    %c0_i32_1 = arith.constant 0 : i32
    return %c0_i32, %c0_i32_0 : i32, i32
  }
  func.func @transform_3(%arg0: i32) -> (i32, i32) {
    %c0_i32 = arith.constant 0 : i32
    %c0_i32_0 = arith.constant 0 : i32
    return %arg0, %c0_i32 : i32, i32
  }
}

module attributes {stable_mosaic.version = 11 : i64} {
  func.func @_conv_bn_relu_pool_kernel(%arg0: i32, %arg1: memref<128x256xbf16, #tpu.memory_space<vmem>>, %arg2: memref<256x128xbf16, #tpu.memory_space<vmem>>, %arg3: memref<1x128xf32, #tpu.memory_space<vmem>>, %arg4: memref<32x128xbf16, #tpu.memory_space<vmem>>) attributes {dimension_semantics = [#tpu.dimension_semantics<parallel>], iteration_bounds = array<i64: 2>, scalar_prefetch = 0 : i64, scratch_operands = 0 : i64, tpu.core_type = #tpu.core_type<tc>, window_params = [{transform_indices = @transform_0, window_bounds = array<i64: 128, 256>}, {pipeline_mode = #tpu.pipeline_mode<synchronous>, transform_indices = @transform_1, window_bounds = array<i64: 256, 128>}, {pipeline_mode = #tpu.pipeline_mode<synchronous>, transform_indices = @transform_2, window_bounds = array<i64: 1, 128>}, {transform_indices = @transform_3, window_bounds = array<i64: 32, 128>}]} {
    %c0 = arith.constant 0 : index
    %c0_0 = arith.constant 0 : index
    %0 = vector.load %arg1[%c0, %c0_0] : memref<128x256xbf16, #tpu.memory_space<vmem>>, vector<128x256xbf16>
    %c0_1 = arith.constant 0 : index
    %c0_2 = arith.constant 0 : index
    %1 = vector.load %arg2[%c0_1, %c0_2] : memref<256x128xbf16, #tpu.memory_space<vmem>>, vector<256x128xbf16>
    %cst = arith.constant dense<0.000000e+00> : vector<128x128xf32>
    %2 = tpu.matmul %0, %1, %cst {dimension_numbers = #tpu.dot_dimension_numbers<[1], [0], [0], [1], [0, 0, 1, 1], [], []>} : vector<128x256xbf16>, vector<256x128xbf16>, vector<128x128xf32> -> vector<128x128xf32>
    %3 = vector.extract_strided_slice %2 {offsets = [0, 0], sizes = [32, 128], strides = [1, 1]} : vector<128x128xf32> to vector<32x128xf32>
    %4 = vector.extract_strided_slice %2 {offsets = [32, 0], sizes = [32, 128], strides = [1, 1]} : vector<128x128xf32> to vector<32x128xf32>
    %5 = arith.maximumf %3, %4 : vector<32x128xf32>
    %6 = vector.extract_strided_slice %2 {offsets = [64, 0], sizes = [32, 128], strides = [1, 1]} : vector<128x128xf32> to vector<32x128xf32>
    %7 = vector.extract_strided_slice %2 {offsets = [96, 0], sizes = [32, 128], strides = [1, 1]} : vector<128x128xf32> to vector<32x128xf32>
    %8 = arith.maximumf %6, %7 : vector<32x128xf32>
    %9 = arith.maximumf %5, %8 : vector<32x128xf32>
    %c0_3 = arith.constant 0 : index
    %c0_4 = arith.constant 0 : index
    %10 = vector.load %arg3[%c0_3, %c0_4] : memref<1x128xf32, #tpu.memory_space<vmem>>, vector<1x128xf32>
    %11 = vector.broadcast %10 : vector<1x128xf32> to vector<32x128xf32>
    %12 = arith.addf %9, %11 : vector<32x128xf32>
    %cst_5 = arith.constant 0.000000e+00 : f32
    %13 = vector.broadcast %cst_5 : f32 to vector<32x128xf32>
    %14 = arith.maximumf %12, %13 : vector<32x128xf32>
    %15 = arith.truncf %14 : vector<32x128xf32> to vector<32x128xbf16>
    %c0_6 = arith.constant 0 : index
    %c0_7 = arith.constant 0 : index
    %16 = vector.load %arg4[%c0_6, %c0_7] : memref<32x128xbf16, #tpu.memory_space<vmem>>, vector<32x128xbf16>
    tpu.vector_store %arg4[%c0_6, %c0_7], %15 {strides = array<i32>} : memref<32x128xbf16, #tpu.memory_space<vmem>>, vector<32x128xbf16>,
    return
  }
  func.func @transform_0(%arg0: i32) -> (i32, i32) {
    %c0_i32 = arith.constant 0 : i32
    %c0_i32_0 = arith.constant 0 : i32
    return %arg0, %c0_i32 : i32, i32
  }
  func.func @transform_1(%arg0: i32) -> (i32, i32) {
    %c0_i32 = arith.constant 0 : i32
    %c0_i32_0 = arith.constant 0 : i32
    %c0_i32_1 = arith.constant 0 : i32
    return %c0_i32, %c0_i32_0 : i32, i32
  }
  func.func @transform_2(%arg0: i32) -> (i32, i32) {
    %c0_i32 = arith.constant 0 : i32
    %c0_i32_0 = arith.constant 0 : i32
    %c0_i32_1 = arith.constant 0 : i32
    return %c0_i32, %c0_i32_0 : i32, i32
  }
  func.func @transform_3(%arg0: i32) -> (i32, i32) {
    %c0_i32 = arith.constant 0 : i32
    %c0_i32_0 = arith.constant 0 : i32
    return %arg0, %c0_i32 : i32, i32
  }
}

module attributes {stable_mosaic.version = 11 : i64} {
  func.func @_fc_head_kernel(%arg0: i32, %arg1: memref<8x1280xbf16, #tpu.memory_space<vmem>>, %arg2: memref<1280x1024xi8, #tpu.memory_space<vmem>>, %arg3: memref<1x1024xf32, #tpu.memory_space<vmem>>, %arg4: memref<1x1024xf32, #tpu.memory_space<vmem>>, %arg5: memref<1024x128xbf16, #tpu.memory_space<vmem>>, %arg6: memref<1x128xf32, #tpu.memory_space<vmem>>, %arg7: memref<128x128xbf16, #tpu.memory_space<vmem>>, %arg8: memref<1x128xf32, #tpu.memory_space<vmem>>, %arg9: memref<8x128xf32, #tpu.memory_space<vmem>>) attributes {dimension_semantics = [#tpu.dimension_semantics<arbitrary>], iteration_bounds = array<i64: 1>, scalar_prefetch = 0 : i64, scratch_operands = 0 : i64, tpu.core_type = #tpu.core_type<tc>, window_params = [{pipeline_mode = #tpu.pipeline_mode<synchronous>, transform_indices = @transform_0, window_bounds = array<i64: 8, 1280>}, {pipeline_mode = #tpu.pipeline_mode<synchronous>, transform_indices = @transform_1, window_bounds = array<i64: 1280, 1024>}, {pipeline_mode = #tpu.pipeline_mode<synchronous>, transform_indices = @transform_2, window_bounds = array<i64: 1, 1024>}, {pipeline_mode = #tpu.pipeline_mode<synchronous>, transform_indices = @transform_3, window_bounds = array<i64: 1, 1024>}, {pipeline_mode = #tpu.pipeline_mode<synchronous>, transform_indices = @transform_4, window_bounds = array<i64: 1024, 128>}, {pipeline_mode = #tpu.pipeline_mode<synchronous>, transform_indices = @transform_5, window_bounds = array<i64: 1, 128>}, {pipeline_mode = #tpu.pipeline_mode<synchronous>, transform_indices = @transform_6, window_bounds = array<i64: 128, 128>}, {pipeline_mode = #tpu.pipeline_mode<synchronous>, transform_indices = @transform_7, window_bounds = array<i64: 1, 128>}, {pipeline_mode = #tpu.pipeline_mode<synchronous>, transform_indices = @transform_8, window_bounds = array<i64: 8, 128>}]} {
    %c0 = arith.constant 0 : index
    %c0_0 = arith.constant 0 : index
    %0 = vector.load %arg2[%c0, %c0_0] : memref<1280x1024xi8, #tpu.memory_space<vmem>>, vector<1280x1024xi8>
    %1 = arith.sitofp %0 : vector<1280x1024xi8> to vector<1280x1024xbf16>
    %c0_1 = arith.constant 0 : index
    %c0_2 = arith.constant 0 : index
    %2 = vector.load %arg1[%c0_1, %c0_2] : memref<8x1280xbf16, #tpu.memory_space<vmem>>, vector<8x1280xbf16>
    %cst = arith.constant dense<0.000000e+00> : vector<8x1024xf32>
    %3 = tpu.matmul %2, %1, %cst {dimension_numbers = #tpu.dot_dimension_numbers<[1], [0], [0], [1], [0, 0, 1, 1], [], []>} : vector<8x1280xbf16>, vector<1280x1024xbf16>, vector<8x1024xf32> -> vector<8x1024xf32>
    %c0_3 = arith.constant 0 : index
    %c0_4 = arith.constant 0 : index
    %4 = vector.load %arg3[%c0_3, %c0_4] : memref<1x1024xf32, #tpu.memory_space<vmem>>, vector<1x1024xf32>
    %5 = vector.broadcast %4 : vector<1x1024xf32> to vector<8x1024xf32>
    %6 = arith.mulf %3, %5 : vector<8x1024xf32>
    %c0_5 = arith.constant 0 : index
    %c0_6 = arith.constant 0 : index
    %7 = vector.load %arg4[%c0_5, %c0_6] : memref<1x1024xf32, #tpu.memory_space<vmem>>, vector<1x1024xf32>
    %8 = vector.broadcast %7 : vector<1x1024xf32> to vector<8x1024xf32>
    %9 = arith.addf %6, %8 : vector<8x1024xf32>
    %cst_7 = arith.constant 0.000000e+00 : f32
    %10 = vector.broadcast %cst_7 : f32 to vector<8x1024xf32>
    %11 = arith.maximumf %9, %10 : vector<8x1024xf32>
    %12 = arith.truncf %11 : vector<8x1024xf32> to vector<8x1024xbf16>
    %c0_8 = arith.constant 0 : index
    %c0_9 = arith.constant 0 : index
    %13 = vector.load %arg5[%c0_8, %c0_9] : memref<1024x128xbf16, #tpu.memory_space<vmem>>, vector<1024x128xbf16>
    %cst_10 = arith.constant dense<0.000000e+00> : vector<8x128xf32>
    %14 = tpu.matmul %12, %13, %cst_10 {dimension_numbers = #tpu.dot_dimension_numbers<[1], [0], [0], [1], [0, 0, 1, 1], [], []>} : vector<8x1024xbf16>, vector<1024x128xbf16>, vector<8x128xf32> -> vector<8x128xf32>
    %c0_11 = arith.constant 0 : index
    %c0_12 = arith.constant 0 : index
    %15 = vector.load %arg6[%c0_11, %c0_12] : memref<1x128xf32, #tpu.memory_space<vmem>>, vector<1x128xf32>
    %16 = vector.broadcast %15 : vector<1x128xf32> to vector<8x128xf32>
    %17 = arith.addf %14, %16 : vector<8x128xf32>
    %cst_13 = arith.constant 0.000000e+00 : f32
    %18 = vector.broadcast %cst_13 : f32 to vector<8x128xf32>
    %19 = arith.maximumf %17, %18 : vector<8x128xf32>
    %20 = arith.truncf %19 : vector<8x128xf32> to vector<8x128xbf16>
    %c0_14 = arith.constant 0 : index
    %c0_15 = arith.constant 0 : index
    %21 = vector.load %arg7[%c0_14, %c0_15] : memref<128x128xbf16, #tpu.memory_space<vmem>>, vector<128x128xbf16>
    %cst_16 = arith.constant dense<0.000000e+00> : vector<8x128xf32>
    %22 = tpu.matmul %20, %21, %cst_16 {dimension_numbers = #tpu.dot_dimension_numbers<[1], [0], [0], [1], [0, 0, 1, 1], [], []>} : vector<8x128xbf16>, vector<128x128xbf16>, vector<8x128xf32> -> vector<8x128xf32>
    %c0_17 = arith.constant 0 : index
    %c0_18 = arith.constant 0 : index
    %23 = vector.load %arg8[%c0_17, %c0_18] : memref<1x128xf32, #tpu.memory_space<vmem>>, vector<1x128xf32>
    %24 = vector.broadcast %23 : vector<1x128xf32> to vector<8x128xf32>
    %25 = arith.addf %22, %24 : vector<8x128xf32>
    %c0_19 = arith.constant 0 : index
    %c0_20 = arith.constant 0 : index
    %26 = vector.load %arg9[%c0_19, %c0_20] : memref<8x128xf32, #tpu.memory_space<vmem>>, vector<8x128xf32>
    tpu.vector_store %arg9[%c0_19, %c0_20], %25 {strides = array<i32>} : memref<8x128xf32, #tpu.memory_space<vmem>>, vector<8x128xf32>,
    return
  }
  func.func @transform_0(%arg0: i32) -> (i32, i32) {
    %c0_i32 = arith.constant 0 : i32
    %c0_i32_0 = arith.constant 0 : i32
    %c0_i32_1 = arith.constant 0 : i32
    return %c0_i32, %c0_i32_0 : i32, i32
  }
  func.func @transform_1(%arg0: i32) -> (i32, i32) {
    %c0_i32 = arith.constant 0 : i32
    %c0_i32_0 = arith.constant 0 : i32
    %c0_i32_1 = arith.constant 0 : i32
    return %c0_i32, %c0_i32_0 : i32, i32
  }
  func.func @transform_2(%arg0: i32) -> (i32, i32) {
    %c0_i32 = arith.constant 0 : i32
    %c0_i32_0 = arith.constant 0 : i32
    %c0_i32_1 = arith.constant 0 : i32
    return %c0_i32, %c0_i32_0 : i32, i32
  }
  func.func @transform_3(%arg0: i32) -> (i32, i32) {
    %c0_i32 = arith.constant 0 : i32
    %c0_i32_0 = arith.constant 0 : i32
    %c0_i32_1 = arith.constant 0 : i32
    return %c0_i32, %c0_i32_0 : i32, i32
  }
  func.func @transform_4(%arg0: i32) -> (i32, i32) {
    %c0_i32 = arith.constant 0 : i32
    %c0_i32_0 = arith.constant 0 : i32
    %c0_i32_1 = arith.constant 0 : i32
    return %c0_i32, %c0_i32_0 : i32, i32
  }
  func.func @transform_5(%arg0: i32) -> (i32, i32) {
    %c0_i32 = arith.constant 0 : i32
    %c0_i32_0 = arith.constant 0 : i32
    %c0_i32_1 = arith.constant 0 : i32
    return %c0_i32, %c0_i32_0 : i32, i32
  }
  func.func @transform_6(%arg0: i32) -> (i32, i32) {
    %c0_i32 = arith.constant 0 : i32
    %c0_i32_0 = arith.constant 0 : i32
    %c0_i32_1 = arith.constant 0 : i32
    return %c0_i32, %c0_i32_0 : i32, i32
  }
  func.func @transform_7(%arg0: i32) -> (i32, i32) {
    %c0_i32 = arith.constant 0 : i32
    %c0_i32_0 = arith.constant 0 : i32
    %c0_i32_1 = arith.constant 0 : i32
    return %c0_i32, %c0_i32_0 : i32, i32
  }
  func.func @transform_8(%arg0: i32) -> (i32, i32) {
    %c0_i32 = arith.constant 0 : i32
    %c0_i32_0 = arith.constant 0 : i32
    %c0_i32_1 = arith.constant 0 : i32
    return %c0_i32, %c0_i32_0 : i32, i32
  }
}

</mosaic_0001>

<bundles_post_ra>
// kernel: alexnet_forward.3
= control target key start
LH: loop header
LB: loop body
LE: loop exit
PB: predicated region body
PF: predicated region fallthrough
CT: control target
= control target key end

     0   :  { %s1718_s12 = smov 0   ;;  %s1986_s0 = inlined_call_operand.vmem [shape: bf16[1408,16], index: 0, kind: input, shape index: {}]   ;;  %s1987_s1 = inlined_call_operand.vmem [shape: bf16[16,128], index: 1, kind: input, shape index: {}]   ;;  %s1988_s2 = inlined_call_operand.vmem [shape: f32[1,128], index: 2, kind: input, shape index: {}]   ;;  %s1989_s3 = inlined_call_operand.vmem [shape: bf16[352,128], index: 3, kind: output, shape index: {}]  }
   0x1 LB: > { %s1292_s13 = sadd.s32 4294967295, %s1696_s12   ;;  %p1296_p0 = scmp.ge.s32.totalorder %s1696_s12, 1  ;;  %s1696_s12 = sphi %s1718_s12, %s13_s12  }
   0x2   : > { %p138_p1 = scmp.lt.s32.totalorder %s1696_s12, 3 }
   0x4   : > { %p139_p2 = pnand %p1296_p0, %p138_p1 }
   0x5   : > { %s162_s16 = smul.u32 (!%p139_p2), 88, %s1292_s13 }
   0x6   : > { %142 = sbr.rel (%p139_p2) target bundleno = 306 (0x132), region = 32 }
   0x7   : > { %p163_p3 = scmp.lt.s32.totalorder (!%p139_p2), %s162_s16, 175  ;;  %s168_s21 = smul.u32 (!%p139_p2), 22, %s1292_s13 }
   0x9   : > { %p169_p4 = scmp.lt.s32.totalorder (!%p139_p2), %s168_s21, 43 }
   0xb   : > { %v1645_v0 = vld [vmem:[%s1987_s1] sm:$0xff]   ;;  %s1991_s16 = smov (!%p163_p3, %s162_s16), 175  ;;  %vm491_vm0 = vcmask 130048   ;;  %s1993_s21 = smov (!%p169_p4, %s168_s21), 43 }
   0xc   : > { %1545 = vmatprep.subr.bf16.mxu0 %v1645_v0  ;;  %1635 = vmatprep.subr.bf16.mxu1 %v1645_v0  ;;  %s1297_s17 = sshll.u32 %s1991_s16, 2  ;;  %s1298_s24 = sshll.u32 %s1993_s21, 2 }
   0xd   : > { %1546 = vmatpush3.bf16.msra.mxu0 %v1645_v0  ;;  %1636 = vmatpush3.bf16.msra.mxu1 %v1645_v0  ;;  %s1734_s20 = scalar_lea.vmem %s1986_s0, %s1297_s17  ;;  %s1914_s27 = scalar_lea.vmem %s1989_s3, %s1298_s24 }
   0xe   : > { %v1646_v1 = vld [vmem:[%s1734_s20] sm:$0xff]   ;;  %v1647_v2 = vld [vmem:[%s1734_s20 + $0xb0] sm:$0xff]   ;;  %v1648_v3 = vld [vmem:[%s1734_s20 + $0x8] sm:$0xff]  }
   0xf   : > { %1547 = vmatprep.mubr.msk.bf16.mxu0 %vm491_vm0, %v1646_v1  ;;  %1591 = vmatprep.mubr.msk.bf16.mxu1 %vm491_vm0, %v1647_v2  ;;  %v1649_v4 = vld [vmem:[%s1734_s20 + $0xb8] sm:$0xff]   ;;  %v1650_v5 = vld [vmem:[%s1734_s20 + $0x10] sm:$0xff]   ;;  %v1651_v6 = vld [vmem:[%s1734_s20 + $0xc0] sm:$0xff]  }
  0x10   : > { %1548 = vmatmul.mubr.msk.bf16.vlgmr.msra.gmra.mxu0 %vm491_vm0, %v1648_v3  ;;  %1592 = vmatmul.mubr.msk.bf16.vlgmr.msra.gmra.mxu1 %vm491_vm0, %v1649_v4  ;;  %v1652_v7 = vld [vmem:[%s1734_s20 + $0x18] sm:$0xff]   ;;  %v1653_v8 = vld [vmem:[%s1734_s20 + $0xc8] sm:$0xff]   ;;  %v1654_v9 = vld [vmem:[%s1734_s20 + $0x20] sm:$0xff]  }
  0x11   : > { %1551 = vmatprep.mubr.msk.bf16.mxu0 %vm491_vm0, %v1650_v5  ;;  %1595 = vmatprep.mubr.msk.bf16.mxu1 %vm491_vm0, %v1651_v6  ;;  %v1655_v10 = vld [vmem:[%s1734_s20 + $0xd0] sm:$0xff]   ;;  %v1656_v11 = vld [vmem:[%s1734_s20 + $0x28] sm:$0xff]   ;;  %v1657_v12 = vld [vmem:[%s1734_s20 + $0xd8] sm:$0xff]  }
  0x12   : > { %v1658_v13 = vld [vmem:[%s1734_s20 + $0x30] sm:$0xff]   ;;  %v1659_v14 = vld [vmem:[%s1734_s20 + $0xe0] sm:$0xff]   ;;  %v1660_v15 = vld [vmem:[%s1734_s20 + $0x38] sm:$0xff]  }
  0x13   : > { %v1661_v16 = vld [vmem:[%s1734_s20 + $0xe8] sm:$0xff]   ;;  %v1662_v17 = vld [vmem:[%s1734_s20 + $0x40] sm:$0xff]   ;;  %v1663_v18 = vld [vmem:[%s1734_s20 + $0xf0] sm:$0xff]  }
  0x14   : > { %v1664_v19 = vld [vmem:[%s1734_s20 + $0x48] sm:$0xff]   ;;  %v1665_v20 = vld [vmem:[%s1734_s20 + $0xf8] sm:$0xff]   ;;  %v1666_v21 = vld [vmem:[%s1734_s20 + $0x50] sm:$0xff]  }
  0x15   : > { %v1667_v22 = vld [vmem:[%s1734_s20 + $0x100] sm:$0xff]   ;;  %v1668_v23 = vld [vmem:[%s1734_s20 + $0x58] sm:$0xff]   ;;  %v1669_v24 = vld [vmem:[%s1734_s20 + $0x108] sm:$0xff]  }
  0x16   : > { %v1670_v25 = vld [vmem:[%s1734_s20 + $0x60] sm:$0xff]   ;;  %v1671_v26 = vld [vmem:[%s1734_s20 + $0x110] sm:$0xff]   ;;  %v1672_v27 = vld [vmem:[%s1734_s20 + $0x68] sm:$0xff]  }
  0x17   : > { %v1673_v28 = vld [vmem:[%s1734_s20 + $0x118] sm:$0xff]   ;;  %v1674_v29 = vld [vmem:[%s1734_s20 + $0x70] sm:$0xff]   ;;  %v1675_v30 = vld [vmem:[%s1734_s20 + $0x120] sm:$0xff]  }
  0x18   : > { %1552 = vmatmul.mubr.msk.bf16.gmra.mxu0 %vm491_vm0, %v1652_v7  ;;  %1596 = vmatmul.mubr.msk.bf16.gmra.mxu1 %vm491_vm0, %v1653_v8  ;;  %v1676_v31 = vld [vmem:[%s1734_s20 + $0x78] sm:$0xff]   ;;  %v1677_v32 = vld [vmem:[%s1734_s20 + $0x128] sm:$0xff]   ;;  %v1678_v33 = vld [vmem:[%s1734_s20 + $0x80] sm:$0xff]  }
  0x19   : > { %1555 = vmatprep.mubr.msk.bf16.mxu0 %vm491_vm0, %v1654_v9  ;;  %1599 = vmatprep.mubr.msk.bf16.mxu1 %vm491_vm0, %v1655_v10  ;;  %v1679_v34 = vld [vmem:[%s1734_s20 + $0x130] sm:$0xff]   ;;  %v1680_v35 = vld [vmem:[%s1734_s20 + $0x88] sm:$0xff]   ;;  %v1681_v36 = vld [vmem:[%s1734_s20 + $0x138] sm:$0xff]  }
  0x1a   : > { %v1682_v37 = vld [vmem:[%s1734_s20 + $0x90] sm:$0xff]   ;;  %v1683_v38 = vld [vmem:[%s1734_s20 + $0x140] sm:$0xff]   ;;  %v1684_v39 = vld [vmem:[%s1734_s20 + $0x98] sm:$0xff]  }
  0x1b   : > { %v1685_v40 = vld [vmem:[%s1734_s20 + $0x148] sm:$0xff]   ;;  %v1686_v41 = vld [vmem:[%s1734_s20 + $0xa0] sm:$0xff]   ;;  %v1687_v42 = vld [vmem:[%s1734_s20 + $0x150] sm:$0xff]  }
  0x1c   : > { %v1688_v43 = vld [vmem:[%s1734_s20 + $0xa8] sm:$0xff]   ;;  %v1689_v44 = vld [vmem:[%s1734_s20 + $0x158] sm:$0xff]  }
  0x20   : > { %1556 = vmatmul.mubr.msk.bf16.gmra.mxu0 %vm491_vm0, %v1656_v11  ;;  %1600 = vmatmul.mubr.msk.bf16.gmra.mxu1 %vm491_vm0, %v1657_v12 }
  0x21   : > { %1559 = vmatprep.mubr.msk.bf16.mxu0 %vm491_vm0, %v1658_v13  ;;  %1603 = vmatprep.mubr.msk.bf16.mxu1 %vm491_vm0, %v1659_v14 }
  0x28   : > { %1560 = vmatmul.mubr.msk.bf16.gmra.mxu0 %vm491_vm0, %v1660_v15  ;;  %1604 = vmatmul.mubr.msk.bf16.gmra.mxu1 %vm491_vm0, %v1661_v16 }
  0x29   : > { %1563 = vmatprep.mubr.msk.bf16.mxu0 %vm491_vm0, %v1662_v17  ;;  %1607 = vmatprep.mubr.msk.bf16.mxu1 %vm491_vm0, %v1663_v18 }
  0x30   : > { %1564 = vmatmul.mubr.msk.bf16.gmra.mxu0 %vm491_vm0, %v1664_v19  ;;  %1608 = vmatmul.mubr.msk.bf16.gmra.mxu1 %vm491_vm0, %v1665_v20 }
  0x31   : > { %1567 = vmatprep.mubr.msk.bf16.mxu0 %vm491_vm0, %v1666_v21  ;;  %1611 = vmatprep.mubr.msk.bf16.mxu1 %vm491_vm0, %v1667_v22 }
  0x38   : > { %1568 = vmatmul.mubr.msk.bf16.gmra.mxu0 %vm491_vm0, %v1668_v23  ;;  %1612 = vmatmul.mubr.msk.bf16.gmra.mxu1 %vm491_vm0, %v1669_v24 }
  0x39   : > { %1571 = vmatprep.mubr.msk.bf16.mxu0 %vm491_vm0, %v1670_v25  ;;  %1615 = vmatprep.mubr.msk.bf16.mxu1 %vm491_vm0, %v1671_v26 }
  0x40   : > { %1572 = vmatmul.mubr.msk.bf16.gmra.mxu0 %vm491_vm0, %v1672_v27  ;;  %1616 = vmatmul.mubr.msk.bf16.gmra.mxu1 %vm491_vm0, %v1673_v28 }
  0x41   : > { %1575 = vmatprep.mubr.msk.bf16.mxu0 %vm491_vm0, %v1674_v29  ;;  %1619 = vmatprep.mubr.msk.bf16.mxu1 %vm491_vm0, %v1675_v30  ;;  %v1901_v29 = vld [vmem:[%s1988_s2] ss:$0 sm:$0xff] }
  0x48   : > { %1576 = vmatmul.mubr.msk.bf16.gmra.mxu0 %vm491_vm0, %v1676_v31  ;;  %1620 = vmatmul.mubr.msk.bf16.gmra.mxu1 %vm491_vm0, %v1677_v32 }
  0x49   : > { %1579 = vmatprep.mubr.msk.bf16.mxu0 %vm491_vm0, %v1678_v33  ;;  %1623 = vmatprep.mubr.msk.bf16.mxu1 %vm491_vm0, %v1679_v34 }
  0x50   : > { %1580 = vmatmul.mubr.msk.bf16.gmra.mxu0 %vm491_vm0, %v1680_v35  ;;  %1624 = vmatmul.mubr.msk.bf16.gmra.mxu1 %vm491_vm0, %v1681_v36 }
  0x51   : > { %1583 = vmatprep.mubr.msk.bf16.mxu0 %vm491_vm0, %v1682_v37  ;;  %1627 = vmatprep.mubr.msk.bf16.mxu1 %vm491_vm0, %v1683_v38 }
  0x58   : > { %1584 = vmatmul.mubr.msk.bf16.gmra.mxu0 %vm491_vm0, %v1684_v39  ;;  %1628 = vmatmul.mubr.msk.bf16.gmra.mxu1 %vm491_vm0, %v1685_v40 }
  0x59   : > { %1587 = vmatprep.mubr.msk.bf16.mxu0 %vm491_vm0, %v1686_v41  ;;  %1631 = vmatprep.mubr.msk.bf16.mxu1 %vm491_vm0, %v1687_v42 }
  0x60   : > { %1588 = vmatmul.mubr.msk.bf16.gmra.mxu0 %vm491_vm0, %v1688_v43  ;;  %1632 = vmatmul.mubr.msk.bf16.gmra.mxu1 %vm491_vm0, %v1689_v44 }
  0xd0   : > { %v1824_v45 = vpop.f32.mrf.mxu0  ;;  %v1826_v46 = vpop.f32.mrf.mxu1 }
  0xd2   : > { %v658_v47 = vpop.f32.mrf.mxu0  ;;  %v834_v48 = vpop.f32.mrf.mxu1 }
  0xd4   : > { %v1828_v49 = vpop.f32.mrf.mxu0  ;;  %v1830_v50 = vpop.f32.mrf.mxu1 }
  0xd6   : > { %v661_v51 = vpop.f32.mrf.mxu0  ;;  %v837_v52 = vpop.f32.mrf.mxu1 }
  0xd8   : > { %v1832_v53 = vpop.f32.mrf.mxu0  ;;  %v1834_v54 = vpop.f32.mrf.mxu1 }
  0xda   : > { %v674_v55 = vpop.f32.mrf.mxu0  ;;  %v850_v56 = vpop.f32.mrf.mxu1 }
  0xdc   : > { %v1836_v57 = vpop.f32.mrf.mxu0  ;;  %v1838_v58 = vpop.f32.mrf.mxu1 }
  0xde   : > { %v1840_v59 = vpop.f32.mrf.mxu0  ;;  %v1842_v60 = vpop.f32.mrf.mxu1 }
  0xe0   : > { %v1844_v61 = vpop.f32.mrf.mxu0  ;;  %v1846_v62 = vpop.f32.mrf.mxu1 }
  0xe2   : > { %v1848_v63 = vpop.f32.mrf.mxu0  ;;  %v1850_v0 = vpop.f32.mrf.mxu1 }
  0xe4   : > { %v1852_v1 = vpop.f32.mrf.mxu0  ;;  %v1854_v2 = vpop.f32.mrf.mxu1 }
  0xe6   : > { %v1856_v3 = vpop.f32.mrf.mxu0  ;;  %v1858_v4 = vpop.f32.mrf.mxu1 }
  0xe8   : > { %v1860_v5 = vpop.f32.mrf.mxu0  ;;  %v1862_v6 = vpop.f32.mrf.mxu1 }
  0xea   : > { %v1864_v7 = vpop.f32.mrf.mxu0  ;;  %v1866_v8 = vpop.f32.mrf.mxu1 }
  0xec   : > { %v1868_v9 = vpop.f32.mrf.mxu0  ;;  %v1870_v10 = vpop.f32.mrf.mxu1 }
  0xee   : > { %v1872_v11 = vpop.f32.mrf.mxu0  ;;  %v1874_v12 = vpop.f32.mrf.mxu1 }
  0xf0   : > { %v1876_v13 = vpop.f32.mrf.mxu0  ;;  %v1878_v14 = vpop.f32.mrf.mxu1 }
  0xf2   : > { %v1880_v15 = vpop.f32.mrf.mxu0  ;;  %v1882_v16 = vpop.f32.mrf.mxu1 }
  0xf4   : > { %v1884_v17 = vpop.f32.mrf.mxu0  ;;  %v1886_v18 = vpop.f32.mrf.mxu1 }
  0xf6   : > { %v1888_v19 = vpop.f32.mrf.mxu0  ;;  %v1892_v20 = vpop.f32.mrf.mxu1 }
  0xf8   : > { %v1569_v21 = vpop.f32.mrf.mxu0  ;;  %v1613_v23 = vpop.f32.mrf.mxu1 }
  0xf9   : > { %v1009_v22 = vmax.f32 %v658_v47, %v1569_v21  ;;  %v1031_v24 = vmax.f32 %v834_v48, %v1613_v23 }
  0xfa   : > { %v1894_v25 = vpop.f32.mrf.mxu0  ;;  %v1896_v26 = vpop.f32.mrf.mxu1 }
  0xfb   : > { %v1053_v27 = vmax.f32 %v1009_v22, %v1031_v24 }
  0xfc   : > { %v1570_v28 = vpop.f32.mrf.mxu0  ;;  %v1614_v31 = vpop.f32.mrf.mxu1 }
  0xfd   : > { %v1010_v30 = vmax.f32 %v661_v51, %v1570_v28  ;;  %v1032_v32 = vmax.f32 %v837_v52, %v1614_v31  ;;  %v1082_v35 = vadd.f32 %v1901_v29, %v1053_v27 }
  0xfe   : > { %v1903_v33 = vpop.f32.mrf.mxu0  ;;  %v1905_v34 = vpop.f32.mrf.mxu1 }
  0xff   : > { %v1054_v36 = vmax.f32 %v1010_v30, %v1032_v32  ;;  %v1104_v47 = vmax.f32 %v1082_v35, 0.0 }
 0x100   : > { %v1573_v37 = vpop.f32.mrf.mxu0  ;;  %v1617_v39 = vpop.f32.mrf.mxu1 }
 0x101   : > { %v1013_v38 = vmax.f32 %v674_v55, %v1573_v37  ;;  %v1083_v40 = vadd.f32 %v1901_v29, %v1054_v36  ;;  %v1035_v41 = vmax.f32 %v850_v56, %v1617_v39 }
 0x102   : > { %v754_v42 = vpop.f32.mrf.mxu0  ;;  %v930_v44 = vpop.f32.mrf.mxu1 }
 0x103   : > { %v1011_v43 = vmax.f32 %v1824_v45, %v754_v42  ;;  %v1105_v48 = vmax.f32 %v1083_v40, 0.0  ;;  %v1057_v51 = vmax.f32 %v1013_v38, %v1035_v41  ;;  %v1033_v52 = vmax.f32 %v1826_v46, %v930_v44 }
 0x104   : > { %v1574_v21 = vpop.f32.mrf.mxu0  ;;  %v1618_v22 = vpop.f32.mrf.mxu1 }
 0x105   : > { %v1014_v55 = vmax.f32 %v1840_v59, %v1574_v21  ;;  %v1438_v56 = vpack.c.bf16 %v1105_v48, %v1104_v47  ;;  %v1055_v23 = vmax.f32 %v1011_v43, %v1033_v52  ;;  %v1036_v45 = vmax.f32 %v1842_v60, %v1618_v22 }
 0x106   : > { %v757_v24 = vpop.f32.mrf.mxu0  ;;  %v933_v28 = vpop.f32.mrf.mxu1  ;;  %v1086_v46 = vadd.f32 %v1901_v29, %v1057_v51 }
 0x107   : > { %v1012_v27 = vmax.f32 %v1828_v49, %v757_v24  ;;  %1439 = vst [vmem:[%s1914_s27] sm:$0xff] %v1438_v56   ;;  %v1058_v30 = vmax.f32 %v1014_v55, %v1036_v45  ;;  %v1034_v31 = vmax.f32 %v1830_v50, %v933_v28  ;;  %v1084_v59 = vadd.f32 %v1901_v29, %v1055_v23 }
 0x108   : > { %v1577_v32 = vpop.f32.mrf.mxu0  ;;  %v1621_v36 = vpop.f32.mrf.mxu1  ;;  %v1108_v41 = vmax.f32 %v1086_v46, 0.0 }
 0x109   : > { %v1017_v35 = vmax.f32 %v1848_v63, %v1577_v32  ;;  %v1087_v37 = vadd.f32 %v1901_v29, %v1058_v30  ;;  %v1056_v38 = vmax.f32 %v1012_v27, %v1034_v31  ;;  %v1039_v60 = vmax.f32 %v1850_v0, %v1621_v36 }
 0x10a   : > { %v770_v39 = vpop.f32.mrf.mxu0  ;;  %v946_v40 = vpop.f32.mrf.mxu1  ;;  %v1106_v51 = vmax.f32 %v1084_v59, 0.0 }
 0x10b   : > { %v1015_v49 = vmax.f32 %v1832_v53, %v770_v39  ;;  %v1109_v42 = vmax.f32 %v1087_v37, 0.0  ;;  %v1085_v50 = vadd.f32 %v1901_v29, %v1056_v38  ;;  %v1037_v43 = vmax.f32 %v1834_v54, %v946_v40 }
 0x10c   : > { %v1578_v63 = vpop.f32.mrf.mxu0  ;;  %v1061_v44 = vmax.f32 %v1017_v35, %v1039_v60  ;;  %v1622_v48 = vpop.f32.mrf.mxu1 }
 0x10d   : > { %v1018_v47 = vmax.f32 %v1856_v3, %v1578_v63  ;;  %v1448_v52 = vpack.c.bf16 %v1109_v42, %v1108_v41  ;;  %v1107_v0 = vmax.f32 %v1085_v50, 0.0  ;;  %v1059_v21 = vmax.f32 %v1015_v49, %v1037_v43 }
 0x10e   : > { %v773_v55 = vpop.f32.mrf.mxu0  ;;  %v1040_v53 = vmax.f32 %v1858_v4, %v1622_v48  ;;  %v949_v56 = vpop.f32.mrf.mxu1  ;;  %v1090_v24 = vadd.f32 %v1901_v29, %v1061_v44 }
 0x10f   : > { %v1016_v22 = vmax.f32 %v1836_v57, %v773_v55  ;;  %1491 = vst [vmem:[%s1914_s27 + $0x10] sm:$0xff] %v1448_v52   ;;  %v1443_v23 = vpack.c.bf16 %v1107_v0, %v1106_v51  ;;  %v1038_v54 = vmax.f32 %v1838_v58, %v949_v56  ;;  %v1088_v46 = vadd.f32 %v1901_v29, %v1059_v21 }
 0x110   : > { %v1581_v45 = vpop.f32.mrf.mxu0  ;;  %v1062_v3 = vmax.f32 %v1018_v47, %v1040_v53  ;;  %v1625_v28 = vpop.f32.mrf.mxu1 }
 0x111   : > { %v1021_v27 = vmax.f32 %v1864_v7, %v1581_v45  ;;  %1490 = vst [vmem:[%s1914_s27 + $0x8] sm:$0xff] %v1443_v23   ;;  %v1060_v30 = vmax.f32 %v1016_v22, %v1038_v54  ;;  %v1043_v4 = vmax.f32 %v1866_v8, %v1625_v28  ;;  %v1112_v7 = vmax.f32 %v1090_v24, 0.0 }
 0x112   : > { %v786_v31 = vpop.f32.mrf.mxu0  ;;  %v1091_v57 = vadd.f32 %v1901_v29, %v1062_v3  ;;  %v962_v35 = vpop.f32.mrf.mxu1  ;;  %v1110_v49 = vmax.f32 %v1088_v46, 0.0 }
 0x113   : > { %v1019_v32 = vmax.f32 %v1844_v61, %v786_v31  ;;  %v1089_v58 = vadd.f32 %v1901_v29, %v1060_v30  ;;  %v1065_v36 = vmax.f32 %v1021_v27, %v1043_v4  ;;  %v1041_v59 = vmax.f32 %v1846_v62, %v962_v35 }
 0x114   : > { %v1582_v37 = vpop.f32.mrf.mxu0  ;;  %v1113_v38 = vmax.f32 %v1091_v57, 0.0  ;;  %v1626_v39 = vpop.f32.mrf.mxu1 }
 0x115   : > { %v1022_v60 = vmax.f32 %v1872_v11, %v1582_v37  ;;  %v1111_v8 = vmax.f32 %v1089_v58, 0.0  ;;  %v1044_v40 = vmax.f32 %v1874_v12, %v1626_v39  ;;  %v1063_v42 = vmax.f32 %v1019_v32, %v1041_v59 }
 0x116   : > { %v789_v41 = vpop.f32.mrf.mxu0  ;;  %v1458_v61 = vpack.c.bf16 %v1113_v38, %v1112_v7  ;;  %v965_v43 = vpop.f32.mrf.mxu1  ;;  %v1094_v62 = vadd.f32 %v1901_v29, %v1065_v36 }
 0x117   : > { %v1020_v50 = vmax.f32 %v1852_v1, %v789_v41  ;;  %v1453_v63 = vpack.c.bf16 %v1111_v8, %v1110_v49  ;;  %v1066_v44 = vmax.f32 %v1022_v60, %v1044_v40  ;;  %v1042_v11 = vmax.f32 %v1854_v2, %v965_v43 }
 0x118   : > { %v1585_v47 = vpop.f32.mrf.mxu0  ;;  %1493 = vst [vmem:[%s1914_s27 + $0x20] sm:$0xff] %v1458_v61   ;;  %v1629_v51 = vpop.f32.mrf.mxu1  ;;  %v1092_v1 = vadd.f32 %v1901_v29, %v1063_v42  ;;  %v1116_v22 = vmax.f32 %v1094_v62, 0.0 }
 0x119   : > { %v1025_v48 = vmax.f32 %v1880_v15, %v1585_v47  ;;  %1492 = vst [vmem:[%s1914_s27 + $0x18] sm:$0xff] %v1453_v63   ;;  %v1095_v12 = vadd.f32 %v1901_v29, %v1066_v44  ;;  %v1047_v52 = vmax.f32 %v1882_v16, %v1629_v51  ;;  %v1064_v21 = vmax.f32 %v1020_v50, %v1042_v11 }
 0x11a   : > { %v802_v0 = vpop.f32.mrf.mxu0  ;;  %v978_v53 = vpop.f32.mrf.mxu1  ;;  %v1114_v46 = vmax.f32 %v1092_v1, 0.0 }
 0x11b   : > { %v1023_v55 = vmax.f32 %v1860_v5, %v802_v0  ;;  %v1117_v56 = vmax.f32 %v1095_v12, 0.0  ;;  %v1069_v23 = vmax.f32 %v1025_v48, %v1047_v52  ;;  %v1045_v2 = vmax.f32 %v1862_v6, %v978_v53 }
 0x11c   : > { %v1586_v15 = vpop.f32.mrf.mxu0  ;;  %v1093_v54 = vadd.f32 %v1901_v29, %v1064_v21  ;;  %v1630_v24 = vpop.f32.mrf.mxu1 }
 0x11d   : > { %v1026_v45 = vmax.f32 %v1888_v19, %v1586_v15  ;;  %v1468_v16 = vpack.c.bf16 %v1117_v56, %v1116_v22  ;;  %v1067_v3 = vmax.f32 %v1023_v55, %v1045_v2  ;;  %v1048_v27 = vmax.f32 %v1892_v20, %v1630_v24 }
 0x11e   : > { %v805_v28 = vpop.f32.mrf.mxu0  ;;  %v1115_v5 = vmax.f32 %v1093_v54, 0.0  ;;  %v981_v4 = vpop.f32.mrf.mxu1  ;;  %v1098_v6 = vadd.f32 %v1901_v29, %v1069_v23 }
 0x11f   : > { %v1024_v30 = vmax.f32 %v1868_v9, %v805_v28  ;;  %1495 = vst [vmem:[%s1914_s27 + $0x30] sm:$0xff] %v1468_v16   ;;  %v1070_v31 = vmax.f32 %v1026_v45, %v1048_v27  ;;  %v1046_v57 = vmax.f32 %v1870_v10, %v981_v4  ;;  %v1096_v20 = vadd.f32 %v1901_v29, %v1067_v3 }
 0x120   : > { %v1589_v32 = vpop.f32.mrf.mxu0  ;;  %v1463_v19 = vpack.c.bf16 %v1115_v5, %v1114_v46  ;;  %v1633_v58 = vpop.f32.mrf.mxu1  ;;  %v1120_v60 = vmax.f32 %v1098_v6, 0.0 }
 0x121   : > { %v1029_v35 = vmax.f32 %v1894_v25, %v1589_v32  ;;  %v1099_v36 = vadd.f32 %v1901_v29, %v1070_v31  ;;  %v1068_v59 = vmax.f32 %v1024_v30, %v1046_v57  ;;  %v1051_v37 = vmax.f32 %v1896_v26, %v1633_v58 }
 0x122   : > { %v818_v9 = vpop.f32.mrf.mxu0  ;;  %1494 = vst [vmem:[%s1914_s27 + $0x28] sm:$0xff] %v1463_v19   ;;  %v994_v38 = vpop.f32.mrf.mxu1  ;;  %v1118_v61 = vmax.f32 %v1096_v20, 0.0 }
 0x123   : > { %v1027_v7 = vmax.f32 %v1876_v13, %v818_v9  ;;  %v1121_v10 = vmax.f32 %v1099_v36, 0.0  ;;  %v1097_v39 = vadd.f32 %v1901_v29, %v1068_v59  ;;  %v1049_v25 = vmax.f32 %v1878_v14, %v994_v38 }
 0x124   : > { %v1590_v49 = vpop.f32.mrf.mxu0  ;;  %v1073_v8 = vmax.f32 %v1029_v35, %v1051_v37  ;;  %v1634_v41 = vpop.f32.mrf.mxu1 }
 0x125   : > { %v1030_v40 = vmax.f32 %v1903_v33, %v1590_v49  ;;  %v1478_v26 = vpack.c.bf16 %v1121_v10, %v1120_v60  ;;  %v1119_v42 = vmax.f32 %v1097_v39, 0.0  ;;  %v1071_v50 = vmax.f32 %v1027_v7, %v1049_v25 }
 0x126   : > { %v821_v43 = vpop.f32.mrf.mxu0  ;;  %v1052_v13 = vmax.f32 %v1905_v34, %v1634_v41  ;;  %v997_v62 = vpop.f32.mrf.mxu1  ;;  %v1102_v47 = vadd.f32 %v1901_v29, %v1073_v8 }
 0x127   : > { %v1028_v63 = vmax.f32 %v1884_v17, %v821_v43  ;;  %1497 = vst [vmem:[%s1914_s27 + $0x40] sm:$0xff] %v1478_v26   ;;  %v1473_v44 = vpack.c.bf16 %v1119_v42, %v1118_v61  ;;  %v1050_v14 = vmax.f32 %v1886_v18, %v997_v62  ;;  %v1100_v11 = vadd.f32 %v1901_v29, %v1071_v50 }
 0x128   : > { %v1074_v33 = vmax.f32 %v1030_v40, %v1052_v13  ;;  %v1124_v12 = vmax.f32 %v1102_v47, 0.0 }
 0x129   : > { %1496 = vst [vmem:[%s1914_s27 + $0x38] sm:$0xff] %v1473_v44   ;;  %v1072_v48 = vmax.f32 %v1028_v63, %v1050_v14  ;;  %v1122_v52 = vmax.f32 %v1100_v11, 0.0 }
 0x12a   : > { %v1103_v51 = vadd.f32 %v1901_v29, %v1074_v33 }
 0x12b   : > { %v1101_v34 = vadd.f32 %v1901_v29, %v1072_v48 }
 0x12c   : > { %v1125_v17 = vmax.f32 %v1103_v51, 0.0 }
 0x12d   : > { %v1123_v0 = vmax.f32 %v1101_v34, 0.0 }
 0x12e   : > { %v1488_v1 = vpack.c.bf16 %v1125_v17, %v1124_v12 }
 0x12f   : > { %v1483_v21 = vpack.c.bf16 %v1123_v0, %v1122_v52 }
 0x130   : > { %1499 = vst [vmem:[%s1914_s27 + $0x50] sm:$0xff] %v1488_v1  }
 0x131   : > { %1498 = vst [vmem:[%s1914_s27 + $0x48] sm:$0xff] %v1483_v21  }
 0x132 PF: > { %s13_s12 = sadd.s32 1, %s1696_s12  }
 0x133   : > { %p10_p5 = scmp.ge.s32.totalorder %s13_s12, 4  }
 0x135   :  { %12 = sbr.rel (!%p10_p5) target bundleno = 1 (0x1), region = 62 }

// kernel: alexnet_forward.4
= control target key start
LH: loop header
LB: loop body
LE: loop exit
PB: predicated region body
PF: predicated region fallthrough
CT: control target
= control target key end

     0   :  { %s823_s12 = smov 0   ;;  %s913_s0 = inlined_call_operand.vmem [shape: bf16[256,256], index: 0, kind: input, shape index: {}]   ;;  %s914_s1 = inlined_call_operand.vmem [shape: bf16[256,128], index: 1, kind: input, shape index: {}]   ;;  %s915_s2 = inlined_call_operand.vmem [shape: f32[1,128], index: 2, kind: input, shape index: {}]   ;;  %s916_s3 = inlined_call_operand.vmem [shape: bf16[64,128], index: 3, kind: output, shape index: {}]  }
   0x1 LB: > { %s602_s13 = sadd.s32 4294967295, %s801_s12   ;;  %p606_p0 = scmp.ge.s32.totalorder %s801_s12, 1  ;;  %s801_s12 = sphi %s823_s12, %s13_s12  }
   0x2   : > { %p139_p1 = scmp.lt.s32.totalorder %s801_s12, 3 }
   0x4   : > { %p140_p2 = pnand %p606_p0, %p139_p1 }
   0x5   : > { %s607_s16 = sshll.u32 (!%p140_p2), %s602_s13, 4  ;;  %s610_s26 = sshll.u32 (!%p140_p2), %s602_s13, 2 }
   0x6   : > { %143 = sbr.rel (%p140_p2) target bundleno = 280 (0x118), region = 32  ;;  %p165_p3 = scmp.lt.s32.totalorder (!%p140_p2), %s607_s16, 31 }
   0x7   : > { %p172_p4 = scmp.lt.s32.totalorder (!%p140_p2), %s610_s26, 7 }
   0xb   : > { %v755_v0 = vld [vmem:[%s914_s1 + $0x78] sm:$0xff]   ;;  %v757_v2 = vld [vmem:[%s914_s1 + $0x70] sm:$0xff]   ;;  %v759_v4 = vld [vmem:[%s914_s1 + $0x68] sm:$0xff]   ;;  %s918_s16 = smov (!%p165_p3, %s607_s16), 31  ;;  %s920_s26 = smov (!%p172_p4, %s610_s26), 7 }
   0xc   : > { %v756_v1 = vld [vmem:[%s914_s1 + $0x38] sm:$0xff]   ;;  %667 = vmatprep.subr.bf16.mxu0 %v755_v0  ;;  %731 = vmatprep.subr.bf16.mxu1 %v755_v0  ;;  %v758_v3 = vld [vmem:[%s914_s1 + $0x30] sm:$0xff]   ;;  %v760_v5 = vld [vmem:[%s914_s1 + $0x28] sm:$0xff]   ;;  %s651_s4 = sshll.u32 %s918_s16, 3  ;;  %s611_s13 = sshll.u32 %s920_s26, 2 }
   0xd   : > { %668 = vmatpush3.bf16.msra.mxu0 %v756_v1  ;;  %739 = vmatpush3.bf16.msra.mxu1 %v756_v1  ;;  %v761_v6 = vld [vmem:[%s914_s1 + $0x60] sm:$0xff]   ;;  %v763_v8 = vld [vmem:[%s914_s1 + $0x58] sm:$0xff]   ;;  %s863_s9 = scalar_lea.vmem %s913_s0, %s651_s4  ;;  %v765_v10 = vld [vmem:[%s914_s1 + $0x50] sm:$0xff]   ;;  %s175_s4 = scalar_lea.vmem %s916_s3, %s611_s13 }
   0xe   : > { %669 = vmatprep.subr.bf16.mxu0 %v757_v2  ;;  %732 = vmatprep.subr.bf16.mxu1 %v757_v2  ;;  %v762_v7 = vld [vmem:[%s914_s1 + $0x20] sm:$0xff]   ;;  %v764_v9 = vld [vmem:[%s914_s1 + $0x18] sm:$0xff]   ;;  %v766_v13 = vld [vmem:[%s914_s1 + $0x10] sm:$0xff]  }
   0xf   : > { %v773_v11 = vld [vmem:[%s863_s9 + $0x4] ss:$8 sps:$4 sm:$0xff]   ;;  %v771_v18 = vld [vmem:[%s863_s9] ss:$8 sps:$4 sm:$0xff]   ;;  %v777_v20 = vld [vmem:[%s863_s9 + $0x14] ss:$8 sps:$4 sm:$0xff]  }
  0x10   : > { %v776_v12 = vld [vmem:[%s863_s9 + $0x44] ss:$8 sps:$4 sm:$0xff]   ;;  %434 = vmatprep.mubr.bf16.mxu0 %v773_v11  ;;  %v774_v19 = vld [vmem:[%s863_s9 + $0x40] ss:$8 sps:$4 sm:$0xff]   ;;  %v779_v21 = vld [vmem:[%s863_s9 + $0x54] ss:$8 sps:$4 sm:$0xff]  }
  0x11   : > { %670 = vmatpush3.bf16.msra.mxu0 %v758_v3  ;;  %740 = vmatpush3.bf16.msra.mxu1 %v758_v3  ;;  %v767_v14 = vld [vmem:[%s914_s1 + $0x48] sm:$0xff]   ;;  %v769_v16 = vld [vmem:[%s914_s1 + $0x40] sm:$0xff]   ;;  %v781_v22 = vld [vmem:[%s863_s9 + $0x10] ss:$8 sps:$4 sm:$0xff]  }
  0x12   : > { %671 = vmatprep.subr.bf16.mxu0 %v759_v4  ;;  %733 = vmatprep.subr.bf16.mxu1 %v759_v4  ;;  %v768_v15 = vld [vmem:[%s914_s1 + $0x8] sm:$0xff]   ;;  %v770_v17 = vld [vmem:[%s914_s1] sm:$0xff]   ;;  %v782_v23 = vld [vmem:[%s863_s9 + $0x50] ss:$8 sps:$4 sm:$0xff]  }
  0x13   : > { %466 = vmatprep.mubr.bf16.mxu1 %v776_v12  ;;  %v783_v24 = vld [vmem:[%s863_s9 + $0x24] ss:$8 sps:$4 sm:$0xff]   ;;  %v787_v26 = vld [vmem:[%s863_s9 + $0x20] ss:$8 sps:$4 sm:$0xff]   ;;  %v789_v28 = vld [vmem:[%s863_s9 + $0x34] ss:$8 sps:$4 sm:$0xff]  }
  0x14   : > { %v785_v25 = vld [vmem:[%s863_s9 + $0x64] ss:$8 sps:$4 sm:$0xff]   ;;  %v788_v27 = vld [vmem:[%s863_s9 + $0x60] ss:$8 sps:$4 sm:$0xff]   ;;  %v791_v29 = vld [vmem:[%s863_s9 + $0x74] ss:$8 sps:$4 sm:$0xff]  }
  0x15   : > { %672 = vmatpush3.bf16.msra.mxu0 %v760_v5  ;;  %741 = vmatpush3.bf16.msra.mxu1 %v760_v5  ;;  %v793_v30 = vld [vmem:[%s863_s9 + $0x30] ss:$8 sps:$4 sm:$0xff]   ;;  %v644_v1 = vld [vmem:[%s915_s2] ss:$0 sm:$0xff] }
  0x16   : > { %673 = vmatprep.subr.bf16.mxu0 %v761_v6  ;;  %734 = vmatprep.subr.bf16.mxu1 %v761_v6  ;;  %v794_v31 = vld [vmem:[%s863_s9 + $0x70] ss:$8 sps:$4 sm:$0xff]  }
  0x19   : > { %674 = vmatpush3.bf16.msra.mxu0 %v762_v7  ;;  %742 = vmatpush3.bf16.msra.mxu1 %v762_v7 }
  0x1a   : > { %675 = vmatprep.subr.bf16.mxu0 %v763_v8  ;;  %735 = vmatprep.subr.bf16.mxu1 %v763_v8 }
  0x1d   : > { %676 = vmatpush3.bf16.msra.mxu0 %v764_v9  ;;  %743 = vmatpush3.bf16.msra.mxu1 %v764_v9 }
  0x1e   : > { %677 = vmatprep.subr.bf16.mxu0 %v765_v10  ;;  %736 = vmatprep.subr.bf16.mxu1 %v765_v10 }
  0x21   : > { %678 = vmatpush3.bf16.msra.mxu0 %v766_v13  ;;  %744 = vmatpush3.bf16.msra.mxu1 %v766_v13 }
  0x22   : > { %679 = vmatprep.subr.bf16.mxu0 %v767_v14  ;;  %737 = vmatprep.subr.bf16.mxu1 %v767_v14 }
  0x25   : > { %680 = vmatpush3.bf16.msra.mxu0 %v768_v15  ;;  %745 = vmatpush3.bf16.msra.mxu1 %v768_v15 }
  0x26   : > { %681 = vmatprep.subr.bf16.mxu0 %v769_v16  ;;  %738 = vmatprep.subr.bf16.mxu1 %v769_v16 }
  0x29   : > { %682 = vmatpush3.bf16.msra.mxu0 %v770_v17  ;;  %746 = vmatpush3.bf16.msra.mxu1 %v770_v17 }
  0x2c   : > { %435 = vmatmul.mubr.bf16.vlgmr.msra.gmra.mxu0 %v771_v18  ;;  %467 = vmatmul.mubr.bf16.vlgmr.msra.gmra.mxu1 %v774_v19 }
  0x2d   : > { %442 = vmatprep.mubr.bf16.mxu0 %v777_v20  ;;  %474 = vmatprep.mubr.bf16.mxu1 %v779_v21 }
  0x34   : > { %443 = vmatmul.mubr.bf16.gmra.mxu0 %v781_v22  ;;  %475 = vmatmul.mubr.bf16.gmra.mxu1 %v782_v23 }
  0x35   : > { %450 = vmatprep.mubr.bf16.mxu0 %v783_v24  ;;  %482 = vmatprep.mubr.bf16.mxu1 %v785_v25 }
  0x3c   : > { %451 = vmatmul.mubr.bf16.gmra.mxu0 %v787_v26  ;;  %483 = vmatmul.mubr.bf16.gmra.mxu1 %v788_v27 }
  0x3d   : > { %458 = vmatprep.mubr.bf16.mxu0 %v789_v28  ;;  %490 = vmatprep.mubr.bf16.mxu1 %v791_v29 }
  0x44   : > { %459 = vmatmul.mubr.bf16.gmra.mxu0 %v793_v30  ;;  %491 = vmatmul.mubr.bf16.gmra.mxu1 %v794_v31 }
  0xec   : > { %v683_v32 = vpop.f32.mrf.mxu0  ;;  %v707_v33 = vpop.f32.mrf.mxu1 }
  0xee   : > { %v684_v34 = vpop.f32.mrf.mxu0  ;;  %v708_v35 = vpop.f32.mrf.mxu1 }
  0xef   : > { %v685_v52 = vadd.f32 %v684_v34, %v683_v32  ;;  %v709_v53 = vadd.f32 %v708_v35, %v707_v33 }
  0xf0   : > { %v686_v36 = vpop.f32.mrf.mxu0  ;;  %v710_v37 = vpop.f32.mrf.mxu1 }
  0xf2   : > { %v687_v38 = vpop.f32.mrf.mxu0  ;;  %v711_v39 = vpop.f32.mrf.mxu1 }
  0xf3   : > { %v688_v60 = vadd.f32 %v687_v38, %v686_v36  ;;  %v712_v63 = vadd.f32 %v711_v39, %v710_v37 }
  0xf4   : > { %v689_v40 = vpop.f32.mrf.mxu0  ;;  %v713_v41 = vpop.f32.mrf.mxu1 }
  0xf6   : > { %v690_v42 = vpop.f32.mrf.mxu0  ;;  %v714_v43 = vpop.f32.mrf.mxu1 }
  0xf7   : > { %v691_v8 = vadd.f32 %v690_v42, %v689_v40  ;;  %v715_v12 = vadd.f32 %v714_v43, %v713_v41 }
  0xf8   : > { %v692_v44 = vpop.f32.mrf.mxu0  ;;  %v716_v45 = vpop.f32.mrf.mxu1 }
  0xfa   : > { %v693_v46 = vpop.f32.mrf.mxu0  ;;  %v717_v47 = vpop.f32.mrf.mxu1 }
  0xfb   : > { %v694_v21 = vadd.f32 %v693_v46, %v692_v44  ;;  %v718_v22 = vadd.f32 %v717_v47, %v716_v45 }
  0xfc   : > { %v695_v48 = vpop.f32.mrf.mxu0  ;;  %v719_v49 = vpop.f32.mrf.mxu1 }
  0xfe   : > { %v696_v50 = vpop.f32.mrf.mxu0  ;;  %v720_v51 = vpop.f32.mrf.mxu1 }
  0xff   : > { %v697_v54 = vadd.f32 %v696_v50, %v695_v48  ;;  %v721_v55 = vadd.f32 %v720_v51, %v719_v49 }
 0x100   : > { %v698_v56 = vpop.f32.mrf.mxu0  ;;  %v722_v57 = vpop.f32.mrf.mxu1 }
 0x101   : > { %v499_v58 = vmax.f32 %v685_v52, %v697_v54  ;;  %v503_v59 = vmax.f32 %v709_v53, %v721_v55 }
 0x102   : > { %v699_v61 = vpop.f32.mrf.mxu0  ;;  %v723_v62 = vpop.f32.mrf.mxu1 }
 0x103   : > { %v507_v0 = vmax.f32 %v499_v58, %v503_v59  ;;  %v700_v2 = vadd.f32 %v699_v61, %v698_v56  ;;  %v724_v3 = vadd.f32 %v723_v62, %v722_v57 }
 0x104   : > { %v701_v4 = vpop.f32.mrf.mxu0  ;;  %v725_v5 = vpop.f32.mrf.mxu1 }
 0x105   : > { %v500_v6 = vmax.f32 %v688_v60, %v700_v2  ;;  %v504_v7 = vmax.f32 %v712_v63, %v724_v3  ;;  %v518_v9 = vadd.f32 %v644_v1, %v507_v0 }
 0x106   : > { %v702_v10 = vpop.f32.mrf.mxu0  ;;  %v726_v11 = vpop.f32.mrf.mxu1 }
 0x107   : > { %v508_v13 = vmax.f32 %v500_v6, %v504_v7  ;;  %v703_v14 = vadd.f32 %v702_v10, %v701_v4  ;;  %v727_v15 = vadd.f32 %v726_v11, %v725_v5  ;;  %v522_v23 = vmax.f32 %v518_v9, 0.0 }
 0x108   : > { %v704_v16 = vpop.f32.mrf.mxu0  ;;  %v728_v17 = vpop.f32.mrf.mxu1 }
 0x109   : > { %v519_v18 = vadd.f32 %v644_v1, %v508_v13  ;;  %v501_v19 = vmax.f32 %v691_v8, %v703_v14  ;;  %v505_v20 = vmax.f32 %v715_v12, %v727_v15 }
 0x10a   : > { %v705_v24 = vpop.f32.mrf.mxu0  ;;  %v729_v25 = vpop.f32.mrf.mxu1 }
 0x10b   : > { %v523_v26 = vmax.f32 %v519_v18, 0.0  ;;  %v509_v27 = vmax.f32 %v501_v19, %v505_v20  ;;  %v706_v28 = vadd.f32 %v705_v24, %v704_v16  ;;  %v730_v29 = vadd.f32 %v729_v25, %v728_v17 }
 0x10d   : > { %v659_v30 = vpack.c.bf16 %v523_v26, %v522_v23  ;;  %v502_v31 = vmax.f32 %v694_v21, %v706_v28  ;;  %v506_v32 = vmax.f32 %v718_v22, %v730_v29  ;;  %v520_v33 = vadd.f32 %v644_v1, %v509_v27 }
 0x10f   : > { %660 = vst [vmem:[%s175_s4] sm:$0xff] %v659_v30   ;;  %v510_v34 = vmax.f32 %v502_v31, %v506_v32  ;;  %v524_v36 = vmax.f32 %v520_v33, 0.0 }
 0x111   : > { %v521_v35 = vadd.f32 %v644_v1, %v510_v34 }
 0x113   : > { %v525_v37 = vmax.f32 %v521_v35, 0.0 }
 0x115   : > { %v664_v38 = vpack.c.bf16 %v525_v37, %v524_v36 }
 0x117   : > { %666 = vst [vmem:[%s175_s4 + $0x8] sm:$0xff] %v664_v38  }
 0x118 PF: > { %s13_s12 = sadd.s32 1, %s801_s12  }
 0x119   : > { %p10_p5 = scmp.ge.s32.totalorder %s13_s12, 4  }
 0x11b   :  { %12 = sbr.rel (!%p10_p5) target bundleno = 1 (0x1), region = 62 }

// kernel: alexnet_forward.5
= control target key start
LH: loop header
LB: loop body
LE: loop exit
PB: predicated region body
PF: predicated region fallthrough
CT: control target
= control target key end

     0   :  { %vm3049_vm0 = vmmov 0   ;;  %s4481_s1 = inlined_call_operand.vmem [shape: s8[1280,1024], index: 1, kind: input, shape index: {}]   ;;  %s4482_s0 = inlined_call_operand.vmem [shape: bf16[8,1280], index: 0, kind: input, shape index: {}]   ;;  %s4483_s4 = inlined_call_operand.vmem [shape: bf16[1024,128], index: 4, kind: input, shape index: {}]   ;;  %s4484_s2 = inlined_call_operand.vmem [shape: f32[1,1024], index: 2, kind: input, shape index: {}]   ;;  %s4485_s3 = inlined_call_operand.vmem [shape: f32[1,1024], index: 3, kind: input, shape index: {}]   ;;  %s4486_s6 = inlined_call_operand.vmem [shape: bf16[128,128], index: 6, kind: input, shape index: {}]   ;;  %s4487_s5 = inlined_call_operand.vmem [shape: f32[1,128], index: 5, kind: input, shape index: {}]   ;;  %s4488_s7 = inlined_call_operand.vmem [shape: f32[1,128], index: 7, kind: input, shape index: {}]   ;;  %s4489_s8 = inlined_call_operand.vmem [shape: f32[8,128], index: 8, kind: output, shape index: {}]  }
   0x1   :  { %v55_v0 = vld [vmem:[%s4481_s1 + $0xc8] sm:$0xff]  ;;  %v54_v2 = vld [vmem:[%s4481_s1 + $0xc0] sm:$0xff] }
   0x2   :  { %v119_v1 = vld [vmem:[%s4481_s1 + $0x2c8] sm:$0xff]  ;;  %v399_v3 = vunpack.c.l.s8.bf16 %v55_v0  ;;  %v407_v4 = vunpack.c.h.s8.bf16 %v55_v0  ;;  %v118_v7 = vld [vmem:[%s4481_s1 + $0x2c0] sm:$0xff]  ;;  %v406_v8 = vunpack.c.h.s8.bf16 %v54_v2  ;;  %v398_v12 = vunpack.c.l.s8.bf16 %v54_v2 }
   0x3   :  { %v527_v5 = vunpack.c.l.s8.bf16 %v119_v1  ;;  %v535_v6 = vunpack.c.h.s8.bf16 %v119_v1  ;;  %v534_v9 = vunpack.c.h.s8.bf16 %v118_v7  ;;  %v47_v10 = vld [vmem:[%s4481_s1 + $0x88] sm:$0xff]  ;;  %v526_v13 = vunpack.c.l.s8.bf16 %v118_v7  ;;  %v46_v16 = vld [vmem:[%s4481_s1 + $0x80] sm:$0xff] }
   0x4   :  { %v111_v11 = vld [vmem:[%s4481_s1 + $0x288] sm:$0xff]  ;;  %1030 = vmatprep.subr.bf16.mxu0 %v407_v4  ;;  %v391_v14 = vunpack.c.h.s8.bf16 %v47_v10  ;;  %v110_v17 = vld [vmem:[%s4481_s1 + $0x280] sm:$0xff]  ;;  %v390_v18 = vunpack.c.h.s8.bf16 %v46_v16  ;;  %v383_v20 = vunpack.c.l.s8.bf16 %v47_v10  ;;  %v382_v24 = vunpack.c.l.s8.bf16 %v46_v16 }
   0x5   :  { %1071 = vmatprep.subr.bf16.mxu1 %v535_v6  ;;  %1031 = vmatpush1.bf16.msra.mxu0 %v406_v8  ;;  %v519_v15 = vunpack.c.h.s8.bf16 %v111_v11  ;;  %v518_v19 = vunpack.c.h.s8.bf16 %v110_v17  ;;  %v511_v21 = vunpack.c.l.s8.bf16 %v111_v11  ;;  %v39_v22 = vld [vmem:[%s4481_s1 + $0x48] sm:$0xff]  ;;  %v510_v25 = vunpack.c.l.s8.bf16 %v110_v17  ;;  %v38_v28 = vld [vmem:[%s4481_s1 + $0x40] sm:$0xff] }
   0x6   :  { %1072 = vmatpush1.bf16.msra.mxu1 %v534_v9  ;;  %1032 = vmatprep.subr.bf16.mxu0 %v399_v3  ;;  %v103_v23 = vld [vmem:[%s4481_s1 + $0x248] sm:$0xff]  ;;  %v375_v26 = vunpack.c.h.s8.bf16 %v39_v22  ;;  %v102_v29 = vld [vmem:[%s4481_s1 + $0x240] sm:$0xff]  ;;  %v374_v32 = vunpack.c.h.s8.bf16 %v38_v28  ;;  %v367_v34 = vunpack.c.l.s8.bf16 %v39_v22  ;;  %v366_v40 = vunpack.c.l.s8.bf16 %v38_v28 }
   0x7   :  { %1073 = vmatprep.subr.bf16.mxu1 %v527_v5  ;;  %v503_v27 = vunpack.c.h.s8.bf16 %v103_v23  ;;  %v3134_v30 = vld [vmem:[%s4482_s0] sm:$0xff]  ;;  %v3139_v31 = vld [vmem:[%s4482_s0 + $0x8] sm:$0xff]  ;;  %v502_v33 = vunpack.c.h.s8.bf16 %v102_v29  ;;  %v495_v35 = vunpack.c.l.s8.bf16 %v103_v23  ;;  %v494_v41 = vunpack.c.l.s8.bf16 %v102_v29 }
   0x8   :  { %v3143_v36 = vcombine.high %v3134_v30, %v3134_v30  ;;  %v3147_v37 = vcombine.high %v3139_v31, %v3139_v31  ;;  %v31_v38 = vld [vmem:[%s4481_s1 + $0x8] sm:$0xff]  ;;  %v30_v44 = vld [vmem:[%s4481_s1] sm:$0xff] }
   0x9   :  { %1033 = vmatpush1.bf16.msra.mxu0 %v398_v12  ;;  %v95_v39 = vld [vmem:[%s4481_s1 + $0x208] sm:$0xff]  ;;  %v359_v42 = vunpack.c.h.s8.bf16 %v31_v38  ;;  %v94_v45 = vld [vmem:[%s4481_s1 + $0x200] sm:$0xff]  ;;  %v358_v46 = vunpack.c.h.s8.bf16 %v30_v44  ;;  %v351_v48 = vunpack.c.l.s8.bf16 %v31_v38  ;;  %v350_v52 = vunpack.c.l.s8.bf16 %v30_v44 }
   0xa   :  { %1074 = vmatpush1.bf16.msra.mxu1 %v526_v13  ;;  %1034 = vmatprep.subr.bf16.mxu0 %v391_v14  ;;  %v487_v43 = vunpack.c.h.s8.bf16 %v95_v39  ;;  %v486_v47 = vunpack.c.h.s8.bf16 %v94_v45  ;;  %v479_v49 = vunpack.c.l.s8.bf16 %v95_v39  ;;  %v87_v50 = vld [vmem:[%s4481_s1 + $0x1c8] sm:$0xff]  ;;  %v478_v53 = vunpack.c.l.s8.bf16 %v94_v45  ;;  %v86_v56 = vld [vmem:[%s4481_s1 + $0x1c0] sm:$0xff] }
   0xb   :  { %1075 = vmatprep.subr.bf16.mxu1 %v519_v15  ;;  %1062 = vmatprep.mubr.bf16.mxu0 %v3143_v36  ;;  %v151_v51 = vld [vmem:[%s4481_s1 + $0x3c8] sm:$0xff]  ;;  %v471_v54 = vunpack.c.h.s8.bf16 %v87_v50  ;;  %v150_v57 = vld [vmem:[%s4481_s1 + $0x3c0] sm:$0xff]  ;;  %v470_v58 = vunpack.c.h.s8.bf16 %v86_v56  ;;  %v463_v60 = vunpack.c.l.s8.bf16 %v87_v50  ;;  %v462_v0 = vunpack.c.l.s8.bf16 %v86_v56 }
   0xc   :  { %1103 = vmatprep.mubr.bf16.mxu1 %v3147_v37  ;;  %v599_v55 = vunpack.c.h.s8.bf16 %v151_v51  ;;  %v598_v59 = vunpack.c.h.s8.bf16 %v150_v57  ;;  %v591_v61 = vunpack.c.l.s8.bf16 %v151_v51  ;;  %v79_v62 = vld [vmem:[%s4481_s1 + $0x188] sm:$0xff]  ;;  %v590_v1 = vunpack.c.l.s8.bf16 %v150_v57  ;;  %v78_v4 = vld [vmem:[%s4481_s1 + $0x180] sm:$0xff] }
   0xd   :  { %1035 = vmatpush1.bf16.msra.mxu0 %v390_v18  ;;  %v143_v63 = vld [vmem:[%s4481_s1 + $0x388] sm:$0xff]  ;;  %v455_v2 = vunpack.c.h.s8.bf16 %v79_v62  ;;  %v142_v5 = vld [vmem:[%s4481_s1 + $0x380] sm:$0xff]  ;;  %v454_v6 = vunpack.c.h.s8.bf16 %v78_v4  ;;  %v447_v8 = vunpack.c.l.s8.bf16 %v79_v62  ;;  %v446_v12 = vunpack.c.l.s8.bf16 %v78_v4 }
   0xe   :  { %1076 = vmatpush1.bf16.msra.mxu1 %v518_v19  ;;  %1036 = vmatprep.subr.bf16.mxu0 %v383_v20  ;;  %v583_v3 = vunpack.c.h.s8.bf16 %v143_v63  ;;  %v582_v7 = vunpack.c.h.s8.bf16 %v142_v5  ;;  %v575_v9 = vunpack.c.l.s8.bf16 %v143_v63  ;;  %v71_v10 = vld [vmem:[%s4481_s1 + $0x148] sm:$0xff]  ;;  %v574_v13 = vunpack.c.l.s8.bf16 %v142_v5  ;;  %v70_v16 = vld [vmem:[%s4481_s1 + $0x140] sm:$0xff] }
   0xf   :  { %1077 = vmatprep.subr.bf16.mxu1 %v511_v21  ;;  %v135_v11 = vld [vmem:[%s4481_s1 + $0x348] sm:$0xff]  ;;  %v439_v14 = vunpack.c.h.s8.bf16 %v71_v10  ;;  %v134_v17 = vld [vmem:[%s4481_s1 + $0x340] sm:$0xff]  ;;  %v438_v18 = vunpack.c.h.s8.bf16 %v70_v16  ;;  %v431_v20 = vunpack.c.l.s8.bf16 %v71_v10 }
  0x10   :  { %v567_v15 = vunpack.c.h.s8.bf16 %v135_v11  ;;  %v566_v19 = vunpack.c.h.s8.bf16 %v134_v17  ;;  %v559_v21 = vunpack.c.l.s8.bf16 %v135_v11  ;;  %v63_v22 = vld [vmem:[%s4481_s1 + $0x108] sm:$0xff]  ;;  %v62_v28 = vld [vmem:[%s4481_s1 + $0x100] sm:$0xff] }
  0x11   :  { %1037 = vmatpush1.bf16.msra.mxu0 %v382_v24  ;;  %v127_v23 = vld [vmem:[%s4481_s1 + $0x308] sm:$0xff]  ;;  %v430_v24 = vunpack.c.l.s8.bf16 %v70_v16  ;;  %v126_v29 = vld [vmem:[%s4481_s1 + $0x300] sm:$0xff] }
  0x12   :  { %1078 = vmatpush1.bf16.msra.mxu1 %v510_v25  ;;  %1038 = vmatprep.subr.bf16.mxu0 %v375_v26  ;;  %v558_v25 = vunpack.c.l.s8.bf16 %v134_v17  ;;  %v423_v26 = vunpack.c.h.s8.bf16 %v63_v22  ;;  %v183_v38 = vld [vmem:[%s4481_s1 + $0x4c8] sm:$0xff]  ;;  %v182_v44 = vld [vmem:[%s4481_s1 + $0x4c0] sm:$0xff] }
  0x13   :  { %1079 = vmatprep.subr.bf16.mxu1 %v503_v27  ;;  %v551_v27 = vunpack.c.h.s8.bf16 %v127_v23  ;;  %v247_v39 = vld [vmem:[%s4481_s1 + $0x6c8] sm:$0xff]  ;;  %v246_v45 = vld [vmem:[%s4481_s1 + $0x6c0] sm:$0xff]  ;;  %v662_v50 = vunpack.c.h.s8.bf16 %v182_v44  ;;  %v654_v56 = vunpack.c.l.s8.bf16 %v182_v44 }
  0x14   :  { %v790_v51 = vunpack.c.h.s8.bf16 %v246_v45  ;;  %v782_v57 = vunpack.c.l.s8.bf16 %v246_v45 }
  0x15   :  { %1039 = vmatpush1.bf16.msra.mxu0 %v374_v32  ;;  %v422_v32 = vunpack.c.h.s8.bf16 %v62_v28 }
  0x16   :  { %1080 = vmatpush1.bf16.msra.mxu1 %v502_v33  ;;  %1040 = vmatprep.subr.bf16.mxu0 %v367_v34  ;;  %v550_v33 = vunpack.c.h.s8.bf16 %v126_v29  ;;  %v415_v34 = vunpack.c.l.s8.bf16 %v63_v22 }
  0x17   :  { %1081 = vmatprep.subr.bf16.mxu1 %v495_v35  ;;  %v543_v35 = vunpack.c.l.s8.bf16 %v127_v23 }
  0x19   :  { %1041 = vmatpush1.bf16.msra.mxu0 %v366_v40  ;;  %v414_v40 = vunpack.c.l.s8.bf16 %v62_v28 }
  0x1a   :  { %1082 = vmatpush1.bf16.msra.mxu1 %v494_v41  ;;  %1042 = vmatprep.subr.bf16.mxu0 %v359_v42  ;;  %v542_v41 = vunpack.c.l.s8.bf16 %v126_v29  ;;  %v663_v42 = vunpack.c.h.s8.bf16 %v183_v38 }
  0x1b   :  { %1083 = vmatprep.subr.bf16.mxu1 %v487_v43  ;;  %v791_v43 = vunpack.c.h.s8.bf16 %v247_v39 }
  0x1d   :  { %1043 = vmatpush1.bf16.msra.mxu0 %v358_v46  ;;  %v3225_v46 = vcombine.low %v3134_v30, %v3134_v30  ;;  %v655_v30 = vunpack.c.l.s8.bf16 %v183_v38 }
  0x1e   :  { %1084 = vmatpush1.bf16.msra.mxu1 %v486_v47  ;;  %1044 = vmatprep.subr.bf16.mxu0 %v351_v48  ;;  %v3229_v47 = vcombine.low %v3139_v31, %v3139_v31  ;;  %v3234_v48 = vld [vmem:[%s4482_s0 + $0x10] sm:$0xff]  ;;  %v175_v31 = vld [vmem:[%s4481_s1 + $0x488] sm:$0xff] }
  0x1f   :  { %1085 = vmatprep.subr.bf16.mxu1 %v479_v49  ;;  %v3239_v49 = vld [vmem:[%s4482_s0 + $0x18] sm:$0xff] }
  0x21   :  { %1045 = vmatpush1.bf16.msra.mxu0 %v350_v52  ;;  %v783_v52 = vunpack.c.l.s8.bf16 %v247_v39 }
  0x22   :  { %1086 = vmatpush1.bf16.msra.mxu1 %v478_v53  ;;  %1046 = vmatprep.subr.bf16.mxu0 %v471_v54  ;;  %v239_v53 = vld [vmem:[%s4481_s1 + $0x688] sm:$0xff]  ;;  %v3249_v54 = vcombine.high %v3234_v48, %v3234_v48 }
  0x23   :  { %1087 = vmatprep.subr.bf16.mxu1 %v599_v55  ;;  %v3253_v55 = vcombine.high %v3239_v49, %v3239_v49 }
  0x25   :  { %1047 = vmatpush2.bf16.msra.mxu0 %v470_v58  ;;  %v647_v58 = vunpack.c.h.s8.bf16 %v175_v31 }
  0x26   :  { %1088 = vmatpush2.bf16.msra.mxu1 %v598_v59  ;;  %1048 = vmatprep.subr.bf16.mxu0 %v463_v60  ;;  %v775_v59 = vunpack.c.h.s8.bf16 %v239_v53  ;;  %v174_v60 = vld [vmem:[%s4481_s1 + $0x480] sm:$0xff] }
  0x27   :  { %1089 = vmatprep.subr.bf16.mxu1 %v591_v61  ;;  %v238_v61 = vld [vmem:[%s4481_s1 + $0x680] sm:$0xff]  ;;  %v646_v62 = vunpack.c.h.s8.bf16 %v174_v60  ;;  %v638_v4 = vunpack.c.l.s8.bf16 %v174_v60 }
  0x28   :  { %v774_v63 = vunpack.c.h.s8.bf16 %v238_v61  ;;  %v766_v5 = vunpack.c.l.s8.bf16 %v238_v61 }
  0x29   :  { %1049 = vmatpush2.bf16.msra.mxu0 %v462_v0  ;;  %v639_v0 = vunpack.c.l.s8.bf16 %v175_v31 }
  0x2a   :  { %1090 = vmatpush2.bf16.msra.mxu1 %v590_v1  ;;  %1050 = vmatprep.subr.bf16.mxu0 %v455_v2  ;;  %v767_v1 = vunpack.c.l.s8.bf16 %v239_v53  ;;  %v167_v2 = vld [vmem:[%s4481_s1 + $0x448] sm:$0xff] }
  0x2b   :  { %1091 = vmatprep.subr.bf16.mxu1 %v583_v3  ;;  %v231_v3 = vld [vmem:[%s4481_s1 + $0x648] sm:$0xff] }
  0x2d   :  { %1051 = vmatpush2.bf16.msra.mxu0 %v454_v6  ;;  %v631_v6 = vunpack.c.h.s8.bf16 %v167_v2 }
  0x2e   :  { %1092 = vmatpush2.bf16.msra.mxu1 %v582_v7  ;;  %1052 = vmatprep.subr.bf16.mxu0 %v447_v8  ;;  %v759_v7 = vunpack.c.h.s8.bf16 %v231_v3  ;;  %v166_v8 = vld [vmem:[%s4481_s1 + $0x440] sm:$0xff] }
  0x2f   :  { %1093 = vmatprep.subr.bf16.mxu1 %v575_v9  ;;  %v230_v9 = vld [vmem:[%s4481_s1 + $0x640] sm:$0xff]  ;;  %v630_v10 = vunpack.c.h.s8.bf16 %v166_v8  ;;  %v622_v16 = vunpack.c.l.s8.bf16 %v166_v8 }
  0x30   :  { %v758_v11 = vunpack.c.h.s8.bf16 %v230_v9  ;;  %v750_v17 = vunpack.c.l.s8.bf16 %v230_v9 }
  0x31   :  { %1053 = vmatpush2.bf16.msra.mxu0 %v446_v12  ;;  %v623_v12 = vunpack.c.l.s8.bf16 %v167_v2 }
  0x32   :  { %1094 = vmatpush2.bf16.msra.mxu1 %v574_v13  ;;  %1054 = vmatprep.subr.bf16.mxu0 %v439_v14  ;;  %v751_v13 = vunpack.c.l.s8.bf16 %v231_v3  ;;  %v159_v14 = vld [vmem:[%s4481_s1 + $0x408] sm:$0xff] }
  0x33   :  { %1095 = vmatprep.subr.bf16.mxu1 %v567_v15  ;;  %v223_v15 = vld [vmem:[%s4481_s1 + $0x608] sm:$0xff] }
  0x35   :  { %1055 = vmatpush2.bf16.msra.mxu0 %v438_v18  ;;  %v615_v18 = vunpack.c.h.s8.bf16 %v159_v14 }
  0x36   :  { %1096 = vmatpush2.bf16.msra.mxu1 %v566_v19  ;;  %1056 = vmatprep.subr.bf16.mxu0 %v431_v20  ;;  %v743_v19 = vunpack.c.h.s8.bf16 %v223_v15  ;;  %v158_v20 = vld [vmem:[%s4481_s1 + $0x400] sm:$0xff] }
  0x37   :  { %1097 = vmatprep.subr.bf16.mxu1 %v559_v21  ;;  %v222_v21 = vld [vmem:[%s4481_s1 + $0x600] sm:$0xff]  ;;  %v614_v22 = vunpack.c.h.s8.bf16 %v158_v20  ;;  %v606_v28 = vunpack.c.l.s8.bf16 %v158_v20 }
  0x38   :  { %v742_v23 = vunpack.c.h.s8.bf16 %v222_v21  ;;  %v734_v29 = vunpack.c.l.s8.bf16 %v222_v21 }
  0x39   :  { %1057 = vmatpush2.bf16.msra.mxu0 %v430_v24  ;;  %v607_v24 = vunpack.c.l.s8.bf16 %v159_v14 }
  0x3a   :  { %1098 = vmatpush2.bf16.msra.mxu1 %v558_v25  ;;  %1058 = vmatprep.subr.bf16.mxu0 %v423_v26  ;;  %v735_v25 = vunpack.c.l.s8.bf16 %v223_v15  ;;  %v215_v26 = vld [vmem:[%s4481_s1 + $0x5c8] sm:$0xff] }
  0x3b   :  { %1099 = vmatprep.subr.bf16.mxu1 %v551_v27  ;;  %v279_v27 = vld [vmem:[%s4481_s1 + $0x7c8] sm:$0xff] }
  0x3d   :  { %1059 = vmatpush2.bf16.msra.mxu0 %v422_v32  ;;  %v727_v32 = vunpack.c.h.s8.bf16 %v215_v26 }
  0x3e   :  { %1100 = vmatpush2.bf16.msra.mxu1 %v550_v33  ;;  %1060 = vmatprep.subr.bf16.mxu0 %v415_v34  ;;  %v855_v33 = vunpack.c.h.s8.bf16 %v279_v27  ;;  %v214_v34 = vld [vmem:[%s4481_s1 + $0x5c0] sm:$0xff] }
  0x3f   :  { %1101 = vmatprep.subr.bf16.mxu1 %v543_v35  ;;  %v278_v35 = vld [vmem:[%s4481_s1 + $0x7c0] sm:$0xff]  ;;  %v726_v38 = vunpack.c.h.s8.bf16 %v214_v34  ;;  %v718_v44 = vunpack.c.l.s8.bf16 %v214_v34 }
  0x40   :  { %v854_v39 = vunpack.c.h.s8.bf16 %v278_v35  ;;  %v846_v45 = vunpack.c.l.s8.bf16 %v278_v35 }
  0x41   :  { %1061 = vmatpush2.bf16.msra.mxu0 %v414_v40  ;;  %v719_v40 = vunpack.c.l.s8.bf16 %v215_v26  ;;  %v3351_v26 = vcombine.low %v3234_v48, %v3234_v48  ;;  %v303_v48 = vld [vmem:[%s4481_s1 + $0x888] sm:$0xff] }
  0x42   :  { %1102 = vmatpush2.bf16.msra.mxu1 %v542_v41  ;;  %1112 = vmatprep.subr.bf16.mxu0 %v663_v42  ;;  %v847_v41 = vunpack.c.l.s8.bf16 %v279_v27  ;;  %v207_v42 = vld [vmem:[%s4481_s1 + $0x588] sm:$0xff]  ;;  %v3355_v27 = vcombine.low %v3239_v49, %v3239_v49  ;;  %v49_v49 = vld [vmem:[%s4481_s1 + $0x98] sm:$0xff] }
  0x43   :  { %1153 = vmatprep.subr.bf16.mxu1 %v791_v43  ;;  %v271_v43 = vld [vmem:[%s4481_s1 + $0x788] sm:$0xff] }
  0x44   :  { %1063 = vmatmul.mubr.bf16.vlgmr.msra.gmra.mxu0 %v3225_v46 }
  0x45   :  { %1104 = vmatmul.mubr.bf16.vlgmr.msra.gmra.mxu1 %v3229_v47  ;;  %1113 = vmatpush1.bf16.msra.mxu0 %v662_v50  ;;  %v711_v50 = vunpack.c.h.s8.bf16 %v207_v42 }
  0x46   :  { %1154 = vmatpush1.bf16.msra.mxu1 %v790_v51  ;;  %1114 = vmatprep.subr.bf16.mxu0 %v655_v30  ;;  %v839_v51 = vunpack.c.h.s8.bf16 %v271_v43  ;;  %v206_v30 = vld [vmem:[%s4481_s1 + $0x580] sm:$0xff] }
  0x47   :  { %1155 = vmatprep.subr.bf16.mxu1 %v783_v52  ;;  %1144 = vmatprep.mubr.bf16.mxu0 %v3249_v54  ;;  %v270_v52 = vld [vmem:[%s4481_s1 + $0x780] sm:$0xff]  ;;  %v710_v31 = vunpack.c.h.s8.bf16 %v206_v30  ;;  %v702_v60 = vunpack.c.l.s8.bf16 %v206_v30  ;;  %v295_v30 = vld [vmem:[%s4481_s1 + $0x848] sm:$0xff] }
  0x48   :  { %1185 = vmatprep.mubr.bf16.mxu1 %v3253_v55  ;;  %v838_v53 = vunpack.c.h.s8.bf16 %v270_v52  ;;  %v830_v61 = vunpack.c.l.s8.bf16 %v270_v52  ;;  %v41_v52 = vld [vmem:[%s4481_s1 + $0x58] sm:$0xff] }
  0x49   :  { %1115 = vmatpush1.bf16.msra.mxu0 %v654_v56  ;;  %v703_v56 = vunpack.c.l.s8.bf16 %v207_v42  ;;  %v302_v42 = vld [vmem:[%s4481_s1 + $0x880] sm:$0xff] }
  0x4a   :  { %1156 = vmatpush1.bf16.msra.mxu1 %v782_v57  ;;  %1116 = vmatprep.subr.bf16.mxu0 %v647_v58  ;;  %v831_v57 = vunpack.c.l.s8.bf16 %v271_v43  ;;  %v199_v58 = vld [vmem:[%s4481_s1 + $0x548] sm:$0xff]  ;;  %v48_v43 = vld [vmem:[%s4481_s1 + $0x90] sm:$0xff] }
  0x4b   :  { %1157 = vmatprep.subr.bf16.mxu1 %v775_v59  ;;  %v263_v59 = vld [vmem:[%s4481_s1 + $0x748] sm:$0xff] }
  0x4d   :  { %1117 = vmatpush1.bf16.msra.mxu0 %v646_v62  ;;  %v695_v62 = vunpack.c.h.s8.bf16 %v199_v58 }
  0x4e   :  { %1158 = vmatpush1.bf16.msra.mxu1 %v774_v63  ;;  %1118 = vmatprep.subr.bf16.mxu0 %v639_v0  ;;  %v823_v63 = vunpack.c.h.s8.bf16 %v263_v59  ;;  %v198_v0 = vld [vmem:[%s4481_s1 + $0x540] sm:$0xff] }
  0x4f   :  { %1159 = vmatprep.subr.bf16.mxu1 %v767_v1  ;;  %v262_v1 = vld [vmem:[%s4481_s1 + $0x740] sm:$0xff]  ;;  %v694_v2 = vunpack.c.h.s8.bf16 %v198_v0  ;;  %v686_v8 = vunpack.c.l.s8.bf16 %v198_v0  ;;  %v287_v0 = vld [vmem:[%s4481_s1 + $0x808] sm:$0xff] }
  0x50   :  { %v822_v3 = vunpack.c.h.s8.bf16 %v262_v1  ;;  %v814_v9 = vunpack.c.l.s8.bf16 %v262_v1  ;;  %v33_v1 = vld [vmem:[%s4481_s1 + $0x18] sm:$0xff] }
  0x51   :  { %1119 = vmatpush1.bf16.msra.mxu0 %v638_v4  ;;  %v687_v4 = vunpack.c.l.s8.bf16 %v199_v58  ;;  %v294_v58 = vld [vmem:[%s4481_s1 + $0x840] sm:$0xff] }
  0x52   :  { %1160 = vmatpush1.bf16.msra.mxu1 %v766_v5  ;;  %1120 = vmatprep.subr.bf16.mxu0 %v631_v6  ;;  %v815_v5 = vunpack.c.l.s8.bf16 %v263_v59  ;;  %v191_v6 = vld [vmem:[%s4481_s1 + $0x508] sm:$0xff]  ;;  %v40_v59 = vld [vmem:[%s4481_s1 + $0x50] sm:$0xff] }
  0x53   :  { %1161 = vmatprep.subr.bf16.mxu1 %v759_v7  ;;  %v255_v7 = vld [vmem:[%s4481_s1 + $0x708] sm:$0xff] }
  0x55   :  { %1121 = vmatpush1.bf16.msra.mxu0 %v630_v10  ;;  %v679_v10 = vunpack.c.h.s8.bf16 %v191_v6 }
  0x56   :  { %1162 = vmatpush1.bf16.msra.mxu1 %v758_v11  ;;  %1122 = vmatprep.subr.bf16.mxu0 %v623_v12  ;;  %v807_v11 = vunpack.c.h.s8.bf16 %v255_v7  ;;  %v190_v12 = vld [vmem:[%s4481_s1 + $0x500] sm:$0xff] }
  0x57   :  { %1163 = vmatprep.subr.bf16.mxu1 %v751_v13  ;;  %v254_v13 = vld [vmem:[%s4481_s1 + $0x700] sm:$0xff]  ;;  %v678_v14 = vunpack.c.h.s8.bf16 %v190_v12  ;;  %v670_v20 = vunpack.c.l.s8.bf16 %v190_v12  ;;  %v343_v12 = vld [vmem:[%s4481_s1 + $0x9c8] sm:$0xff] }
  0x58   :  { %v806_v15 = vunpack.c.h.s8.bf16 %v254_v13  ;;  %v798_v21 = vunpack.c.l.s8.bf16 %v254_v13  ;;  %v89_v13 = vld [vmem:[%s4481_s1 + $0x1d8] sm:$0xff] }
  0x59   :  { %1123 = vmatpush1.bf16.msra.mxu0 %v622_v16  ;;  %v671_v16 = vunpack.c.l.s8.bf16 %v191_v6  ;;  %v286_v6 = vld [vmem:[%s4481_s1 + $0x800] sm:$0xff] }
  0x5a   :  { %1164 = vmatpush1.bf16.msra.mxu1 %v750_v17  ;;  %1124 = vmatprep.subr.bf16.mxu0 %v615_v18  ;;  %v799_v17 = vunpack.c.l.s8.bf16 %v255_v7  ;;  %v311_v18 = vld [vmem:[%s4481_s1 + $0x8c8] sm:$0xff]  ;;  %v32_v7 = vld [vmem:[%s4481_s1 + $0x10] sm:$0xff] }
  0x5b   :  { %1165 = vmatprep.subr.bf16.mxu1 %v743_v19  ;;  %v57_v19 = vld [vmem:[%s4481_s1 + $0xd8] sm:$0xff] }
  0x5c   :  { %v401_v34 = vunpack.c.l.s8.bf16 %v57_v19 }
  0x5d   :  { %1125 = vmatpush1.bf16.msra.mxu0 %v614_v22  ;;  %v919_v22 = vunpack.c.h.s8.bf16 %v311_v18 }
  0x5e   :  { %1166 = vmatpush1.bf16.msra.mxu1 %v742_v23  ;;  %1126 = vmatprep.subr.bf16.mxu0 %v607_v24  ;;  %v409_v23 = vunpack.c.h.s8.bf16 %v57_v19  ;;  %v310_v24 = vld [vmem:[%s4481_s1 + $0x8c0] sm:$0xff]  ;;  %v88_v19 = vld [vmem:[%s4481_s1 + $0x1d0] sm:$0xff] }
  0x5f   :  { %1167 = vmatprep.subr.bf16.mxu1 %v735_v25  ;;  %v56_v25 = vld [vmem:[%s4481_s1 + $0xd0] sm:$0xff] }
  0x61   :  { %1127 = vmatpush1.bf16.msra.mxu0 %v606_v28  ;;  %v3360_v28 = vld [vmem:[%s4482_s0 + $0x20] sm:$0xff] }
  0x62   :  { %1168 = vmatpush1.bf16.msra.mxu1 %v734_v29  ;;  %1128 = vmatprep.subr.bf16.mxu0 %v727_v32  ;;  %v918_v29 = vunpack.c.h.s8.bf16 %v310_v24  ;;  %v408_v32 = vunpack.c.h.s8.bf16 %v56_v25  ;;  %v3370_v35 = vcombine.high %v3360_v28, %v3360_v28 }
  0x63   :  { %1169 = vmatprep.subr.bf16.mxu1 %v855_v33  ;;  %v911_v33 = vunpack.c.l.s8.bf16 %v311_v18  ;;  %v342_v18 = vld [vmem:[%s4481_s1 + $0x9c0] sm:$0xff] }
  0x65   :  { %1129 = vmatpush2.bf16.msra.mxu0 %v726_v38  ;;  %v910_v38 = vunpack.c.l.s8.bf16 %v310_v24  ;;  %v335_v24 = vld [vmem:[%s4481_s1 + $0x988] sm:$0xff] }
  0x66   :  { %1170 = vmatpush2.bf16.msra.mxu1 %v854_v39  ;;  %1130 = vmatprep.subr.bf16.mxu0 %v719_v40  ;;  %v400_v39 = vunpack.c.l.s8.bf16 %v56_v25  ;;  %v903_v40 = vunpack.c.h.s8.bf16 %v303_v48  ;;  %v81_v25 = vld [vmem:[%s4481_s1 + $0x198] sm:$0xff] }
  0x67   :  { %1171 = vmatprep.subr.bf16.mxu1 %v847_v41  ;;  %v393_v41 = vunpack.c.h.s8.bf16 %v49_v49 }
  0x69   :  { %1131 = vmatpush2.bf16.msra.mxu0 %v718_v44  ;;  %v902_v44 = vunpack.c.h.s8.bf16 %v302_v42 }
  0x6a   :  { %1172 = vmatpush2.bf16.msra.mxu1 %v846_v45  ;;  %1132 = vmatprep.subr.bf16.mxu0 %v711_v50  ;;  %v392_v45 = vunpack.c.h.s8.bf16 %v48_v43  ;;  %v895_v50 = vunpack.c.l.s8.bf16 %v303_v48  ;;  %v334_v48 = vld [vmem:[%s4481_s1 + $0x980] sm:$0xff] }
  0x6b   :  { %1173 = vmatprep.subr.bf16.mxu1 %v839_v51  ;;  %v385_v51 = vunpack.c.l.s8.bf16 %v49_v49  ;;  %v80_v49 = vld [vmem:[%s4481_s1 + $0x190] sm:$0xff] }
  0x6d   :  { %1133 = vmatpush2.bf16.msra.mxu0 %v710_v31  ;;  %v894_v31 = vunpack.c.l.s8.bf16 %v302_v42  ;;  %v327_v42 = vld [vmem:[%s4481_s1 + $0x948] sm:$0xff] }
  0x6e   :  { %1174 = vmatpush2.bf16.msra.mxu1 %v838_v53  ;;  %1134 = vmatprep.subr.bf16.mxu0 %v703_v56  ;;  %v384_v53 = vunpack.c.l.s8.bf16 %v48_v43  ;;  %v887_v56 = vunpack.c.h.s8.bf16 %v295_v30  ;;  %v73_v43 = vld [vmem:[%s4481_s1 + $0x158] sm:$0xff] }
  0x6f   :  { %1175 = vmatprep.subr.bf16.mxu1 %v831_v57  ;;  %v377_v57 = vunpack.c.h.s8.bf16 %v41_v52 }
  0x71   :  { %1135 = vmatpush2.bf16.msra.mxu0 %v702_v60  ;;  %v886_v60 = vunpack.c.h.s8.bf16 %v294_v58 }
  0x72   :  { %1176 = vmatpush2.bf16.msra.mxu1 %v830_v61  ;;  %1136 = vmatprep.subr.bf16.mxu0 %v695_v62  ;;  %v376_v61 = vunpack.c.h.s8.bf16 %v40_v59  ;;  %v879_v62 = vunpack.c.l.s8.bf16 %v295_v30  ;;  %v326_v30 = vld [vmem:[%s4481_s1 + $0x940] sm:$0xff] }
  0x73   :  { %1177 = vmatprep.subr.bf16.mxu1 %v823_v63  ;;  %v369_v63 = vunpack.c.l.s8.bf16 %v41_v52  ;;  %v72_v52 = vld [vmem:[%s4481_s1 + $0x150] sm:$0xff] }
  0x75   :  { %1137 = vmatpush2.bf16.msra.mxu0 %v694_v2  ;;  %v878_v2 = vunpack.c.l.s8.bf16 %v294_v58  ;;  %v319_v58 = vld [vmem:[%s4481_s1 + $0x908] sm:$0xff] }
  0x76   :  { %1178 = vmatpush2.bf16.msra.mxu1 %v822_v3  ;;  %1138 = vmatprep.subr.bf16.mxu0 %v687_v4  ;;  %v368_v3 = vunpack.c.l.s8.bf16 %v40_v59  ;;  %v871_v4 = vunpack.c.h.s8.bf16 %v287_v0  ;;  %v65_v59 = vld [vmem:[%s4481_s1 + $0x118] sm:$0xff] }
  0x77   :  { %1179 = vmatprep.subr.bf16.mxu1 %v815_v5  ;;  %v361_v5 = vunpack.c.h.s8.bf16 %v33_v1 }
  0x79   :  { %1139 = vmatpush2.bf16.msra.mxu0 %v686_v8  ;;  %v870_v8 = vunpack.c.h.s8.bf16 %v286_v6 }
  0x7a   :  { %1180 = vmatpush2.bf16.msra.mxu1 %v814_v9  ;;  %1140 = vmatprep.subr.bf16.mxu0 %v679_v10  ;;  %v360_v9 = vunpack.c.h.s8.bf16 %v32_v7  ;;  %v863_v10 = vunpack.c.l.s8.bf16 %v287_v0  ;;  %v318_v0 = vld [vmem:[%s4481_s1 + $0x900] sm:$0xff] }
  0x7b   :  { %1181 = vmatprep.subr.bf16.mxu1 %v807_v11  ;;  %v353_v11 = vunpack.c.l.s8.bf16 %v33_v1  ;;  %v64_v1 = vld [vmem:[%s4481_s1 + $0x110] sm:$0xff] }
  0x7d   :  { %1141 = vmatpush2.bf16.msra.mxu0 %v678_v14  ;;  %v862_v14 = vunpack.c.l.s8.bf16 %v286_v6  ;;  %v121_v6 = vld [vmem:[%s4481_s1 + $0x2d8] sm:$0xff] }
  0x7e   :  { %1182 = vmatpush2.bf16.msra.mxu1 %v806_v15  ;;  %1142 = vmatprep.subr.bf16.mxu0 %v671_v16  ;;  %v352_v15 = vunpack.c.l.s8.bf16 %v32_v7  ;;  %v983_v16 = vunpack.c.h.s8.bf16 %v343_v12  ;;  %v185_v7 = vld [vmem:[%s4481_s1 + $0x4d8] sm:$0xff] }
  0x7f   :  { %1183 = vmatprep.subr.bf16.mxu1 %v799_v17  ;;  %v473_v17 = vunpack.c.h.s8.bf16 %v89_v13 }
  0x81   :  { %1143 = vmatpush2.bf16.msra.mxu0 %v670_v20  ;;  %v982_v20 = vunpack.c.h.s8.bf16 %v342_v18 }
  0x82   :  { %1184 = vmatpush2.bf16.msra.mxu1 %v798_v21  ;;  %1194 = vmatprep.subr.bf16.mxu0 %v919_v22  ;;  %v472_v21 = vunpack.c.h.s8.bf16 %v88_v19  ;;  %v975_v22 = vunpack.c.l.s8.bf16 %v343_v12  ;;  %v120_v12 = vld [vmem:[%s4481_s1 + $0x2d0] sm:$0xff] }
  0x83   :  { %1235 = vmatprep.subr.bf16.mxu1 %v409_v23  ;;  %v465_v23 = vunpack.c.l.s8.bf16 %v89_v13  ;;  %v184_v13 = vld [vmem:[%s4481_s1 + $0x4d0] sm:$0xff] }
  0x84   :  { %1145 = vmatmul.mubr.bf16.vlgmr.msra.gmra.mxu0 %v3351_v26 }
  0x85   :  { %1186 = vmatmul.mubr.bf16.vlgmr.msra.gmra.mxu1 %v3355_v27  ;;  %1195 = vmatpush1.bf16.msra.mxu0 %v918_v29  ;;  %v974_v29 = vunpack.c.l.s8.bf16 %v342_v18  ;;  %v657_v18 = vunpack.c.l.s8.bf16 %v185_v7 }
  0x86   :  { %1236 = vmatpush1.bf16.msra.mxu1 %v408_v32  ;;  %1196 = vmatprep.subr.bf16.mxu0 %v911_v33  ;;  %v464_v32 = vunpack.c.l.s8.bf16 %v88_v19  ;;  %v967_v33 = vunpack.c.h.s8.bf16 %v335_v24  ;;  %v113_v19 = vld [vmem:[%s4481_s1 + $0x298] sm:$0xff] }
  0x87   :  { %1237 = vmatprep.subr.bf16.mxu1 %v401_v34  ;;  %1226 = vmatprep.mubr.bf16.mxu0 %v3370_v35  ;;  %v457_v34 = vunpack.c.h.s8.bf16 %v81_v25 }
  0x88   :  { %1267 = vmatprep.mubr.bf16.mxu1 %v3143_v36 }
  0x89   :  { %1197 = vmatpush1.bf16.msra.mxu0 %v910_v38  ;;  %v966_v38 = vunpack.c.h.s8.bf16 %v334_v48 }
  0x8a   :  { %1238 = vmatpush1.bf16.msra.mxu1 %v400_v39  ;;  %1198 = vmatprep.subr.bf16.mxu0 %v903_v40  ;;  %v456_v39 = vunpack.c.h.s8.bf16 %v80_v49  ;;  %v959_v40 = vunpack.c.l.s8.bf16 %v335_v24  ;;  %v112_v24 = vld [vmem:[%s4481_s1 + $0x290] sm:$0xff] }
  0x8b   :  { %1239 = vmatprep.subr.bf16.mxu1 %v393_v41  ;;  %v449_v41 = vunpack.c.l.s8.bf16 %v81_v25  ;;  %v176_v25 = vld [vmem:[%s4481_s1 + $0x490] sm:$0xff] }
  0x8d   :  { %1199 = vmatpush1.bf16.msra.mxu0 %v902_v44  ;;  %v958_v44 = vunpack.c.l.s8.bf16 %v334_v48  ;;  %v105_v48 = vld [vmem:[%s4481_s1 + $0x258] sm:$0xff] }
  0x8e   :  { %1240 = vmatpush1.bf16.msra.mxu1 %v392_v45  ;;  %1200 = vmatprep.subr.bf16.mxu0 %v895_v50  ;;  %v448_v45 = vunpack.c.l.s8.bf16 %v80_v49  ;;  %v951_v50 = vunpack.c.h.s8.bf16 %v327_v42  ;;  %v169_v49 = vld [vmem:[%s4481_s1 + $0x458] sm:$0xff] }
  0x8f   :  { %1241 = vmatprep.subr.bf16.mxu1 %v385_v51  ;;  %v441_v51 = vunpack.c.h.s8.bf16 %v73_v43 }
  0x91   :  { %1201 = vmatpush1.bf16.msra.mxu0 %v894_v31  ;;  %v950_v31 = vunpack.c.h.s8.bf16 %v326_v30 }
  0x92   :  { %1242 = vmatpush1.bf16.msra.mxu1 %v384_v53  ;;  %1202 = vmatprep.subr.bf16.mxu0 %v887_v56  ;;  %v440_v53 = vunpack.c.h.s8.bf16 %v72_v52  ;;  %v943_v56 = vunpack.c.l.s8.bf16 %v327_v42  ;;  %v104_v42 = vld [vmem:[%s4481_s1 + $0x250] sm:$0xff] }
  0x93   :  { %1243 = vmatprep.subr.bf16.mxu1 %v377_v57  ;;  %v433_v57 = vunpack.c.l.s8.bf16 %v73_v43  ;;  %v168_v43 = vld [vmem:[%s4481_s1 + $0x450] sm:$0xff] }
  0x95   :  { %1203 = vmatpush1.bf16.msra.mxu0 %v886_v60  ;;  %v942_v60 = vunpack.c.l.s8.bf16 %v326_v30  ;;  %v97_v30 = vld [vmem:[%s4481_s1 + $0x218] sm:$0xff] }
  0x96   :  { %1244 = vmatpush1.bf16.msra.mxu1 %v376_v61  ;;  %1204 = vmatprep.subr.bf16.mxu0 %v879_v62  ;;  %v432_v61 = vunpack.c.l.s8.bf16 %v72_v52  ;;  %v935_v62 = vunpack.c.h.s8.bf16 %v319_v58  ;;  %v161_v52 = vld [vmem:[%s4481_s1 + $0x418] sm:$0xff] }
  0x97   :  { %1245 = vmatprep.subr.bf16.mxu1 %v369_v63  ;;  %v425_v63 = vunpack.c.h.s8.bf16 %v65_v59 }
  0x99   :  { %1205 = vmatpush1.bf16.msra.mxu0 %v878_v2  ;;  %v934_v2 = vunpack.c.h.s8.bf16 %v318_v0 }
  0x9a   :  { %1246 = vmatpush1.bf16.msra.mxu1 %v368_v3  ;;  %1206 = vmatprep.subr.bf16.mxu0 %v871_v4  ;;  %v424_v3 = vunpack.c.h.s8.bf16 %v64_v1  ;;  %v927_v4 = vunpack.c.l.s8.bf16 %v319_v58  ;;  %v96_v58 = vld [vmem:[%s4481_s1 + $0x210] sm:$0xff] }
  0x9b   :  { %1247 = vmatprep.subr.bf16.mxu1 %v361_v5  ;;  %v417_v5 = vunpack.c.l.s8.bf16 %v65_v59  ;;  %v160_v59 = vld [vmem:[%s4481_s1 + $0x410] sm:$0xff] }
  0x9d   :  { %1207 = vmatpush1.bf16.msra.mxu0 %v870_v8  ;;  %v926_v8 = vunpack.c.l.s8.bf16 %v318_v0  ;;  %v153_v0 = vld [vmem:[%s4481_s1 + $0x3d8] sm:$0xff] }
  0x9e   :  { %1248 = vmatpush1.bf16.msra.mxu1 %v360_v9  ;;  %1208 = vmatprep.subr.bf16.mxu0 %v863_v10  ;;  %v416_v9 = vunpack.c.l.s8.bf16 %v64_v1  ;;  %v537_v10 = vunpack.c.h.s8.bf16 %v121_v6  ;;  %v217_v1 = vld [vmem:[%s4481_s1 + $0x5d8] sm:$0xff] }
  0x9f   :  { %1249 = vmatprep.subr.bf16.mxu1 %v353_v11  ;;  %v665_v11 = vunpack.c.h.s8.bf16 %v185_v7  ;;  %v216_v7 = vld [vmem:[%s4481_s1 + $0x5d0] sm:$0xff] }
  0xa1   :  { %1209 = vmatpush1.bf16.msra.mxu0 %v862_v14  ;;  %v3468_v14 = vcombine.low %v3360_v28, %v3360_v28  ;;  %v528_v28 = vunpack.c.l.s8.bf16 %v120_v12 }
  0xa2   :  { %1250 = vmatpush1.bf16.msra.mxu1 %v352_v15  ;;  %1210 = vmatprep.subr.bf16.mxu0 %v983_v16  ;;  %v536_v15 = vunpack.c.h.s8.bf16 %v120_v12  ;;  %v664_v16 = vunpack.c.h.s8.bf16 %v184_v13  ;;  %v145_v12 = vld [vmem:[%s4481_s1 + $0x398] sm:$0xff] }
  0xa3   :  { %1251 = vmatprep.subr.bf16.mxu1 %v473_v17  ;;  %v529_v17 = vunpack.c.l.s8.bf16 %v121_v6  ;;  %v152_v6 = vld [vmem:[%s4481_s1 + $0x3d0] sm:$0xff] }
  0xa5   :  { %1211 = vmatpush2.bf16.msra.mxu0 %v982_v20  ;;  %v177_v20 = vld [vmem:[%s4481_s1 + $0x498] sm:$0xff] }
  0xa6   :  { %1252 = vmatpush2.bf16.msra.mxu1 %v472_v21  ;;  %1212 = vmatprep.subr.bf16.mxu0 %v975_v22  ;;  %v656_v21 = vunpack.c.l.s8.bf16 %v184_v13  ;;  %v521_v22 = vunpack.c.h.s8.bf16 %v113_v19  ;;  %v209_v13 = vld [vmem:[%s4481_s1 + $0x598] sm:$0xff] }
  0xa7   :  { %1253 = vmatprep.subr.bf16.mxu1 %v465_v23  ;;  %v649_v23 = vunpack.c.h.s8.bf16 %v177_v20 }
  0xa9   :  { %1213 = vmatpush2.bf16.msra.mxu0 %v974_v29  ;;  %v520_v29 = vunpack.c.h.s8.bf16 %v112_v24 }
  0xaa   :  { %1254 = vmatpush2.bf16.msra.mxu1 %v464_v32  ;;  %1214 = vmatprep.subr.bf16.mxu0 %v967_v33  ;;  %v648_v32 = vunpack.c.h.s8.bf16 %v176_v25  ;;  %v513_v33 = vunpack.c.l.s8.bf16 %v113_v19  ;;  %v144_v19 = vld [vmem:[%s4481_s1 + $0x390] sm:$0xff] }
  0xab   :  { %1255 = vmatprep.subr.bf16.mxu1 %v457_v34  ;;  %v641_v34 = vunpack.c.l.s8.bf16 %v177_v20  ;;  %v208_v20 = vld [vmem:[%s4481_s1 + $0x590] sm:$0xff] }
  0xad   :  { %1215 = vmatpush2.bf16.msra.mxu0 %v966_v38  ;;  %v512_v38 = vunpack.c.l.s8.bf16 %v112_v24  ;;  %v137_v24 = vld [vmem:[%s4481_s1 + $0x358] sm:$0xff] }
  0xae   :  { %1256 = vmatpush2.bf16.msra.mxu1 %v456_v39  ;;  %1216 = vmatprep.subr.bf16.mxu0 %v959_v40  ;;  %v640_v39 = vunpack.c.l.s8.bf16 %v176_v25  ;;  %v505_v40 = vunpack.c.h.s8.bf16 %v105_v48  ;;  %v201_v25 = vld [vmem:[%s4481_s1 + $0x558] sm:$0xff] }
  0xaf   :  { %1257 = vmatprep.subr.bf16.mxu1 %v449_v41  ;;  %v633_v41 = vunpack.c.h.s8.bf16 %v169_v49 }
  0xb1   :  { %1217 = vmatpush2.bf16.msra.mxu0 %v958_v44  ;;  %v504_v44 = vunpack.c.h.s8.bf16 %v104_v42 }
  0xb2   :  { %1258 = vmatpush2.bf16.msra.mxu1 %v448_v45  ;;  %1218 = vmatprep.subr.bf16.mxu0 %v951_v50  ;;  %v632_v45 = vunpack.c.h.s8.bf16 %v168_v43  ;;  %v497_v50 = vunpack.c.l.s8.bf16 %v105_v48  ;;  %v136_v48 = vld [vmem:[%s4481_s1 + $0x350] sm:$0xff] }
  0xb3   :  { %1259 = vmatprep.subr.bf16.mxu1 %v441_v51  ;;  %v625_v51 = vunpack.c.l.s8.bf16 %v169_v49  ;;  %v200_v49 = vld [vmem:[%s4481_s1 + $0x550] sm:$0xff] }
  0xb5   :  { %1219 = vmatpush2.bf16.msra.mxu0 %v950_v31  ;;  %v496_v31 = vunpack.c.l.s8.bf16 %v104_v42  ;;  %v129_v42 = vld [vmem:[%s4481_s1 + $0x318] sm:$0xff] }
  0xb6   :  { %1260 = vmatpush2.bf16.msra.mxu1 %v440_v53  ;;  %1220 = vmatprep.subr.bf16.mxu0 %v943_v56  ;;  %v624_v53 = vunpack.c.l.s8.bf16 %v168_v43  ;;  %v489_v56 = vunpack.c.h.s8.bf16 %v97_v30  ;;  %v193_v43 = vld [vmem:[%s4481_s1 + $0x518] sm:$0xff] }
  0xb7   :  { %1261 = vmatprep.subr.bf16.mxu1 %v433_v57  ;;  %v617_v57 = vunpack.c.h.s8.bf16 %v161_v52 }
  0xb9   :  { %1221 = vmatpush2.bf16.msra.mxu0 %v942_v60  ;;  %v488_v60 = vunpack.c.h.s8.bf16 %v96_v58 }
  0xba   :  { %1262 = vmatpush2.bf16.msra.mxu1 %v432_v61  ;;  %1222 = vmatprep.subr.bf16.mxu0 %v935_v62  ;;  %v616_v61 = vunpack.c.h.s8.bf16 %v160_v59  ;;  %v481_v62 = vunpack.c.l.s8.bf16 %v97_v30  ;;  %v128_v30 = vld [vmem:[%s4481_s1 + $0x310] sm:$0xff] }
  0xbb   :  { %1263 = vmatprep.subr.bf16.mxu1 %v425_v63  ;;  %v609_v63 = vunpack.c.l.s8.bf16 %v161_v52  ;;  %v192_v52 = vld [vmem:[%s4481_s1 + $0x510] sm:$0xff] }
  0xbd   :  { %1223 = vmatpush2.bf16.msra.mxu0 %v934_v2  ;;  %v480_v2 = vunpack.c.l.s8.bf16 %v96_v58  ;;  %v249_v58 = vld [vmem:[%s4481_s1 + $0x6d8] sm:$0xff] }
  0xbe   :  { %1264 = vmatpush2.bf16.msra.mxu1 %v424_v3  ;;  %1224 = vmatprep.subr.bf16.mxu0 %v927_v4  ;;  %v608_v3 = vunpack.c.l.s8.bf16 %v160_v59  ;;  %v601_v4 = vunpack.c.h.s8.bf16 %v153_v0  ;;  %v313_v59 = vld [vmem:[%s4481_s1 + $0x8d8] sm:$0xff] }
  0xbf   :  { %1265 = vmatprep.subr.bf16.mxu1 %v417_v5  ;;  %v729_v5 = vunpack.c.h.s8.bf16 %v217_v1 }
  0xc1   :  { %1225 = vmatpush2.bf16.msra.mxu0 %v926_v8  ;;  %v600_v8 = vunpack.c.h.s8.bf16 %v152_v6 }
  0xc2   :  { %1266 = vmatpush2.bf16.msra.mxu1 %v416_v9  ;;  %1276 = vmatprep.subr.bf16.mxu0 %v537_v10  ;;  %v728_v9 = vunpack.c.h.s8.bf16 %v216_v7  ;;  %v593_v10 = vunpack.c.l.s8.bf16 %v153_v0  ;;  %v248_v0 = vld [vmem:[%s4481_s1 + $0x6d0] sm:$0xff] }
  0xc3   :  { %1317 = vmatprep.subr.bf16.mxu1 %v665_v11  ;;  %v721_v11 = vunpack.c.l.s8.bf16 %v217_v1  ;;  %v312_v1 = vld [vmem:[%s4481_s1 + $0x8d0] sm:$0xff] }
  0xc4   :  { %1227 = vmatmul.mubr.bf16.vlgmr.msra.gmra.mxu0 %v3468_v14 }
  0xc5   :  { %1268 = vmatmul.mubr.bf16.vlgmr.msra.gmra.mxu1 %v3225_v46  ;;  %1277 = vmatpush1.bf16.msra.mxu0 %v536_v15  ;;  %v592_v15 = vunpack.c.l.s8.bf16 %v152_v6  ;;  %v241_v6 = vld [vmem:[%s4481_s1 + $0x698] sm:$0xff] }
  0xc6   :  { %1318 = vmatpush1.bf16.msra.mxu1 %v664_v16  ;;  %1278 = vmatprep.subr.bf16.mxu0 %v529_v17  ;;  %v720_v16 = vunpack.c.l.s8.bf16 %v216_v7  ;;  %v585_v17 = vunpack.c.h.s8.bf16 %v145_v12  ;;  %v305_v7 = vld [vmem:[%s4481_s1 + $0x898] sm:$0xff] }
  0xc7   :  { %1319 = vmatprep.subr.bf16.mxu1 %v657_v18  ;;  %1308 = vmatprep.mubr.bf16.mxu0 %v3147_v37  ;;  %v713_v18 = vunpack.c.h.s8.bf16 %v209_v13 }
  0xc8   :  { %1349 = vmatprep.mubr.bf16.mxu1 %v3249_v54 }
  0xc9   :  { %1279 = vmatpush1.bf16.msra.mxu0 %v528_v28  ;;  %v584_v28 = vunpack.c.h.s8.bf16 %v144_v19 }
  0xca   :  { %1320 = vmatpush1.bf16.msra.mxu1 %v656_v21  ;;  %1280 = vmatprep.subr.bf16.mxu0 %v521_v22  ;;  %v712_v21 = vunpack.c.h.s8.bf16 %v208_v20  ;;  %v577_v22 = vunpack.c.l.s8.bf16 %v145_v12  ;;  %v912_v12 = vunpack.c.l.s8.bf16 %v312_v1 }
  0xcb   :  { %1321 = vmatprep.subr.bf16.mxu1 %v649_v23  ;;  %v705_v23 = vunpack.c.l.s8.bf16 %v209_v13 }
  0xcd   :  { %1281 = vmatpush1.bf16.msra.mxu0 %v520_v29  ;;  %v576_v29 = vunpack.c.l.s8.bf16 %v144_v19  ;;  %v304_v19 = vld [vmem:[%s4481_s1 + $0x890] sm:$0xff] }
  0xce   :  { %1322 = vmatpush1.bf16.msra.mxu1 %v648_v32  ;;  %1282 = vmatprep.subr.bf16.mxu0 %v513_v33  ;;  %v704_v32 = vunpack.c.l.s8.bf16 %v208_v20  ;;  %v569_v33 = vunpack.c.h.s8.bf16 %v137_v24 }
  0xcf   :  { %1323 = vmatprep.subr.bf16.mxu1 %v641_v34  ;;  %v697_v34 = vunpack.c.h.s8.bf16 %v201_v25 }
  0xd1   :  { %1283 = vmatpush1.bf16.msra.mxu0 %v512_v38  ;;  %v568_v38 = vunpack.c.h.s8.bf16 %v136_v48 }
  0xd2   :  { %1324 = vmatpush1.bf16.msra.mxu1 %v640_v39  ;;  %1284 = vmatprep.subr.bf16.mxu0 %v505_v40  ;;  %v696_v39 = vunpack.c.h.s8.bf16 %v200_v49  ;;  %v561_v40 = vunpack.c.l.s8.bf16 %v137_v24 }
  0xd3   :  { %1325 = vmatprep.subr.bf16.mxu1 %v633_v41  ;;  %v689_v41 = vunpack.c.l.s8.bf16 %v201_v25 }
  0xd5   :  { %1285 = vmatpush1.bf16.msra.mxu0 %v504_v44  ;;  %v560_v44 = vunpack.c.l.s8.bf16 %v136_v48 }
  0xd6   :  { %1326 = vmatpush1.bf16.msra.mxu1 %v632_v45  ;;  %1286 = vmatprep.subr.bf16.mxu0 %v497_v50  ;;  %v688_v45 = vunpack.c.l.s8.bf16 %v200_v49  ;;  %v553_v50 = vunpack.c.h.s8.bf16 %v129_v42  ;;  %v896_v49 = vunpack.c.l.s8.bf16 %v304_v19 }
  0xd7   :  { %1327 = vmatprep.subr.bf16.mxu1 %v625_v51  ;;  %v681_v51 = vunpack.c.h.s8.bf16 %v193_v43 }
  0xd9   :  { %1287 = vmatpush1.bf16.msra.mxu0 %v496_v31  ;;  %v552_v31 = vunpack.c.h.s8.bf16 %v128_v30 }
  0xda   :  { %1328 = vmatpush1.bf16.msra.mxu1 %v624_v53  ;;  %1288 = vmatprep.subr.bf16.mxu0 %v489_v56  ;;  %v680_v53 = vunpack.c.h.s8.bf16 %v192_v52  ;;  %v545_v56 = vunpack.c.l.s8.bf16 %v129_v42 }
  0xdb   :  { %1329 = vmatprep.subr.bf16.mxu1 %v617_v57  ;;  %v673_v57 = vunpack.c.l.s8.bf16 %v193_v43 }
  0xdd   :  { %1289 = vmatpush1.bf16.msra.mxu0 %v488_v60  ;;  %v544_v60 = vunpack.c.l.s8.bf16 %v128_v30 }
  0xde   :  { %1330 = vmatpush1.bf16.msra.mxu1 %v616_v61  ;;  %1290 = vmatprep.subr.bf16.mxu0 %v481_v62  ;;  %v672_v61 = vunpack.c.l.s8.bf16 %v192_v52  ;;  %v793_v62 = vunpack.c.h.s8.bf16 %v249_v58 }
  0xdf   :  { %1331 = vmatprep.subr.bf16.mxu1 %v609_v63  ;;  %v921_v63 = vunpack.c.h.s8.bf16 %v313_v59 }
  0xe1   :  { %1291 = vmatpush1.bf16.msra.mxu0 %v480_v2  ;;  %v792_v2 = vunpack.c.h.s8.bf16 %v248_v0 }
  0xe2   :  { %1332 = vmatpush1.bf16.msra.mxu1 %v608_v3  ;;  %1292 = vmatprep.subr.bf16.mxu0 %v601_v4  ;;  %v920_v3 = vunpack.c.h.s8.bf16 %v312_v1  ;;  %v785_v4 = vunpack.c.l.s8.bf16 %v249_v58 }
  0xe3   :  { %1333 = vmatprep.subr.bf16.mxu1 %v729_v5  ;;  %v913_v5 = vunpack.c.l.s8.bf16 %v313_v59 }
  0xe5   :  { %1293 = vmatpush2.bf16.msra.mxu0 %v600_v8 }
  0xe6   :  { %1334 = vmatpush2.bf16.msra.mxu1 %v728_v9  ;;  %1294 = vmatprep.subr.bf16.mxu0 %v593_v10 }
  0xe7   :  { %1335 = vmatprep.subr.bf16.mxu1 %v721_v11  ;;  %v784_v11 = vunpack.c.l.s8.bf16 %v248_v0 }
  0xe9   :  { %1295 = vmatpush2.bf16.msra.mxu0 %v592_v15 }
  0xea   :  { %1336 = vmatpush2.bf16.msra.mxu1 %v720_v16  ;;  %1296 = vmatprep.subr.bf16.mxu0 %v585_v17  ;;  %v777_v16 = vunpack.c.h.s8.bf16 %v241_v6  ;;  %v905_v17 = vunpack.c.h.s8.bf16 %v305_v7 }
  0xeb   :  { %1337 = vmatprep.subr.bf16.mxu1 %v713_v18  ;;  %v240_v18 = vld [vmem:[%s4481_s1 + $0x690] sm:$0xff] }
  0xec   :  { %v768_v48 = vunpack.c.l.s8.bf16 %v240_v18 }
  0xed   :  { %1297 = vmatpush2.bf16.msra.mxu0 %v584_v28 }
  0xee   :  { %1338 = vmatpush2.bf16.msra.mxu1 %v712_v21  ;;  %1298 = vmatprep.subr.bf16.mxu0 %v577_v22  ;;  %v776_v22 = vunpack.c.h.s8.bf16 %v240_v18  ;;  %v272_v18 = vld [vmem:[%s4481_s1 + $0x790] sm:$0xff] }
  0xef   :  { %1339 = vmatprep.subr.bf16.mxu1 %v705_v23  ;;  %v904_v23 = vunpack.c.h.s8.bf16 %v304_v19  ;;  %v336_v19 = vld [vmem:[%s4481_s1 + $0x990] sm:$0xff] }
  0xf1   :  { %1299 = vmatpush2.bf16.msra.mxu0 %v576_v29  ;;  %v769_v29 = vunpack.c.l.s8.bf16 %v241_v6 }
  0xf2   :  { %1340 = vmatpush2.bf16.msra.mxu1 %v704_v32  ;;  %1300 = vmatprep.subr.bf16.mxu0 %v569_v33  ;;  %v897_v32 = vunpack.c.l.s8.bf16 %v305_v7  ;;  %v233_v33 = vld [vmem:[%s4481_s1 + $0x658] sm:$0xff] }
  0xf3   :  { %1341 = vmatprep.subr.bf16.mxu1 %v697_v34  ;;  %v297_v34 = vld [vmem:[%s4481_s1 + $0x858] sm:$0xff] }
  0xf5   :  { %1301 = vmatpush2.bf16.msra.mxu0 %v568_v38  ;;  %v761_v38 = vunpack.c.h.s8.bf16 %v233_v33 }
  0xf6   :  { %1342 = vmatpush2.bf16.msra.mxu1 %v696_v39  ;;  %1302 = vmatprep.subr.bf16.mxu0 %v561_v40  ;;  %v889_v39 = vunpack.c.h.s8.bf16 %v297_v34  ;;  %v232_v40 = vld [vmem:[%s4481_s1 + $0x650] sm:$0xff] }
  0xf7   :  { %1343 = vmatprep.subr.bf16.mxu1 %v689_v41  ;;  %v296_v41 = vld [vmem:[%s4481_s1 + $0x850] sm:$0xff]  ;;  %v760_v42 = vunpack.c.h.s8.bf16 %v232_v40  ;;  %v752_v30 = vunpack.c.l.s8.bf16 %v232_v40 }
  0xf8   :  { %v888_v43 = vunpack.c.h.s8.bf16 %v296_v41  ;;  %v880_v52 = vunpack.c.l.s8.bf16 %v296_v41 }
  0xf9   :  { %1303 = vmatpush2.bf16.msra.mxu0 %v560_v44  ;;  %v753_v44 = vunpack.c.l.s8.bf16 %v233_v33 }
  0xfa   :  { %1344 = vmatpush2.bf16.msra.mxu1 %v688_v45  ;;  %1304 = vmatprep.subr.bf16.mxu0 %v553_v50  ;;  %v881_v45 = vunpack.c.l.s8.bf16 %v297_v34  ;;  %v225_v50 = vld [vmem:[%s4481_s1 + $0x618] sm:$0xff] }
  0xfb   :  { %1345 = vmatprep.subr.bf16.mxu1 %v681_v51  ;;  %v289_v51 = vld [vmem:[%s4481_s1 + $0x818] sm:$0xff] }
  0xfd   :  { %1305 = vmatpush2.bf16.msra.mxu0 %v552_v31  ;;  %v745_v31 = vunpack.c.h.s8.bf16 %v225_v50 }
  0xfe   :  { %1346 = vmatpush2.bf16.msra.mxu1 %v680_v53  ;;  %1306 = vmatprep.subr.bf16.mxu0 %v545_v56  ;;  %v873_v53 = vunpack.c.h.s8.bf16 %v289_v51  ;;  %v224_v56 = vld [vmem:[%s4481_s1 + $0x610] sm:$0xff] }
  0xff   :  { %1347 = vmatprep.subr.bf16.mxu1 %v673_v57  ;;  %v288_v57 = vld [vmem:[%s4481_s1 + $0x810] sm:$0xff]  ;;  %v744_v58 = vunpack.c.h.s8.bf16 %v224_v56  ;;  %v736_v0 = vunpack.c.l.s8.bf16 %v224_v56 }
 0x100   :  { %v872_v59 = vunpack.c.h.s8.bf16 %v288_v57  ;;  %v864_v1 = vunpack.c.l.s8.bf16 %v288_v57 }
 0x101   :  { %1307 = vmatpush2.bf16.msra.mxu0 %v544_v60  ;;  %v737_v60 = vunpack.c.l.s8.bf16 %v225_v50 }
 0x102   :  { %1348 = vmatpush2.bf16.msra.mxu1 %v672_v61  ;;  %1358 = vmatprep.subr.bf16.mxu0 %v793_v62  ;;  %v865_v61 = vunpack.c.l.s8.bf16 %v289_v51  ;;  %v281_v62 = vld [vmem:[%s4481_s1 + $0x7d8] sm:$0xff] }
 0x103   :  { %1399 = vmatprep.subr.bf16.mxu1 %v921_v63  ;;  %v345_v63 = vld [vmem:[%s4481_s1 + $0x9d8] sm:$0xff] }
 0x104   :  { %v1064_v8 = vpop.f32.mrf.mxu0  ;;  %1309 = vmatmul.mubr.bf16.vlgmr.msra.gmra.mxu0 %v3229_v47 }
 0x105   :  { %v1105_v9 = vpop.f32.mrf.mxu1  ;;  %1350 = vmatmul.mubr.bf16.vlgmr.msra.gmra.mxu1 %v3351_v26  ;;  %1359 = vmatpush1.bf16.msra.mxu0 %v792_v2  ;;  %v857_v2 = vunpack.c.h.s8.bf16 %v281_v62 }
 0x106   :  { %v3578_v10 = vadd.f32 %v1105_v9, %v1064_v8  ;;  %1400 = vmatpush1.bf16.msra.mxu1 %v920_v3  ;;  %v1066_v13 = vpop.f32.mrf.mxu0  ;;  %1360 = vmatprep.subr.bf16.mxu0 %v785_v4  ;;  %v985_v3 = vunpack.c.h.s8.bf16 %v345_v63  ;;  %v280_v4 = vld [vmem:[%s4481_s1 + $0x7d0] sm:$0xff]  ;;  %v849_v8 = vunpack.c.l.s8.bf16 %v281_v62  ;;  %v977_v9 = vunpack.c.l.s8.bf16 %v345_v63 }
 0x107   :  { %v1107_v15 = vpop.f32.mrf.mxu1  ;;  %1401 = vmatprep.subr.bf16.mxu1 %v913_v5  ;;  %1390 = vmatprep.mubr.bf16.mxu0 %v3253_v55  ;;  %v344_v5 = vld [vmem:[%s4481_s1 + $0x9d0] sm:$0xff]  ;;  %v856_v6 = vunpack.c.h.s8.bf16 %v280_v4 }
 0x108   :  { %v3586_v20 = vadd.f32 %v1107_v15, %v1066_v13  ;;  %1431 = vmatprep.mubr.bf16.mxu1 %v3370_v35  ;;  %v1068_v28 = vpop.f32.mrf.mxu0  ;;  %v984_v7 = vunpack.c.h.s8.bf16 %v344_v5  ;;  %v848_v13 = vunpack.c.l.s8.bf16 %v280_v4  ;;  %v976_v15 = vunpack.c.l.s8.bf16 %v344_v5 }
 0x109   :  { %v1109_v21 = vpop.f32.mrf.mxu1  ;;  %1361 = vmatpush1.bf16.msra.mxu0 %v784_v11  ;;  %v273_v11 = vld [vmem:[%s4481_s1 + $0x798] sm:$0xff]  ;;  %v840_v28 = vunpack.c.h.s8.bf16 %v272_v18 }
 0x10a   :  { %1402 = vmatpush1.bf16.msra.mxu1 %v912_v12  ;;  %v1069_v24 = vpop.f32.mrf.mxu0  ;;  %1362 = vmatprep.subr.bf16.mxu0 %v777_v16  ;;  %v337_v12 = vld [vmem:[%s4481_s1 + $0x998] sm:$0xff]  ;;  %v841_v16 = vunpack.c.h.s8.bf16 %v273_v11  ;;  %v968_v21 = vunpack.c.h.s8.bf16 %v336_v19 }
 0x10b   :  { %v1110_v25 = vpop.f32.mrf.mxu1  ;;  %1403 = vmatprep.subr.bf16.mxu1 %v905_v17  ;;  %v969_v17 = vunpack.c.h.s8.bf16 %v337_v12  ;;  %v265_v24 = vld [vmem:[%s4481_s1 + $0x758] sm:$0xff] }
 0x10c   :  { %v329_v25 = vld [vmem:[%s4481_s1 + $0x958] sm:$0xff]  ;;  %v825_v33 = vunpack.c.h.s8.bf16 %v265_v24  ;;  %v817_v40 = vunpack.c.l.s8.bf16 %v265_v24 }
 0x10d   :  { %1363 = vmatpush1.bf16.msra.mxu0 %v776_v22  ;;  %v833_v22 = vunpack.c.l.s8.bf16 %v273_v11  ;;  %v953_v34 = vunpack.c.h.s8.bf16 %v329_v25  ;;  %v945_v41 = vunpack.c.l.s8.bf16 %v329_v25 }
 0x10e   :  { %1404 = vmatpush1.bf16.msra.mxu1 %v904_v23  ;;  %1364 = vmatprep.subr.bf16.mxu0 %v769_v29  ;;  %v961_v23 = vunpack.c.l.s8.bf16 %v337_v12  ;;  %v832_v29 = vunpack.c.l.s8.bf16 %v272_v18 }
 0x10f   :  { %1405 = vmatprep.subr.bf16.mxu1 %v897_v32  ;;  %v960_v32 = vunpack.c.l.s8.bf16 %v336_v19  ;;  %v50_v19 = vld [vmem:[%s4481_s1 + $0xa0] sm:$0xff] }
 0x110   :  { %v394_v25 = vunpack.c.h.s8.bf16 %v50_v19 }
 0x111   :  { %1365 = vmatpush1.bf16.msra.mxu0 %v768_v48  ;;  %v264_v48 = vld [vmem:[%s4481_s1 + $0x750] sm:$0xff] }
 0x112   :  { %1406 = vmatpush1.bf16.msra.mxu1 %v896_v49  ;;  %1366 = vmatprep.subr.bf16.mxu0 %v761_v38  ;;  %v328_v49 = vld [vmem:[%s4481_s1 + $0x950] sm:$0xff]  ;;  %v824_v38 = vunpack.c.h.s8.bf16 %v264_v48 }
 0x113   :  { %1407 = vmatprep.subr.bf16.mxu1 %v889_v39  ;;  %v952_v39 = vunpack.c.h.s8.bf16 %v328_v49 }
 0x115   :  { %1367 = vmatpush1.bf16.msra.mxu0 %v760_v42  ;;  %v257_v42 = vld [vmem:[%s4481_s1 + $0x718] sm:$0xff] }
 0x116   :  { %1408 = vmatpush1.bf16.msra.mxu1 %v888_v43  ;;  %1368 = vmatprep.subr.bf16.mxu0 %v753_v44  ;;  %v321_v43 = vld [vmem:[%s4481_s1 + $0x918] sm:$0xff]  ;;  %v816_v44 = vunpack.c.l.s8.bf16 %v264_v48  ;;  %v809_v50 = vunpack.c.h.s8.bf16 %v257_v42  ;;  %v801_v56 = vunpack.c.l.s8.bf16 %v257_v42  ;;  %v42_v42 = vld [vmem:[%s4481_s1 + $0x60] sm:$0xff] }
 0x117   :  { %1409 = vmatprep.subr.bf16.mxu1 %v881_v45  ;;  %v944_v45 = vunpack.c.l.s8.bf16 %v328_v49  ;;  %v937_v51 = vunpack.c.h.s8.bf16 %v321_v43  ;;  %v929_v57 = vunpack.c.l.s8.bf16 %v321_v43  ;;  %v107_v49 = vld [vmem:[%s4481_s1 + $0x268] sm:$0xff]  ;;  %v106_v43 = vld [vmem:[%s4481_s1 + $0x260] sm:$0xff] }
 0x119   :  { %1369 = vmatpush1.bf16.msra.mxu0 %v752_v30  ;;  %v256_v30 = vld [vmem:[%s4481_s1 + $0x710] sm:$0xff] }
 0x11a   :  { %1410 = vmatpush1.bf16.msra.mxu1 %v880_v52  ;;  %1370 = vmatprep.subr.bf16.mxu0 %v745_v31  ;;  %v320_v52 = vld [vmem:[%s4481_s1 + $0x910] sm:$0xff]  ;;  %v808_v31 = vunpack.c.h.s8.bf16 %v256_v30 }
 0x11b   :  { %1411 = vmatprep.subr.bf16.mxu1 %v873_v53  ;;  %v936_v53 = vunpack.c.h.s8.bf16 %v320_v52 }
 0x11d   :  { %1371 = vmatpush1.bf16.msra.mxu0 %v744_v58  ;;  %v59_v58 = vld [vmem:[%s4481_s1 + $0xe8] sm:$0xff] }
 0x11e   :  { %1412 = vmatpush1.bf16.msra.mxu1 %v872_v59  ;;  %1372 = vmatprep.subr.bf16.mxu0 %v737_v60  ;;  %v123_v59 = vld [vmem:[%s4481_s1 + $0x2e8] sm:$0xff]  ;;  %v800_v60 = vunpack.c.l.s8.bf16 %v256_v30  ;;  %v411_v62 = vunpack.c.h.s8.bf16 %v59_v58  ;;  %v403_v4 = vunpack.c.l.s8.bf16 %v59_v58  ;;  %v34_v58 = vld [vmem:[%s4481_s1 + $0x20] sm:$0xff] }
 0x11f   :  { %1413 = vmatprep.subr.bf16.mxu1 %v865_v61  ;;  %v928_v61 = vunpack.c.l.s8.bf16 %v320_v52  ;;  %v539_v63 = vunpack.c.h.s8.bf16 %v123_v59  ;;  %v531_v5 = vunpack.c.l.s8.bf16 %v123_v59  ;;  %v35_v30 = vld [vmem:[%s4481_s1 + $0x28] sm:$0xff]  ;;  %v98_v59 = vld [vmem:[%s4481_s1 + $0x220] sm:$0xff] }
 0x120   :  { %v99_v52 = vld [vmem:[%s4481_s1 + $0x228] sm:$0xff] }
 0x121   :  { %1373 = vmatpush1.bf16.msra.mxu0 %v736_v0  ;;  %v58_v0 = vld [vmem:[%s4481_s1 + $0xe0] sm:$0xff] }
 0x122   :  { %1414 = vmatpush1.bf16.msra.mxu1 %v864_v1  ;;  %1374 = vmatprep.subr.bf16.mxu0 %v857_v2  ;;  %v122_v1 = vld [vmem:[%s4481_s1 + $0x2e0] sm:$0xff]  ;;  %v410_v2 = vunpack.c.h.s8.bf16 %v58_v0  ;;  %v402_v12 = vunpack.c.l.s8.bf16 %v58_v0  ;;  %v91_v0 = vld [vmem:[%s4481_s1 + $0x1e8] sm:$0xff] }
 0x123   :  { %1415 = vmatprep.subr.bf16.mxu1 %v985_v3  ;;  %v538_v3 = vunpack.c.h.s8.bf16 %v122_v1 }
 0x125   :  { %1375 = vmatpush2.bf16.msra.mxu0 %v856_v6  ;;  %v51_v6 = vld [vmem:[%s4481_s1 + $0xa8] sm:$0xff] }
 0x126   :  { %1416 = vmatpush2.bf16.msra.mxu1 %v984_v7  ;;  %1376 = vmatprep.subr.bf16.mxu0 %v849_v8  ;;  %v115_v7 = vld [vmem:[%s4481_s1 + $0x2a8] sm:$0xff] }
 0x127   :  { %1417 = vmatprep.subr.bf16.mxu1 %v977_v9  ;;  %v523_v18 = vunpack.c.h.s8.bf16 %v115_v7  ;;  %v515_v48 = vunpack.c.l.s8.bf16 %v115_v7  ;;  %v154_v7 = vld [vmem:[%s4481_s1 + $0x3e0] sm:$0xff] }
 0x129   :  { %1377 = vmatpush2.bf16.msra.mxu0 %v848_v13  ;;  %v530_v13 = vunpack.c.l.s8.bf16 %v122_v1  ;;  %v155_v1 = vld [vmem:[%s4481_s1 + $0x3e8] sm:$0xff] }
 0x12a   :  { %1418 = vmatpush2.bf16.msra.mxu1 %v976_v15  ;;  %1378 = vmatprep.subr.bf16.mxu0 %v841_v16 }
 0x12b   :  { %1419 = vmatprep.subr.bf16.mxu1 %v969_v17  ;;  %v395_v17 = vunpack.c.h.s8.bf16 %v51_v6 }
 0x12d   :  { %1379 = vmatpush2.bf16.msra.mxu0 %v840_v28  ;;  %v114_v28 = vld [vmem:[%s4481_s1 + $0x2a0] sm:$0xff] }
 0x12e   :  { %1420 = vmatpush2.bf16.msra.mxu1 %v968_v21  ;;  %1380 = vmatprep.subr.bf16.mxu0 %v833_v22 }
 0x12f   :  { %1421 = vmatprep.subr.bf16.mxu1 %v961_v23 }
 0x131   :  { %1381 = vmatpush2.bf16.msra.mxu0 %v832_v29  ;;  %v522_v29 = vunpack.c.h.s8.bf16 %v114_v28 }
 0x132   :  { %1422 = vmatpush2.bf16.msra.mxu1 %v960_v32  ;;  %1382 = vmatprep.subr.bf16.mxu0 %v825_v33 }
 0x133   :  { %1423 = vmatprep.subr.bf16.mxu1 %v953_v34  ;;  %v387_v34 = vunpack.c.l.s8.bf16 %v51_v6  ;;  %v90_v6 = vld [vmem:[%s4481_s1 + $0x1e0] sm:$0xff] }
 0x135   :  { %1383 = vmatpush2.bf16.msra.mxu0 %v824_v38  ;;  %v386_v38 = vunpack.c.l.s8.bf16 %v50_v19 }
 0x136   :  { %1424 = vmatpush2.bf16.msra.mxu1 %v952_v39  ;;  %1384 = vmatprep.subr.bf16.mxu0 %v817_v40  ;;  %v514_v39 = vunpack.c.l.s8.bf16 %v114_v28  ;;  %v82_v28 = vld [vmem:[%s4481_s1 + $0x1a0] sm:$0xff] }
 0x137   :  { %1425 = vmatprep.subr.bf16.mxu1 %v945_v41  ;;  %v507_v41 = vunpack.c.h.s8.bf16 %v107_v49 }
 0x139   :  { %1385 = vmatpush2.bf16.msra.mxu0 %v816_v44  ;;  %v378_v44 = vunpack.c.h.s8.bf16 %v42_v42 }
 0x13a   :  { %1426 = vmatpush2.bf16.msra.mxu1 %v944_v45  ;;  %1386 = vmatprep.subr.bf16.mxu0 %v809_v50  ;;  %v506_v45 = vunpack.c.h.s8.bf16 %v106_v43 }
 0x13b   :  { %1427 = vmatprep.subr.bf16.mxu1 %v937_v51  ;;  %v499_v51 = vunpack.c.l.s8.bf16 %v107_v49 }
 0x13d   :  { %1387 = vmatpush2.bf16.msra.mxu0 %v808_v31  ;;  %v370_v31 = vunpack.c.l.s8.bf16 %v42_v42 }
 0x13e   :  { %1428 = vmatpush2.bf16.msra.mxu1 %v936_v53  ;;  %1388 = vmatprep.subr.bf16.mxu0 %v801_v56  ;;  %v498_v53 = vunpack.c.l.s8.bf16 %v106_v43  ;;  %v363_v56 = vunpack.c.h.s8.bf16 %v35_v30 }
 0x13f   :  { %1429 = vmatprep.subr.bf16.mxu1 %v929_v57  ;;  %v491_v57 = vunpack.c.h.s8.bf16 %v99_v52 }
 0x141   :  { %1389 = vmatpush2.bf16.msra.mxu0 %v800_v60  ;;  %v362_v60 = vunpack.c.h.s8.bf16 %v34_v58 }
 0x142   :  { %1430 = vmatpush2.bf16.msra.mxu1 %v928_v61  ;;  %1440 = vmatprep.subr.bf16.mxu0 %v411_v62  ;;  %v490_v61 = vunpack.c.h.s8.bf16 %v98_v59  ;;  %v355_v62 = vunpack.c.l.s8.bf16 %v35_v30 }
 0x143   :  { %1481 = vmatprep.subr.bf16.mxu1 %v539_v63  ;;  %v483_v63 = vunpack.c.l.s8.bf16 %v99_v52 }
 0x144   :  { %v1146_v8 = vpop.f32.mrf.mxu0  ;;  %1391 = vmatmul.mubr.bf16.vlgmr.msra.gmra.mxu0 %v3355_v27 }
 0x145   :  { %v1187_v9 = vpop.f32.mrf.mxu1  ;;  %1432 = vmatmul.mubr.bf16.vlgmr.msra.gmra.mxu1 %v3468_v14  ;;  %v1147_v11 = vadd.f32 %v1146_v8, %v3578_v10  ;;  %1441 = vmatpush1.bf16.msra.mxu0 %v410_v2  ;;  %v354_v2 = vunpack.c.l.s8.bf16 %v34_v58  ;;  %v474_v8 = vunpack.c.h.s8.bf16 %v90_v6 }
 0x146   :  { %1482 = vmatpush1.bf16.msra.mxu1 %v538_v3  ;;  %v1148_v15 = vpop.f32.mrf.mxu0  ;;  %1442 = vmatprep.subr.bf16.mxu0 %v403_v4  ;;  %v482_v3 = vunpack.c.l.s8.bf16 %v98_v59  ;;  %v475_v4 = vunpack.c.h.s8.bf16 %v91_v0 }
 0x147   :  { %v1189_v16 = vpop.f32.mrf.mxu1  ;;  %1483 = vmatprep.subr.bf16.mxu1 %v531_v5  ;;  %v3689_v21 = vadd.f32 %v1187_v9, %v1147_v11  ;;  %v1149_v10 = vadd.f32 %v1148_v15, %v3586_v20  ;;  %1472 = vmatprep.mubr.bf16.mxu0 %v3143_v36  ;;  %v43_v20 = vld [vmem:[%s4481_s1 + $0x68] sm:$0xff]  ;;  %v603_v5 = vunpack.c.h.s8.bf16 %v155_v1  ;;  %v602_v9 = vunpack.c.h.s8.bf16 %v154_v7 }
 0x148   :  { %1513 = vmatprep.mubr.bf16.mxu1 %v3147_v37  ;;  %v1150_v22 = vpop.f32.mrf.mxu0  ;;  %v379_v40 = vunpack.c.h.s8.bf16 %v43_v20  ;;  %v371_v50 = vunpack.c.l.s8.bf16 %v43_v20  ;;  %v467_v11 = vunpack.c.l.s8.bf16 %v91_v0  ;;  %v147_v15 = vld [vmem:[%s4481_s1 + $0x3a8] sm:$0xff] }
 0x149   :  { %v1191_v23 = vpop.f32.mrf.mxu1  ;;  %v3694_v24 = vadd.f32 %v1189_v16, %v1149_v10  ;;  %1443 = vmatpush1.bf16.msra.mxu0 %v402_v12  ;;  %v595_v12 = vunpack.c.l.s8.bf16 %v155_v1  ;;  %v466_v16 = vunpack.c.l.s8.bf16 %v90_v6  ;;  %v587_v19 = vunpack.c.h.s8.bf16 %v147_v15  ;;  %v146_v10 = vld [vmem:[%s4481_s1 + $0x3a0] sm:$0xff] }
 0x14a   :  { %1484 = vmatpush1.bf16.msra.mxu1 %v530_v13  ;;  %v1151_v32 = vpop.f32.mrf.mxu0  ;;  %1444 = vmatprep.subr.bf16.mxu0 %v395_v17  ;;  %v83_v13 = vld [vmem:[%s4481_s1 + $0x1a8] sm:$0xff]  ;;  %v594_v17 = vunpack.c.l.s8.bf16 %v154_v7  ;;  %v458_v22 = vunpack.c.h.s8.bf16 %v82_v28  ;;  %v586_v23 = vunpack.c.h.s8.bf16 %v146_v10 }
 0x14b   :  { %v1192_v33 = vpop.f32.mrf.mxu1  ;;  %1485 = vmatprep.subr.bf16.mxu1 %v523_v18  ;;  %v459_v18 = vunpack.c.h.s8.bf16 %v83_v13  ;;  %v75_v32 = vld [vmem:[%s4481_s1 + $0x168] sm:$0xff] }
 0x14c   :  { %v139_v33 = vld [vmem:[%s4481_s1 + $0x368] sm:$0xff]  ;;  %v443_v20 = vunpack.c.h.s8.bf16 %v75_v32  ;;  %v435_v42 = vunpack.c.l.s8.bf16 %v75_v32 }
 0x14d   :  { %1445 = vmatpush1.bf16.msra.mxu0 %v394_v25  ;;  %v451_v25 = vunpack.c.l.s8.bf16 %v83_v13  ;;  %v571_v49 = vunpack.c.h.s8.bf16 %v139_v33  ;;  %v563_v43 = vunpack.c.l.s8.bf16 %v139_v33 }
 0x14e   :  { %1486 = vmatpush1.bf16.msra.mxu1 %v522_v29  ;;  %1446 = vmatprep.subr.bf16.mxu0 %v387_v34  ;;  %v579_v29 = vunpack.c.l.s8.bf16 %v147_v15  ;;  %v450_v34 = vunpack.c.l.s8.bf16 %v82_v28 }
 0x14f   :  { %1487 = vmatprep.subr.bf16.mxu1 %v515_v48  ;;  %v578_v48 = vunpack.c.l.s8.bf16 %v146_v10  ;;  %v178_v10 = vld [vmem:[%s4481_s1 + $0x4a0] sm:$0xff] }
 0x151   :  { %1447 = vmatpush1.bf16.msra.mxu0 %v386_v38  ;;  %v74_v38 = vld [vmem:[%s4481_s1 + $0x160] sm:$0xff] }
 0x152   :  { %1488 = vmatpush1.bf16.msra.mxu1 %v514_v39  ;;  %1448 = vmatprep.subr.bf16.mxu0 %v379_v40  ;;  %v138_v39 = vld [vmem:[%s4481_s1 + $0x360] sm:$0xff]  ;;  %v442_v40 = vunpack.c.h.s8.bf16 %v74_v38 }
 0x153   :  { %1489 = vmatprep.subr.bf16.mxu1 %v507_v41  ;;  %v570_v41 = vunpack.c.h.s8.bf16 %v138_v39 }
 0x155   :  { %1449 = vmatpush1.bf16.msra.mxu0 %v378_v44  ;;  %v67_v44 = vld [vmem:[%s4481_s1 + $0x128] sm:$0xff] }
 0x156   :  { %1490 = vmatpush1.bf16.msra.mxu1 %v506_v45  ;;  %1450 = vmatprep.subr.bf16.mxu0 %v371_v50  ;;  %v131_v45 = vld [vmem:[%s4481_s1 + $0x328] sm:$0xff]  ;;  %v434_v50 = vunpack.c.l.s8.bf16 %v74_v38  ;;  %v427_v30 = vunpack.c.h.s8.bf16 %v67_v44  ;;  %v419_v58 = vunpack.c.l.s8.bf16 %v67_v44  ;;  %v642_v38 = vunpack.c.l.s8.bf16 %v178_v10 }
 0x157   :  { %1491 = vmatprep.subr.bf16.mxu1 %v499_v51  ;;  %v562_v51 = vunpack.c.l.s8.bf16 %v138_v39  ;;  %v555_v52 = vunpack.c.h.s8.bf16 %v131_v45  ;;  %v547_v59 = vunpack.c.l.s8.bf16 %v131_v45 }
 0x159   :  { %1451 = vmatpush1.bf16.msra.mxu0 %v370_v31  ;;  %v66_v31 = vld [vmem:[%s4481_s1 + $0x120] sm:$0xff] }
 0x15a   :  { %1492 = vmatpush1.bf16.msra.mxu1 %v498_v53  ;;  %1452 = vmatprep.subr.bf16.mxu0 %v363_v56  ;;  %v130_v53 = vld [vmem:[%s4481_s1 + $0x320] sm:$0xff]  ;;  %v426_v56 = vunpack.c.h.s8.bf16 %v66_v31 }
 0x15b   :  { %1493 = vmatprep.subr.bf16.mxu1 %v491_v57  ;;  %v554_v57 = vunpack.c.h.s8.bf16 %v130_v53 }
 0x15d   :  { %1453 = vmatpush1.bf16.msra.mxu0 %v362_v60  ;;  %v187_v60 = vld [vmem:[%s4481_s1 + $0x4e8] sm:$0xff] }
 0x15e   :  { %1494 = vmatpush1.bf16.msra.mxu1 %v490_v61  ;;  %1454 = vmatprep.subr.bf16.mxu0 %v355_v62  ;;  %v251_v61 = vld [vmem:[%s4481_s1 + $0x6e8] sm:$0xff]  ;;  %v418_v62 = vunpack.c.l.s8.bf16 %v66_v31  ;;  %v667_v0 = vunpack.c.h.s8.bf16 %v187_v60  ;;  %v659_v6 = vunpack.c.l.s8.bf16 %v187_v60 }
 0x15f   :  { %1495 = vmatprep.subr.bf16.mxu1 %v483_v63  ;;  %v546_v63 = vunpack.c.l.s8.bf16 %v130_v53  ;;  %v795_v1 = vunpack.c.h.s8.bf16 %v251_v61  ;;  %v787_v7 = vunpack.c.l.s8.bf16 %v251_v61 }
 0x161   :  { %1455 = vmatpush1.bf16.msra.mxu0 %v354_v2  ;;  %v186_v2 = vld [vmem:[%s4481_s1 + $0x4e0] sm:$0xff] }
 0x162   :  { %1496 = vmatpush1.bf16.msra.mxu1 %v482_v3  ;;  %1456 = vmatprep.subr.bf16.mxu0 %v475_v4  ;;  %v250_v3 = vld [vmem:[%s4481_s1 + $0x6e0] sm:$0xff]  ;;  %v666_v4 = vunpack.c.h.s8.bf16 %v186_v2  ;;  %v658_v15 = vunpack.c.l.s8.bf16 %v186_v2 }
 0x163   :  { %1497 = vmatprep.subr.bf16.mxu1 %v603_v5  ;;  %v794_v5 = vunpack.c.h.s8.bf16 %v250_v3 }
 0x165   :  { %1457 = vmatpush2.bf16.msra.mxu0 %v474_v8  ;;  %v179_v8 = vld [vmem:[%s4481_s1 + $0x4a8] sm:$0xff] }
 0x166   :  { %1498 = vmatpush2.bf16.msra.mxu1 %v602_v9  ;;  %1458 = vmatprep.subr.bf16.mxu0 %v467_v11  ;;  %v243_v9 = vld [vmem:[%s4481_s1 + $0x6a8] sm:$0xff] }
 0x167   :  { %1499 = vmatprep.subr.bf16.mxu1 %v595_v12  ;;  %v779_v28 = vunpack.c.h.s8.bf16 %v243_v9 }
 0x169   :  { %1459 = vmatpush2.bf16.msra.mxu0 %v466_v16  ;;  %v786_v16 = vunpack.c.l.s8.bf16 %v250_v3 }
 0x16a   :  { %1500 = vmatpush2.bf16.msra.mxu1 %v594_v17  ;;  %1460 = vmatprep.subr.bf16.mxu0 %v459_v18 }
 0x16b   :  { %1501 = vmatprep.subr.bf16.mxu1 %v587_v19  ;;  %v651_v19 = vunpack.c.h.s8.bf16 %v179_v8 }
 0x16d   :  { %1461 = vmatpush2.bf16.msra.mxu0 %v458_v22 }
 0x16e   :  { %1502 = vmatpush2.bf16.msra.mxu1 %v586_v23  ;;  %1462 = vmatprep.subr.bf16.mxu0 %v451_v25 }
 0x16f   :  { %1503 = vmatprep.subr.bf16.mxu1 %v579_v29  ;;  %v650_v29 = vunpack.c.h.s8.bf16 %v178_v10 }
 0x171   :  { %1463 = vmatpush2.bf16.msra.mxu0 %v450_v34 }
 0x172   :  { %1504 = vmatpush2.bf16.msra.mxu1 %v578_v48  ;;  %1464 = vmatprep.subr.bf16.mxu0 %v443_v20  ;;  %v643_v48 = vunpack.c.l.s8.bf16 %v179_v8  ;;  %v771_v20 = vunpack.c.l.s8.bf16 %v243_v9 }
 0x173   :  { %1505 = vmatprep.subr.bf16.mxu1 %v571_v49  ;;  %v235_v49 = vld [vmem:[%s4481_s1 + $0x668] sm:$0xff] }
 0x175   :  { %1465 = vmatpush2.bf16.msra.mxu0 %v442_v40 }
 0x176   :  { %1506 = vmatpush2.bf16.msra.mxu1 %v570_v41  ;;  %1466 = vmatprep.subr.bf16.mxu0 %v435_v42  ;;  %v763_v41 = vunpack.c.h.s8.bf16 %v235_v49  ;;  %v170_v42 = vld [vmem:[%s4481_s1 + $0x460] sm:$0xff] }
 0x177   :  { %1507 = vmatprep.subr.bf16.mxu1 %v563_v43  ;;  %v234_v43 = vld [vmem:[%s4481_s1 + $0x660] sm:$0xff]  ;;  %v634_v44 = vunpack.c.h.s8.bf16 %v170_v42  ;;  %v626_v31 = vunpack.c.l.s8.bf16 %v170_v42 }
 0x178   :  { %v762_v45 = vunpack.c.h.s8.bf16 %v234_v43  ;;  %v754_v53 = vunpack.c.l.s8.bf16 %v234_v43 }
 0x179   :  { %1467 = vmatpush2.bf16.msra.mxu0 %v434_v50 }
 0x17a   :  { %1508 = vmatpush2.bf16.msra.mxu1 %v562_v51  ;;  %1468 = vmatprep.subr.bf16.mxu0 %v427_v30  ;;  %v755_v51 = vunpack.c.l.s8.bf16 %v235_v49  ;;  %v163_v30 = vld [vmem:[%s4481_s1 + $0x428] sm:$0xff] }
 0x17b   :  { %1509 = vmatprep.subr.bf16.mxu1 %v555_v52  ;;  %v227_v52 = vld [vmem:[%s4481_s1 + $0x628] sm:$0xff] }
 0x17d   :  { %1469 = vmatpush2.bf16.msra.mxu0 %v426_v56  ;;  %v619_v56 = vunpack.c.h.s8.bf16 %v163_v30 }
 0x17e   :  { %1510 = vmatpush2.bf16.msra.mxu1 %v554_v57  ;;  %1470 = vmatprep.subr.bf16.mxu0 %v419_v58  ;;  %v747_v57 = vunpack.c.h.s8.bf16 %v227_v52  ;;  %v162_v58 = vld [vmem:[%s4481_s1 + $0x420] sm:$0xff] }
 0x17f   :  { %1511 = vmatprep.subr.bf16.mxu1 %v547_v59  ;;  %v226_v59 = vld [vmem:[%s4481_s1 + $0x620] sm:$0xff]  ;;  %v618_v60 = vunpack.c.h.s8.bf16 %v162_v58  ;;  %v610_v2 = vunpack.c.l.s8.bf16 %v162_v58 }
 0x180   :  { %v746_v61 = vunpack.c.h.s8.bf16 %v226_v59  ;;  %v738_v3 = vunpack.c.l.s8.bf16 %v226_v59 }
 0x181   :  { %1471 = vmatpush2.bf16.msra.mxu0 %v418_v62  ;;  %v611_v62 = vunpack.c.l.s8.bf16 %v163_v30 }
 0x182   :  { %1512 = vmatpush2.bf16.msra.mxu1 %v546_v63  ;;  %1522 = vmatprep.subr.bf16.mxu0 %v667_v0  ;;  %v739_v63 = vunpack.c.l.s8.bf16 %v227_v52  ;;  %v219_v0 = vld [vmem:[%s4481_s1 + $0x5e8] sm:$0xff] }
 0x183   :  { %1563 = vmatprep.subr.bf16.mxu1 %v795_v1  ;;  %v283_v1 = vld [vmem:[%s4481_s1 + $0x7e8] sm:$0xff] }
 0x184   :  { %v1228_v11 = vpop.f32.mrf.mxu0  ;;  %1473 = vmatmul.mubr.bf16.vlgmr.msra.gmra.mxu0 %v3225_v46 }
 0x185   :  { %v3786_v12 = vpop.f32.mrf.mxu1  ;;  %1514 = vmatmul.mubr.bf16.vlgmr.msra.gmra.mxu1 %v3229_v47  ;;  %v3791_v13 = vadd.f32 %v1228_v11, %v3689_v21  ;;  %1523 = vmatpush1.bf16.msra.mxu0 %v666_v4  ;;  %v242_v21 = vld [vmem:[%s4481_s1 + $0x6a0] sm:$0xff]  ;;  %v731_v4 = vunpack.c.h.s8.bf16 %v219_v0  ;;  %v723_v11 = vunpack.c.l.s8.bf16 %v219_v0 }
 0x186   :  { %1564 = vmatpush1.bf16.msra.mxu1 %v794_v5  ;;  %v1230_v17 = vpop.f32.mrf.mxu0  ;;  %1524 = vmatprep.subr.bf16.mxu0 %v659_v6  ;;  %v778_v32 = vunpack.c.h.s8.bf16 %v242_v21  ;;  %v770_v39 = vunpack.c.l.s8.bf16 %v242_v21  ;;  %v859_v5 = vunpack.c.h.s8.bf16 %v283_v1  ;;  %v218_v6 = vld [vmem:[%s4481_s1 + $0x5e0] sm:$0xff] }
 0x187   :  { %v3793_v18 = vpop.f32.mrf.mxu1  ;;  %1565 = vmatprep.subr.bf16.mxu1 %v787_v7  ;;  %v3802_v22 = vadd.f32 %v1230_v17, %v3694_v24  ;;  %1554 = vmatprep.mubr.bf16.mxu0 %v3249_v54  ;;  %v171_v24 = vld [vmem:[%s4481_s1 + $0x468] sm:$0xff]  ;;  %v282_v7 = vld [vmem:[%s4481_s1 + $0x7e0] sm:$0xff]  ;;  %v730_v8 = vunpack.c.h.s8.bf16 %v218_v6 }
 0x188   :  { %1595 = vmatprep.mubr.bf16.mxu1 %v3253_v55  ;;  %v1232_v23 = vpop.f32.mrf.mxu0  ;;  %v635_v40 = vunpack.c.h.s8.bf16 %v171_v24  ;;  %v627_v50 = vunpack.c.l.s8.bf16 %v171_v24  ;;  %v858_v9 = vunpack.c.h.s8.bf16 %v282_v7  ;;  %v275_v17 = vld [vmem:[%s4481_s1 + $0x7a8] sm:$0xff] }
 0x189   :  { %v1273_v25 = vpop.f32.mrf.mxu1  ;;  %1525 = vmatpush1.bf16.msra.mxu0 %v658_v15  ;;  %v851_v15 = vunpack.c.l.s8.bf16 %v283_v1  ;;  %v843_v21 = vunpack.c.h.s8.bf16 %v275_v17  ;;  %v210_v23 = vld [vmem:[%s4481_s1 + $0x5a0] sm:$0xff] }
 0x18a   :  { %1566 = vmatpush1.bf16.msra.mxu1 %v786_v16  ;;  %v1233_v33 = vpop.f32.mrf.mxu0  ;;  %1526 = vmatprep.subr.bf16.mxu0 %v651_v19  ;;  %v211_v16 = vld [vmem:[%s4481_s1 + $0x5a8] sm:$0xff]  ;;  %v722_v19 = vunpack.c.l.s8.bf16 %v218_v6  ;;  %v274_v25 = vld [vmem:[%s4481_s1 + $0x7a0] sm:$0xff]  ;;  %v706_v24 = vunpack.c.l.s8.bf16 %v210_v23 }
 0x18b   :  { %v1274_v34 = vpop.f32.mrf.mxu1  ;;  %1567 = vmatprep.subr.bf16.mxu1 %v779_v28  ;;  %v850_v28 = vunpack.c.l.s8.bf16 %v282_v7  ;;  %v715_v10 = vunpack.c.h.s8.bf16 %v211_v16  ;;  %v707_v33 = vunpack.c.l.s8.bf16 %v211_v16  ;;  %v834_v49 = vunpack.c.l.s8.bf16 %v274_v25 }
 0x18c   :  { %v835_v34 = vunpack.c.l.s8.bf16 %v275_v17 }
 0x18d   :  { %1527 = vmatpush1.bf16.msra.mxu0 %v650_v29  ;;  %v714_v29 = vunpack.c.h.s8.bf16 %v210_v23 }
 0x18e   :  { %1568 = vmatpush1.bf16.msra.mxu1 %v778_v32  ;;  %1528 = vmatprep.subr.bf16.mxu0 %v643_v48  ;;  %v842_v32 = vunpack.c.h.s8.bf16 %v274_v25  ;;  %v203_v48 = vld [vmem:[%s4481_s1 + $0x568] sm:$0xff] }
 0x18f   :  { %1569 = vmatprep.subr.bf16.mxu1 %v771_v20  ;;  %v267_v20 = vld [vmem:[%s4481_s1 + $0x768] sm:$0xff] }
 0x191   :  { %1529 = vmatpush1.bf16.msra.mxu0 %v642_v38  ;;  %v699_v38 = vunpack.c.h.s8.bf16 %v203_v48 }
 0x192   :  { %1570 = vmatpush1.bf16.msra.mxu1 %v770_v39  ;;  %1530 = vmatprep.subr.bf16.mxu0 %v635_v40  ;;  %v827_v39 = vunpack.c.h.s8.bf16 %v267_v20  ;;  %v202_v40 = vld [vmem:[%s4481_s1 + $0x560] sm:$0xff] }
 0x193   :  { %1571 = vmatprep.subr.bf16.mxu1 %v763_v41  ;;  %v266_v41 = vld [vmem:[%s4481_s1 + $0x760] sm:$0xff]  ;;  %v698_v42 = vunpack.c.h.s8.bf16 %v202_v40  ;;  %v690_v30 = vunpack.c.l.s8.bf16 %v202_v40 }
 0x194   :  { %v826_v43 = vunpack.c.h.s8.bf16 %v266_v41  ;;  %v818_v52 = vunpack.c.l.s8.bf16 %v266_v41 }
 0x195   :  { %1531 = vmatpush1.bf16.msra.mxu0 %v634_v44  ;;  %v691_v44 = vunpack.c.l.s8.bf16 %v203_v48 }
 0x196   :  { %1572 = vmatpush1.bf16.msra.mxu1 %v762_v45  ;;  %1532 = vmatprep.subr.bf16.mxu0 %v627_v50  ;;  %v819_v45 = vunpack.c.l.s8.bf16 %v267_v20  ;;  %v195_v50 = vld [vmem:[%s4481_s1 + $0x528] sm:$0xff] }
 0x197   :  { %1573 = vmatprep.subr.bf16.mxu1 %v755_v51  ;;  %v259_v51 = vld [vmem:[%s4481_s1 + $0x728] sm:$0xff] }
 0x199   :  { %1533 = vmatpush1.bf16.msra.mxu0 %v626_v31  ;;  %v683_v31 = vunpack.c.h.s8.bf16 %v195_v50 }
 0x19a   :  { %1574 = vmatpush1.bf16.msra.mxu1 %v754_v53  ;;  %1534 = vmatprep.subr.bf16.mxu0 %v619_v56  ;;  %v811_v53 = vunpack.c.h.s8.bf16 %v259_v51  ;;  %v194_v56 = vld [vmem:[%s4481_s1 + $0x520] sm:$0xff] }
 0x19b   :  { %1575 = vmatprep.subr.bf16.mxu1 %v747_v57  ;;  %v258_v57 = vld [vmem:[%s4481_s1 + $0x720] sm:$0xff]  ;;  %v682_v58 = vunpack.c.h.s8.bf16 %v194_v56  ;;  %v674_v0 = vunpack.c.l.s8.bf16 %v194_v56 }
 0x19c   :  { %v810_v59 = vunpack.c.h.s8.bf16 %v258_v57  ;;  %v802_v1 = vunpack.c.l.s8.bf16 %v258_v57  ;;  %v291_v57 = vld [vmem:[%s4481_s1 + $0x828] sm:$0xff] }
 0x19d   :  { %1535 = vmatpush1.bf16.msra.mxu0 %v618_v60  ;;  %v675_v60 = vunpack.c.l.s8.bf16 %v195_v50 }
 0x19e   :  { %1576 = vmatpush1.bf16.msra.mxu1 %v746_v61  ;;  %1536 = vmatprep.subr.bf16.mxu0 %v611_v62  ;;  %v803_v61 = vunpack.c.l.s8.bf16 %v259_v51  ;;  %v315_v62 = vld [vmem:[%s4481_s1 + $0x8e8] sm:$0xff]  ;;  %v298_v51 = vld [vmem:[%s4481_s1 + $0x860] sm:$0xff] }
 0x19f   :  { %1577 = vmatprep.subr.bf16.mxu1 %v739_v63  ;;  %v61_v63 = vld [vmem:[%s4481_s1 + $0xf8] sm:$0xff] }
 0x1a1   :  { %1537 = vmatpush1.bf16.msra.mxu0 %v610_v2  ;;  %v923_v2 = vunpack.c.h.s8.bf16 %v315_v62 }
 0x1a2   :  { %1578 = vmatpush1.bf16.msra.mxu1 %v738_v3  ;;  %1538 = vmatprep.subr.bf16.mxu0 %v731_v4  ;;  %v413_v3 = vunpack.c.h.s8.bf16 %v61_v63  ;;  %v314_v4 = vld [vmem:[%s4481_s1 + $0x8e0] sm:$0xff] }
 0x1a3   :  { %1579 = vmatprep.subr.bf16.mxu1 %v859_v5  ;;  %v60_v5 = vld [vmem:[%s4481_s1 + $0xf0] sm:$0xff]  ;;  %v922_v6 = vunpack.c.h.s8.bf16 %v314_v4 }
 0x1a4   :  { %v412_v7 = vunpack.c.h.s8.bf16 %v60_v5 }
 0x1a5   :  { %1539 = vmatpush2.bf16.msra.mxu0 %v730_v8  ;;  %v915_v8 = vunpack.c.l.s8.bf16 %v315_v62 }
 0x1a6   :  { %1580 = vmatpush2.bf16.msra.mxu1 %v858_v9  ;;  %1540 = vmatprep.subr.bf16.mxu0 %v723_v11  ;;  %v405_v9 = vunpack.c.l.s8.bf16 %v61_v63  ;;  %v307_v11 = vld [vmem:[%s4481_s1 + $0x8a8] sm:$0xff]  ;;  %v290_v63 = vld [vmem:[%s4481_s1 + $0x820] sm:$0xff] }
 0x1a7   :  { %1581 = vmatprep.subr.bf16.mxu1 %v851_v15  ;;  %v53_v15 = vld [vmem:[%s4481_s1 + $0xb8] sm:$0xff]  ;;  %v907_v25 = vunpack.c.h.s8.bf16 %v307_v11  ;;  %v899_v41 = vunpack.c.l.s8.bf16 %v307_v11 }
 0x1a9   :  { %1541 = vmatpush2.bf16.msra.mxu0 %v722_v19 }
 0x1aa   :  { %1582 = vmatpush2.bf16.msra.mxu1 %v850_v28  ;;  %1542 = vmatprep.subr.bf16.mxu0 %v715_v10  ;;  %v914_v28 = vunpack.c.l.s8.bf16 %v314_v4  ;;  %v404_v10 = vunpack.c.l.s8.bf16 %v60_v5  ;;  %v347_v5 = vld [vmem:[%s4481_s1 + $0x9e8] sm:$0xff] }
 0x1ab   :  { %1583 = vmatprep.subr.bf16.mxu1 %v843_v21 }
 0x1ad   :  { %1543 = vmatpush2.bf16.msra.mxu0 %v714_v29  ;;  %v397_v29 = vunpack.c.h.s8.bf16 %v53_v15 }
 0x1ae   :  { %1584 = vmatpush2.bf16.msra.mxu1 %v842_v32  ;;  %1544 = vmatprep.subr.bf16.mxu0 %v707_v33  ;;  %v306_v32 = vld [vmem:[%s4481_s1 + $0x8a0] sm:$0xff]  ;;  %v52_v33 = vld [vmem:[%s4481_s1 + $0xb0] sm:$0xff] }
 0x1af   :  { %1585 = vmatprep.subr.bf16.mxu1 %v835_v34 }
 0x1b1   :  { %1545 = vmatpush2.bf16.msra.mxu0 %v706_v24 }
 0x1b2   :  { %1586 = vmatpush2.bf16.msra.mxu1 %v834_v49  ;;  %1546 = vmatprep.subr.bf16.mxu0 %v699_v38  ;;  %v906_v49 = vunpack.c.h.s8.bf16 %v306_v32  ;;  %v396_v38 = vunpack.c.h.s8.bf16 %v52_v33 }
 0x1b3   :  { %1587 = vmatprep.subr.bf16.mxu1 %v827_v39 }
 0x1b5   :  { %1547 = vmatpush2.bf16.msra.mxu0 %v698_v42  ;;  %v389_v42 = vunpack.c.l.s8.bf16 %v53_v15  ;;  %v346_v15 = vld [vmem:[%s4481_s1 + $0x9e0] sm:$0xff] }
 0x1b6   :  { %1588 = vmatpush2.bf16.msra.mxu1 %v826_v43  ;;  %1548 = vmatprep.subr.bf16.mxu0 %v691_v44  ;;  %v898_v43 = vunpack.c.l.s8.bf16 %v306_v32  ;;  %v388_v44 = vunpack.c.l.s8.bf16 %v52_v33 }
 0x1b7   :  { %1589 = vmatprep.subr.bf16.mxu1 %v819_v45 }
 0x1b9   :  { %1549 = vmatpush2.bf16.msra.mxu0 %v690_v30  ;;  %v44_v30 = vld [vmem:[%s4481_s1 + $0x70] sm:$0xff] }
 0x1ba   :  { %1590 = vmatpush2.bf16.msra.mxu1 %v818_v52  ;;  %1550 = vmatprep.subr.bf16.mxu0 %v683_v31  ;;  %v890_v52 = vunpack.c.h.s8.bf16 %v298_v51  ;;  %v380_v31 = vunpack.c.h.s8.bf16 %v44_v30 }
 0x1bb   :  { %1591 = vmatprep.subr.bf16.mxu1 %v811_v53 }
 0x1bd   :  { %1551 = vmatpush2.bf16.msra.mxu0 %v682_v58  ;;  %v37_v58 = vld [vmem:[%s4481_s1 + $0x38] sm:$0xff] }
 0x1be   :  { %1592 = vmatpush2.bf16.msra.mxu1 %v810_v59  ;;  %1552 = vmatprep.subr.bf16.mxu0 %v675_v60  ;;  %v882_v59 = vunpack.c.l.s8.bf16 %v298_v51  ;;  %v372_v60 = vunpack.c.l.s8.bf16 %v44_v30  ;;  %v365_v62 = vunpack.c.h.s8.bf16 %v37_v58  ;;  %v357_v4 = vunpack.c.l.s8.bf16 %v37_v58 }
 0x1bf   :  { %1593 = vmatprep.subr.bf16.mxu1 %v803_v61  ;;  %v875_v61 = vunpack.c.h.s8.bf16 %v291_v57 }
 0x1c1   :  { %1553 = vmatpush2.bf16.msra.mxu0 %v674_v0  ;;  %v36_v0 = vld [vmem:[%s4481_s1 + $0x30] sm:$0xff] }
 0x1c2   :  { %1594 = vmatpush2.bf16.msra.mxu1 %v802_v1  ;;  %1604 = vmatprep.subr.bf16.mxu0 %v923_v2  ;;  %v874_v1 = vunpack.c.h.s8.bf16 %v290_v63  ;;  %v364_v2 = vunpack.c.h.s8.bf16 %v36_v0 }
 0x1c3   :  { %1645 = vmatprep.subr.bf16.mxu1 %v413_v3  ;;  %v867_v3 = vunpack.c.l.s8.bf16 %v291_v57 }
 0x1c4   :  { %v1310_v16 = vpop.f32.mrf.mxu0  ;;  %1555 = vmatmul.mubr.bf16.vlgmr.msra.gmra.mxu0 %v3351_v26 }
 0x1c5   :  { %v1351_v17 = vpop.f32.mrf.mxu1  ;;  %1596 = vmatmul.mubr.bf16.vlgmr.msra.gmra.mxu1 %v3355_v27  ;;  %v1311_v19 = vadd.f32 %v1310_v16, %v3786_v12  ;;  %1605 = vmatpush1.bf16.msra.mxu0 %v922_v6  ;;  %v93_v6 = vld [vmem:[%s4481_s1 + $0x1f8] sm:$0xff]  ;;  %v92_v16 = vld [vmem:[%s4481_s1 + $0x1f0] sm:$0xff] }
 0x1c6   :  { %1646 = vmatpush1.bf16.msra.mxu1 %v412_v7  ;;  %v1312_v21 = vpop.f32.mrf.mxu0  ;;  %1606 = vmatprep.subr.bf16.mxu0 %v915_v8  ;;  %v866_v7 = vunpack.c.l.s8.bf16 %v290_v63  ;;  %v356_v8 = vunpack.c.l.s8.bf16 %v36_v0  ;;  %v477_v11 = vunpack.c.h.s8.bf16 %v93_v6 }
 0x1c7   :  { %v1353_v23 = vpop.f32.mrf.mxu1  ;;  %1647 = vmatprep.subr.bf16.mxu1 %v405_v9  ;;  %v3905_v34 = vadd.f32 %v1351_v17, %v1311_v19  ;;  %v1313_v12 = vadd.f32 %v1312_v21, %v3793_v18  ;;  %1636 = vmatprep.mubr.bf16.mxu0 %v3370_v35  ;;  %v299_v18 = vld [vmem:[%s4481_s1 + $0x868] sm:$0xff]  ;;  %v987_v9 = vunpack.c.h.s8.bf16 %v347_v5  ;;  %v986_v17 = vunpack.c.h.s8.bf16 %v346_v15 }
 0x1c8   :  { %1677 = vmatprep.mubr.bf16.mxu1 %v3143_v36  ;;  %v1314_v48 = vpop.f32.mrf.mxu0  ;;  %v45_v36 = vld [vmem:[%s4481_s1 + $0x78] sm:$0xff]  ;;  %v891_v45 = vunpack.c.h.s8.bf16 %v299_v18  ;;  %v883_v53 = vunpack.c.l.s8.bf16 %v299_v18  ;;  %v476_v19 = vunpack.c.h.s8.bf16 %v92_v16  ;;  %v339_v21 = vld [vmem:[%s4481_s1 + $0x9a8] sm:$0xff] }
 0x1c9   :  { %v1355_v20 = vpop.f32.mrf.mxu1  ;;  %v3910_v24 = vadd.f32 %v1353_v23, %v1313_v12  ;;  %1607 = vmatpush1.bf16.msra.mxu0 %v914_v28  ;;  %v381_v50 = vunpack.c.h.s8.bf16 %v45_v36  ;;  %v373_v56 = vunpack.c.l.s8.bf16 %v45_v36  ;;  %v979_v28 = vunpack.c.l.s8.bf16 %v347_v5  ;;  %v85_v23 = vld [vmem:[%s4481_s1 + $0x1b8] sm:$0xff]  ;;  %v338_v12 = vld [vmem:[%s4481_s1 + $0x9a0] sm:$0xff]  ;;  %v84_v48 = vld [vmem:[%s4481_s1 + $0x1b0] sm:$0xff] }
 0x1ca   :  { %1648 = vmatpush1.bf16.msra.mxu1 %v404_v10  ;;  %v1315_v39 = vpop.f32.mrf.mxu0  ;;  %1608 = vmatprep.subr.bf16.mxu0 %v907_v25  ;;  %v469_v10 = vunpack.c.l.s8.bf16 %v93_v6  ;;  %v978_v25 = vunpack.c.l.s8.bf16 %v346_v15  ;;  %v971_v32 = vunpack.c.h.s8.bf16 %v339_v21  ;;  %v461_v33 = vunpack.c.h.s8.bf16 %v85_v23 }
 0x1cb   :  { %v1356_v40 = vpop.f32.mrf.mxu1  ;;  %1649 = vmatprep.subr.bf16.mxu1 %v397_v29  ;;  %v468_v29 = vunpack.c.l.s8.bf16 %v92_v16  ;;  %v970_v20 = vunpack.c.h.s8.bf16 %v338_v12  ;;  %v453_v39 = vunpack.c.l.s8.bf16 %v85_v23  ;;  %v452_v18 = vunpack.c.l.s8.bf16 %v84_v48  ;;  %v116_v23 = vld [vmem:[%s4481_s1 + $0x2b0] sm:$0xff] }
 0x1cc   :  { %v331_v40 = vld [vmem:[%s4481_s1 + $0x968] sm:$0xff] }
 0x1cd   :  { %1609 = vmatpush1.bf16.msra.mxu0 %v906_v49  ;;  %v460_v49 = vunpack.c.h.s8.bf16 %v84_v48  ;;  %v955_v36 = vunpack.c.h.s8.bf16 %v331_v40  ;;  %v947_v30 = vunpack.c.l.s8.bf16 %v331_v40 }
 0x1ce   :  { %1650 = vmatpush1.bf16.msra.mxu1 %v396_v38  ;;  %1610 = vmatprep.subr.bf16.mxu0 %v899_v41  ;;  %v963_v38 = vunpack.c.l.s8.bf16 %v339_v21  ;;  %v77_v41 = vld [vmem:[%s4481_s1 + $0x178] sm:$0xff] }
 0x1cf   :  { %1651 = vmatprep.subr.bf16.mxu1 %v389_v42  ;;  %v962_v42 = vunpack.c.l.s8.bf16 %v338_v12 }
 0x1d1   :  { %1611 = vmatpush1.bf16.msra.mxu0 %v898_v43  ;;  %v445_v43 = vunpack.c.h.s8.bf16 %v77_v41 }
 0x1d2   :  { %1652 = vmatpush1.bf16.msra.mxu1 %v388_v44  ;;  %1612 = vmatprep.subr.bf16.mxu0 %v891_v45  ;;  %v330_v44 = vld [vmem:[%s4481_s1 + $0x960] sm:$0xff]  ;;  %v76_v45 = vld [vmem:[%s4481_s1 + $0x170] sm:$0xff] }
 0x1d3   :  { %1653 = vmatprep.subr.bf16.mxu1 %v381_v50  ;;  %v954_v50 = vunpack.c.h.s8.bf16 %v330_v44  ;;  %v444_v51 = vunpack.c.h.s8.bf16 %v76_v45  ;;  %v436_v57 = vunpack.c.l.s8.bf16 %v76_v45 }
 0x1d5   :  { %1613 = vmatpush1.bf16.msra.mxu0 %v890_v52  ;;  %v437_v52 = vunpack.c.l.s8.bf16 %v77_v41  ;;  %v524_v41 = vunpack.c.h.s8.bf16 %v116_v23 }
 0x1d6   :  { %1654 = vmatpush1.bf16.msra.mxu1 %v380_v31  ;;  %1614 = vmatprep.subr.bf16.mxu0 %v883_v53  ;;  %v323_v31 = vld [vmem:[%s4481_s1 + $0x928] sm:$0xff]  ;;  %v69_v53 = vld [vmem:[%s4481_s1 + $0x138] sm:$0xff] }
 0x1d7   :  { %1655 = vmatprep.subr.bf16.mxu1 %v373_v56  ;;  %v946_v56 = vunpack.c.l.s8.bf16 %v330_v44  ;;  %v939_v58 = vunpack.c.h.s8.bf16 %v323_v31  ;;  %v931_v0 = vunpack.c.l.s8.bf16 %v323_v31 }
 0x1d9   :  { %1615 = vmatpush1.bf16.msra.mxu0 %v882_v59  ;;  %v429_v59 = vunpack.c.h.s8.bf16 %v69_v53 }
 0x1da   :  { %1656 = vmatpush1.bf16.msra.mxu1 %v372_v60  ;;  %1616 = vmatprep.subr.bf16.mxu0 %v875_v61  ;;  %v322_v60 = vld [vmem:[%s4481_s1 + $0x920] sm:$0xff]  ;;  %v68_v61 = vld [vmem:[%s4481_s1 + $0x130] sm:$0xff] }
 0x1db   :  { %1657 = vmatprep.subr.bf16.mxu1 %v365_v62  ;;  %v938_v62 = vunpack.c.h.s8.bf16 %v322_v60  ;;  %v428_v63 = vunpack.c.h.s8.bf16 %v68_v61  ;;  %v420_v5 = vunpack.c.l.s8.bf16 %v68_v61 }
 0x1dd   :  { %1617 = vmatpush1.bf16.msra.mxu0 %v874_v1  ;;  %v421_v1 = vunpack.c.l.s8.bf16 %v69_v53 }
 0x1de   :  { %1658 = vmatpush1.bf16.msra.mxu1 %v364_v2  ;;  %1618 = vmatprep.subr.bf16.mxu0 %v867_v3  ;;  %v125_v2 = vld [vmem:[%s4481_s1 + $0x2f8] sm:$0xff] }
 0x1df   :  { %1659 = vmatprep.subr.bf16.mxu1 %v357_v4  ;;  %v189_v3 = vld [vmem:[%s4481_s1 + $0x4f8] sm:$0xff]  ;;  %v930_v4 = vunpack.c.l.s8.bf16 %v322_v60  ;;  %v541_v6 = vunpack.c.h.s8.bf16 %v125_v2  ;;  %v533_v16 = vunpack.c.l.s8.bf16 %v125_v2 }
 0x1e1   :  { %1619 = vmatpush1.bf16.msra.mxu0 %v866_v7  ;;  %v669_v7 = vunpack.c.h.s8.bf16 %v189_v3 }
 0x1e2   :  { %1660 = vmatpush1.bf16.msra.mxu1 %v356_v8  ;;  %1620 = vmatprep.subr.bf16.mxu0 %v987_v9  ;;  %v124_v8 = vld [vmem:[%s4481_s1 + $0x2f0] sm:$0xff] }
 0x1e3   :  { %1661 = vmatprep.subr.bf16.mxu1 %v477_v11  ;;  %v188_v9 = vld [vmem:[%s4481_s1 + $0x4f0] sm:$0xff]  ;;  %v540_v11 = vunpack.c.h.s8.bf16 %v124_v8 }
 0x1e4   :  { %v668_v15 = vunpack.c.h.s8.bf16 %v188_v9 }
 0x1e5   :  { %1621 = vmatpush2.bf16.msra.mxu0 %v986_v17  ;;  %v661_v17 = vunpack.c.l.s8.bf16 %v189_v3 }
 0x1e6   :  { %1662 = vmatpush2.bf16.msra.mxu1 %v476_v19  ;;  %1622 = vmatprep.subr.bf16.mxu0 %v979_v28  ;;  %v117_v19 = vld [vmem:[%s4481_s1 + $0x2b8] sm:$0xff] }
 0x1e7   :  { %1663 = vmatprep.subr.bf16.mxu1 %v469_v10  ;;  %v181_v28 = vld [vmem:[%s4481_s1 + $0x4b8] sm:$0xff] }
 0x1e8   :  { %v645_v44 = vunpack.c.l.s8.bf16 %v181_v28 }
 0x1e9   :  { %1623 = vmatpush2.bf16.msra.mxu0 %v978_v25 }
 0x1ea   :  { %1664 = vmatpush2.bf16.msra.mxu1 %v468_v29  ;;  %1624 = vmatprep.subr.bf16.mxu0 %v971_v32  ;;  %v532_v29 = vunpack.c.l.s8.bf16 %v124_v8  ;;  %v660_v32 = vunpack.c.l.s8.bf16 %v188_v9 }
 0x1eb   :  { %1665 = vmatprep.subr.bf16.mxu1 %v461_v33  ;;  %v180_v33 = vld [vmem:[%s4481_s1 + $0x4b0] sm:$0xff] }
 0x1ec   :  { %v644_v45 = vunpack.c.l.s8.bf16 %v180_v33 }
 0x1ed   :  { %1625 = vmatpush2.bf16.msra.mxu0 %v970_v20  ;;  %v525_v20 = vunpack.c.h.s8.bf16 %v117_v19 }
 0x1ee   :  { %1666 = vmatpush2.bf16.msra.mxu1 %v460_v49  ;;  %1626 = vmatprep.subr.bf16.mxu0 %v963_v38 }
 0x1ef   :  { %1667 = vmatprep.subr.bf16.mxu1 %v453_v39 }
 0x1f1   :  { %1627 = vmatpush2.bf16.msra.mxu0 %v962_v42  ;;  %v652_v42 = vunpack.c.h.s8.bf16 %v180_v33  ;;  %v148_v33 = vld [vmem:[%s4481_s1 + $0x3b0] sm:$0xff] }
 0x1f2   :  { %1668 = vmatpush2.bf16.msra.mxu1 %v452_v18  ;;  %1628 = vmatprep.subr.bf16.mxu0 %v955_v36 }
 0x1f3   :  { %1669 = vmatprep.subr.bf16.mxu1 %v445_v43  ;;  %v517_v43 = vunpack.c.l.s8.bf16 %v117_v19 }
 0x1f5   :  { %1629 = vmatpush2.bf16.msra.mxu0 %v954_v50  ;;  %v108_v50 = vld [vmem:[%s4481_s1 + $0x270] sm:$0xff] }
 0x1f6   :  { %1670 = vmatpush2.bf16.msra.mxu1 %v444_v51  ;;  %1630 = vmatprep.subr.bf16.mxu0 %v947_v30  ;;  %v508_v31 = vunpack.c.h.s8.bf16 %v108_v50  ;;  %v500_v60 = vunpack.c.l.s8.bf16 %v108_v50  ;;  %v133_v50 = vld [vmem:[%s4481_s1 + $0x338] sm:$0xff] }
 0x1f7   :  { %1671 = vmatprep.subr.bf16.mxu1 %v437_v52  ;;  %v172_v52 = vld [vmem:[%s4481_s1 + $0x470] sm:$0xff] }
 0x1f8   :  { %v636_v53 = vunpack.c.h.s8.bf16 %v172_v52  ;;  %v628_v61 = vunpack.c.l.s8.bf16 %v172_v52  ;;  %v197_v52 = vld [vmem:[%s4481_s1 + $0x538] sm:$0xff] }
 0x1f9   :  { %1631 = vmatpush2.bf16.msra.mxu0 %v946_v56 }
 0x1fa   :  { %1672 = vmatpush2.bf16.msra.mxu1 %v436_v57  ;;  %1632 = vmatprep.subr.bf16.mxu0 %v939_v58  ;;  %v101_v58 = vld [vmem:[%s4481_s1 + $0x238] sm:$0xff] }
 0x1fb   :  { %1673 = vmatprep.subr.bf16.mxu1 %v429_v59  ;;  %v165_v59 = vld [vmem:[%s4481_s1 + $0x438] sm:$0xff] }
 0x1fd   :  { %1633 = vmatpush2.bf16.msra.mxu0 %v938_v62  ;;  %v100_v62 = vld [vmem:[%s4481_s1 + $0x230] sm:$0xff] }
 0x1fe   :  { %1674 = vmatpush2.bf16.msra.mxu1 %v428_v63  ;;  %1634 = vmatprep.subr.bf16.mxu0 %v931_v0  ;;  %v493_v63 = vunpack.c.h.s8.bf16 %v101_v58  ;;  %v621_v0 = vunpack.c.h.s8.bf16 %v165_v59  ;;  %v492_v2 = vunpack.c.h.s8.bf16 %v100_v62  ;;  %v484_v8 = vunpack.c.l.s8.bf16 %v100_v62 }
 0x1ff   :  { %1675 = vmatprep.subr.bf16.mxu1 %v421_v1  ;;  %v164_v1 = vld [vmem:[%s4481_s1 + $0x430] sm:$0xff]  ;;  %v549_v62 = vunpack.c.l.s8.bf16 %v133_v50 }
 0x200   :  { %v620_v3 = vunpack.c.h.s8.bf16 %v164_v1  ;;  %v612_v9 = vunpack.c.l.s8.bf16 %v164_v1  ;;  %v317_v1 = vld [vmem:[%s4481_s1 + $0x8f8] sm:$0xff] }
 0x201   :  { %1635 = vmatpush2.bf16.msra.mxu0 %v930_v4  ;;  %v485_v4 = vunpack.c.l.s8.bf16 %v101_v58  ;;  %v557_v58 = vunpack.c.h.s8.bf16 %v133_v50 }
 0x202   :  { %1676 = vmatpush2.bf16.msra.mxu1 %v420_v5  ;;  %1686 = vmatprep.subr.bf16.mxu0 %v541_v6  ;;  %v613_v5 = vunpack.c.l.s8.bf16 %v165_v59  ;;  %v157_v6 = vld [vmem:[%s4481_s1 + $0x3f8] sm:$0xff]  ;;  %v685_v59 = vunpack.c.h.s8.bf16 %v197_v52 }
 0x203   :  { %1727 = vmatprep.subr.bf16.mxu1 %v669_v7  ;;  %v221_v7 = vld [vmem:[%s4481_s1 + $0x5f8] sm:$0xff] }
 0x204   :  { %v1392_v10 = vpop.f32.mrf.mxu0  ;;  %1637 = vmatmul.mubr.bf16.vlgmr.msra.gmra.mxu0 %v3468_v14 }
 0x205   :  { %v1433_v21 = vpop.f32.mrf.mxu1  ;;  %1678 = vmatmul.mubr.bf16.vlgmr.msra.gmra.mxu1 %v3225_v46  ;;  %v1393_v25 = vadd.f32 %v1392_v10, %v3905_v34  ;;  %1687 = vmatpush1.bf16.msra.mxu0 %v540_v11  ;;  %v653_v46 = vunpack.c.h.s8.bf16 %v181_v28  ;;  %v156_v11 = vld [vmem:[%s4481_s1 + $0x3f0] sm:$0xff]  ;;  %v149_v10 = vld [vmem:[%s4481_s1 + $0x3b8] sm:$0xff] }
 0x206   :  { %1728 = vmatpush1.bf16.msra.mxu1 %v668_v15  ;;  %v1394_v12 = vpop.f32.mrf.mxu0  ;;  %1688 = vmatprep.subr.bf16.mxu0 %v533_v16  ;;  %v605_v15 = vunpack.c.h.s8.bf16 %v157_v6  ;;  %v733_v16 = vunpack.c.h.s8.bf16 %v221_v7  ;;  %v604_v19 = vunpack.c.h.s8.bf16 %v156_v11 }
 0x207   :  { %v1435_v48 = vpop.f32.mrf.mxu1  ;;  %1729 = vmatprep.subr.bf16.mxu1 %v661_v17  ;;  %v4011_v49 = vadd.f32 %v1433_v21, %v1393_v25  ;;  %v1395_v38 = vadd.f32 %v1394_v12, %v3910_v24  ;;  %1718 = vmatprep.mubr.bf16.mxu0 %v3147_v37  ;;  %v109_v37 = vld [vmem:[%s4481_s1 + $0x278] sm:$0xff]  ;;  %v516_v24 = vunpack.c.l.s8.bf16 %v116_v23  ;;  %v220_v17 = vld [vmem:[%s4481_s1 + $0x5f0] sm:$0xff]  ;;  %v597_v23 = vunpack.c.l.s8.bf16 %v157_v6 }
 0x208   :  { %1759 = vmatprep.mubr.bf16.mxu1 %v3249_v54  ;;  %v1396_v34 = vpop.f32.mrf.mxu0  ;;  %v173_v54 = vld [vmem:[%s4481_s1 + $0x478] sm:$0xff]  ;;  %v509_v51 = vunpack.c.h.s8.bf16 %v109_v37  ;;  %v501_v56 = vunpack.c.l.s8.bf16 %v109_v37  ;;  %v732_v28 = vunpack.c.h.s8.bf16 %v220_v17  ;;  %v725_v25 = vunpack.c.l.s8.bf16 %v221_v7  ;;  %v252_v6 = vld [vmem:[%s4481_s1 + $0x6f0] sm:$0xff] }
 0x209   :  { %v1437_v39 = vpop.f32.mrf.mxu1  ;;  %v4016_v40 = vadd.f32 %v1435_v48, %v1395_v38  ;;  %1689 = vmatpush1.bf16.msra.mxu0 %v532_v29  ;;  %v637_v30 = vunpack.c.h.s8.bf16 %v173_v54  ;;  %v629_v57 = vunpack.c.l.s8.bf16 %v173_v54  ;;  %v213_v21 = vld [vmem:[%s4481_s1 + $0x5b8] sm:$0xff]  ;;  %v596_v29 = vunpack.c.l.s8.bf16 %v156_v11  ;;  %v204_v54 = vld [vmem:[%s4481_s1 + $0x570] sm:$0xff] }
 0x20a   :  { %1730 = vmatpush1.bf16.msra.mxu1 %v660_v32  ;;  %v1397_v18 = vpop.f32.mrf.mxu0  ;;  %1690 = vmatprep.subr.bf16.mxu0 %v525_v20  ;;  %v724_v32 = vunpack.c.l.s8.bf16 %v220_v17  ;;  %v589_v12 = vunpack.c.h.s8.bf16 %v149_v10  ;;  %v717_v48 = vunpack.c.h.s8.bf16 %v213_v21  ;;  %v212_v20 = vld [vmem:[%s4481_s1 + $0x5b0] sm:$0xff]  ;;  %v141_v34 = vld [vmem:[%s4481_s1 + $0x378] sm:$0xff]  ;;  %v581_v39 = vunpack.c.l.s8.bf16 %v149_v10 }
 0x20b   :  { %v1438_v36 = vpop.f32.mrf.mxu1  ;;  %1731 = vmatprep.subr.bf16.mxu1 %v653_v46  ;;  %v588_v46 = vunpack.c.h.s8.bf16 %v148_v33  ;;  %v716_v38 = vunpack.c.h.s8.bf16 %v212_v20  ;;  %v580_v18 = vunpack.c.l.s8.bf16 %v148_v33  ;;  %v316_v7 = vld [vmem:[%s4481_s1 + $0x8f0] sm:$0xff]  ;;  %v309_v17 = vld [vmem:[%s4481_s1 + $0x8b8] sm:$0xff] }
 0x20c   :  { %v708_v36 = vunpack.c.l.s8.bf16 %v212_v20  ;;  %v909_v33 = vunpack.c.h.s8.bf16 %v309_v17 }
 0x20d   :  { %1691 = vmatpush1.bf16.msra.mxu0 %v524_v41  ;;  %v709_v41 = vunpack.c.l.s8.bf16 %v213_v21  ;;  %v788_v21 = vunpack.c.l.s8.bf16 %v252_v6 }
 0x20e   :  { %1732 = vmatpush1.bf16.msra.mxu1 %v652_v42  ;;  %1692 = vmatprep.subr.bf16.mxu0 %v517_v43  ;;  %v205_v42 = vld [vmem:[%s4481_s1 + $0x578] sm:$0xff]  ;;  %v140_v43 = vld [vmem:[%s4481_s1 + $0x370] sm:$0xff] }
 0x20f   :  { %1733 = vmatprep.subr.bf16.mxu1 %v645_v44  ;;  %v573_v44 = vunpack.c.h.s8.bf16 %v141_v34  ;;  %v701_v37 = vunpack.c.h.s8.bf16 %v205_v42 }
 0x211   :  { %1693 = vmatpush1.bf16.msra.mxu0 %v516_v24  ;;  %v572_v24 = vunpack.c.h.s8.bf16 %v140_v43 }
 0x212   :  { %1734 = vmatpush1.bf16.msra.mxu1 %v644_v45  ;;  %1694 = vmatprep.subr.bf16.mxu0 %v509_v51  ;;  %v700_v45 = vunpack.c.h.s8.bf16 %v204_v54  ;;  %v565_v51 = vunpack.c.l.s8.bf16 %v141_v34 }
 0x213   :  { %1735 = vmatprep.subr.bf16.mxu1 %v637_v30  ;;  %v693_v30 = vunpack.c.l.s8.bf16 %v205_v42  ;;  %v901_v42 = vunpack.c.l.s8.bf16 %v309_v17  ;;  %v341_v17 = vld [vmem:[%s4481_s1 + $0x9b8] sm:$0xff] }
 0x215   :  { %1695 = vmatpush1.bf16.msra.mxu0 %v508_v31  ;;  %v132_v31 = vld [vmem:[%s4481_s1 + $0x330] sm:$0xff] }
 0x216   :  { %1736 = vmatpush1.bf16.msra.mxu1 %v636_v53  ;;  %1696 = vmatprep.subr.bf16.mxu0 %v501_v56  ;;  %v196_v53 = vld [vmem:[%s4481_s1 + $0x530] sm:$0xff]  ;;  %v564_v56 = vunpack.c.l.s8.bf16 %v140_v43 }
 0x217   :  { %1737 = vmatprep.subr.bf16.mxu1 %v629_v57  ;;  %v692_v57 = vunpack.c.l.s8.bf16 %v204_v54  ;;  %v300_v54 = vld [vmem:[%s4481_s1 + $0x870] sm:$0xff] }
 0x219   :  { %1697 = vmatpush1.bf16.msra.mxu0 %v500_v60  ;;  %v556_v60 = vunpack.c.h.s8.bf16 %v132_v31 }
 0x21a   :  { %1738 = vmatpush1.bf16.msra.mxu1 %v628_v61  ;;  %1698 = vmatprep.subr.bf16.mxu0 %v493_v63  ;;  %v684_v61 = vunpack.c.h.s8.bf16 %v196_v53  ;;  %v677_v63 = vunpack.c.l.s8.bf16 %v197_v52  ;;  %v293_v52 = vld [vmem:[%s4481_s1 + $0x838] sm:$0xff] }
 0x21b   :  { %1739 = vmatprep.subr.bf16.mxu1 %v621_v0  ;;  %v253_v0 = vld [vmem:[%s4481_s1 + $0x6f8] sm:$0xff] }
 0x21c   :  { %v789_v11 = vunpack.c.l.s8.bf16 %v253_v0 }
 0x21d   :  { %1699 = vmatpush1.bf16.msra.mxu0 %v492_v2  ;;  %v548_v2 = vunpack.c.l.s8.bf16 %v132_v31 }
 0x21e   :  { %1740 = vmatpush1.bf16.msra.mxu1 %v620_v3  ;;  %1700 = vmatprep.subr.bf16.mxu0 %v485_v4  ;;  %v676_v3 = vunpack.c.l.s8.bf16 %v196_v53  ;;  %v797_v4 = vunpack.c.h.s8.bf16 %v253_v0  ;;  %v884_v53 = vunpack.c.l.s8.bf16 %v300_v54  ;;  %v285_v0 = vld [vmem:[%s4481_s1 + $0x7f8] sm:$0xff] }
 0x21f   :  { %1741 = vmatprep.subr.bf16.mxu1 %v613_v5  ;;  %v925_v5 = vunpack.c.h.s8.bf16 %v317_v1 }
 0x221   :  { %1701 = vmatpush1.bf16.msra.mxu0 %v484_v8  ;;  %v796_v8 = vunpack.c.h.s8.bf16 %v252_v6  ;;  %v284_v6 = vld [vmem:[%s4481_s1 + $0x7f0] sm:$0xff] }
 0x222   :  { %1742 = vmatpush1.bf16.msra.mxu1 %v612_v9  ;;  %1702 = vmatprep.subr.bf16.mxu0 %v605_v15  ;;  %v924_v9 = vunpack.c.h.s8.bf16 %v316_v7  ;;  %v917_v15 = vunpack.c.l.s8.bf16 %v317_v1  ;;  %v349_v1 = vld [vmem:[%s4481_s1 + $0x9f8] sm:$0xff] }
 0x223   :  { %1743 = vmatprep.subr.bf16.mxu1 %v733_v16  ;;  %v245_v16 = vld [vmem:[%s4481_s1 + $0x6b8] sm:$0xff] }
 0x225   :  { %1703 = vmatpush2.bf16.msra.mxu0 %v604_v19 }
 0x226   :  { %1744 = vmatpush2.bf16.msra.mxu1 %v732_v28  ;;  %1704 = vmatprep.subr.bf16.mxu0 %v597_v23  ;;  %v916_v23 = vunpack.c.l.s8.bf16 %v316_v7  ;;  %v348_v7 = vld [vmem:[%s4481_s1 + $0x9f0] sm:$0xff] }
 0x227   :  { %1745 = vmatprep.subr.bf16.mxu1 %v725_v25 }
 0x229   :  { %1705 = vmatpush2.bf16.msra.mxu0 %v596_v29 }
 0x22a   :  { %1746 = vmatpush2.bf16.msra.mxu1 %v724_v32  ;;  %1706 = vmatprep.subr.bf16.mxu0 %v589_v12  ;;  %v781_v32 = vunpack.c.h.s8.bf16 %v245_v16  ;;  %v244_v12 = vld [vmem:[%s4481_s1 + $0x6b0] sm:$0xff] }
 0x22b   :  { %1747 = vmatprep.subr.bf16.mxu1 %v717_v48 }
 0x22d   :  { %1707 = vmatpush2.bf16.msra.mxu0 %v588_v46  ;;  %v780_v46 = vunpack.c.h.s8.bf16 %v244_v12 }
 0x22e   :  { %1748 = vmatpush2.bf16.msra.mxu1 %v716_v38  ;;  %1708 = vmatprep.subr.bf16.mxu0 %v581_v39 }
 0x22f   :  { %1749 = vmatprep.subr.bf16.mxu1 %v709_v41  ;;  %v773_v41 = vunpack.c.l.s8.bf16 %v245_v16  ;;  %v277_v16 = vld [vmem:[%s4481_s1 + $0x7b8] sm:$0xff] }
 0x231   :  { %1709 = vmatpush2.bf16.msra.mxu0 %v580_v18  ;;  %v237_v18 = vld [vmem:[%s4481_s1 + $0x678] sm:$0xff] }
 0x232   :  { %1750 = vmatpush2.bf16.msra.mxu1 %v708_v36  ;;  %1710 = vmatprep.subr.bf16.mxu0 %v573_v44  ;;  %v765_v43 = vunpack.c.h.s8.bf16 %v237_v18  ;;  %v757_v50 = vunpack.c.l.s8.bf16 %v237_v18  ;;  %v268_v18 = vld [vmem:[%s4481_s1 + $0x770] sm:$0xff] }
 0x233   :  { %1751 = vmatprep.subr.bf16.mxu1 %v701_v37  ;;  %v236_v37 = vld [vmem:[%s4481_s1 + $0x670] sm:$0xff] }
 0x234   :  { %v756_v31 = vunpack.c.l.s8.bf16 %v236_v37 }
 0x235   :  { %1711 = vmatpush2.bf16.msra.mxu0 %v572_v24  ;;  %v764_v24 = vunpack.c.h.s8.bf16 %v236_v37  ;;  %v4189_v37 = vld [vmem:[%s4484_s2] sm:$0xff] }
 0x236   :  { %1752 = vmatpush2.bf16.msra.mxu1 %v700_v45  ;;  %1712 = vmatprep.subr.bf16.mxu0 %v565_v51  ;;  %v892_v45 = vunpack.c.h.s8.bf16 %v300_v54 }
 0x237   :  { %1753 = vmatprep.subr.bf16.mxu1 %v693_v30  ;;  %v229_v30 = vld [vmem:[%s4481_s1 + $0x638] sm:$0xff] }
 0x239   :  { %1713 = vmatpush2.bf16.msra.mxu0 %v564_v56  ;;  %v749_v56 = vunpack.c.h.s8.bf16 %v229_v30 }
 0x23a   :  { %1754 = vmatpush2.bf16.msra.mxu1 %v692_v57  ;;  %1714 = vmatprep.subr.bf16.mxu0 %v557_v58  ;;  %v877_v57 = vunpack.c.h.s8.bf16 %v293_v52  ;;  %v228_v58 = vld [vmem:[%s4481_s1 + $0x630] sm:$0xff] }
 0x23b   :  { %1755 = vmatprep.subr.bf16.mxu1 %v685_v59  ;;  %v292_v59 = vld [vmem:[%s4481_s1 + $0x830] sm:$0xff] }
 0x23d   :  { %1715 = vmatpush2.bf16.msra.mxu0 %v556_v60  ;;  %v748_v60 = vunpack.c.h.s8.bf16 %v228_v58 }
 0x23e   :  { %1756 = vmatpush2.bf16.msra.mxu1 %v684_v61  ;;  %1716 = vmatprep.subr.bf16.mxu0 %v549_v62  ;;  %v876_v61 = vunpack.c.h.s8.bf16 %v292_v59  ;;  %v741_v62 = vunpack.c.l.s8.bf16 %v229_v30 }
 0x23f   :  { %1757 = vmatprep.subr.bf16.mxu1 %v677_v63  ;;  %v869_v63 = vunpack.c.l.s8.bf16 %v293_v52  ;;  %v820_v52 = vunpack.c.l.s8.bf16 %v268_v18 }
 0x241   :  { %1717 = vmatpush2.bf16.msra.mxu0 %v548_v2  ;;  %v740_v2 = vunpack.c.l.s8.bf16 %v228_v58  ;;  %v260_v58 = vld [vmem:[%s4481_s1 + $0x730] sm:$0xff] }
 0x242   :  { %1758 = vmatpush2.bf16.msra.mxu1 %v676_v3  ;;  %1768 = vmatprep.subr.bf16.mxu0 %v797_v4  ;;  %v868_v3 = vunpack.c.l.s8.bf16 %v292_v59  ;;  %v861_v4 = vunpack.c.h.s8.bf16 %v285_v0  ;;  %v324_v59 = vld [vmem:[%s4481_s1 + $0x930] sm:$0xff] }
 0x243   :  { %1809 = vmatprep.subr.bf16.mxu1 %v925_v5  ;;  %v989_v5 = vunpack.c.h.s8.bf16 %v349_v1 }
 0x244   :  { %v1474_v19 = vpop.f32.mrf.mxu0  ;;  %1719 = vmatmul.mubr.bf16.vlgmr.msra.gmra.mxu0 %v3229_v47  ;;  %v308_v47 = vld [vmem:[%s4481_s1 + $0x8b0] sm:$0xff] }
 0x245   :  { %v1515_v28 = vpop.f32.mrf.mxu1  ;;  %1760 = vmatmul.mubr.bf16.vlgmr.msra.gmra.mxu1 %v3351_v26  ;;  %1769 = vmatpush1.bf16.msra.mxu0 %v796_v8  ;;  %v908_v38 = vunpack.c.h.s8.bf16 %v308_v47  ;;  %v900_v36 = vunpack.c.l.s8.bf16 %v308_v47  ;;  %v860_v8 = vunpack.c.h.s8.bf16 %v284_v6  ;;  %v837_v47 = vunpack.c.l.s8.bf16 %v277_v16 }
 0x246   :  { %v4110_v10 = vadd.f32 %v1515_v28, %v1474_v19  ;;  %1810 = vmatpush1.bf16.msra.mxu1 %v924_v9  ;;  %v1476_v25 = vpop.f32.mrf.mxu0  ;;  %1770 = vmatprep.subr.bf16.mxu0 %v789_v11  ;;  %v988_v9 = vunpack.c.h.s8.bf16 %v348_v7  ;;  %v853_v11 = vunpack.c.l.s8.bf16 %v285_v0  ;;  %v852_v19 = vunpack.c.l.s8.bf16 %v284_v6 }
 0x247   :  { %v1517_v29 = vpop.f32.mrf.mxu1  ;;  %1811 = vmatprep.subr.bf16.mxu1 %v917_v15  ;;  %1800 = vmatprep.mubr.bf16.mxu0 %v3253_v55  ;;  %v301_v55 = vld [vmem:[%s4481_s1 + $0x878] sm:$0xff]  ;;  %v981_v15 = vunpack.c.l.s8.bf16 %v349_v1  ;;  %v980_v28 = vunpack.c.l.s8.bf16 %v348_v7  ;;  %v812_v0 = vunpack.c.h.s8.bf16 %v260_v58  ;;  %v940_v1 = vunpack.c.h.s8.bf16 %v324_v59 }
 0x248   :  { %v4118_v26 = vadd.f32 %v1517_v29, %v1476_v25  ;;  %1841 = vmatprep.mubr.bf16.mxu1 %v3370_v35  ;;  %v1478_v48 = vpop.f32.mrf.mxu0  ;;  %v772_v35 = vunpack.c.l.s8.bf16 %v244_v12  ;;  %v893_v44 = vunpack.c.h.s8.bf16 %v301_v55  ;;  %v885_v51 = vunpack.c.l.s8.bf16 %v301_v55  ;;  %v276_v25 = vld [vmem:[%s4481_s1 + $0x7b0] sm:$0xff]  ;;  %v2977_v7 = vld [vmem:[%s4483_s4 + $0xf8] sm:$0xff]  }
 0x249   :  { %v1519_v20 = vpop.f32.mrf.mxu1  ;;  %1771 = vmatpush1.bf16.msra.mxu0 %v788_v21  ;;  %v845_v21 = vunpack.c.h.s8.bf16 %v277_v16  ;;  %v340_v29 = vld [vmem:[%s4481_s1 + $0x9b0] sm:$0xff]  ;;  %v965_v48 = vunpack.c.l.s8.bf16 %v341_v17  ;;  %v804_v6 = vunpack.c.l.s8.bf16 %v260_v58  ;;  %v3000_v58 = vld [vmem:[%s4483_s4 + $0x48] sm:$0xff]  }
 0x24a   :  { %1812 = vmatpush1.bf16.msra.mxu1 %v916_v23  ;;  %v1479_v34 = vpop.f32.mrf.mxu0  ;;  %1772 = vmatprep.subr.bf16.mxu0 %v781_v32  ;;  %v973_v23 = vunpack.c.h.s8.bf16 %v341_v17  ;;  %v1852_v32 = vlaneseq  ;;  %v972_v12 = vunpack.c.h.s8.bf16 %v340_v29  ;;  %v269_v20 = vld [vmem:[%s4481_s1 + $0x778] sm:$0xff]  ;;  %v332_v55 = vld [vmem:[%s4481_s1 + $0x970] sm:$0xff] }
 0x24b   :  { %v1520_v39 = vpop.f32.mrf.mxu1  ;;  %1813 = vmatprep.subr.bf16.mxu1 %v909_v33  ;;  %v844_v33 = vunpack.c.h.s8.bf16 %v276_v25  ;;  %v836_v34 = vunpack.c.l.s8.bf16 %v276_v25  ;;  %v821_v54 = vunpack.c.l.s8.bf16 %v269_v20  ;;  %v2980_v17 = vld [vmem:[%s4483_s4 + $0x70] sm:$0xff]  }
 0x24c   :  { %v964_v39 = vunpack.c.l.s8.bf16 %v340_v29  ;;  %v2982_v29 = vld [vmem:[%s4483_s4 + $0x30] sm:$0xff]  }
 0x24d   :  { %1773 = vmatpush1.bf16.msra.mxu0 %v780_v46  ;;  %v333_v46 = vld [vmem:[%s4481_s1 + $0x978] sm:$0xff] }
 0x24e   :  { %1814 = vmatpush1.bf16.msra.mxu1 %v908_v38  ;;  %1774 = vmatprep.subr.bf16.mxu0 %v773_v41  ;;  %v4176_v38 = vshrl.u32 %v1852_v32, 7  ;;  %v829_v41 = vunpack.c.h.s8.bf16 %v269_v20  ;;  %v2986_v20 = vld [vmem:[%s4483_s4 + $0x28] sm:$0xff]  }
 0x24f   :  { %1815 = vmatprep.subr.bf16.mxu1 %v901_v42  ;;  %v957_v42 = vunpack.c.h.s8.bf16 %v333_v46 }
 0x251   :  { %1775 = vmatpush1.bf16.msra.mxu0 %v772_v35  ;;  %v1858_v35 = vsub.s32 1, %v4176_v38 }
 0x252   :  { %1816 = vmatpush1.bf16.msra.mxu1 %v900_v36  ;;  %1776 = vmatprep.subr.bf16.mxu0 %v765_v43  ;;  %v1866_v36 = vsub.s32 3, %v4176_v38  ;;  %v828_v43 = vunpack.c.h.s8.bf16 %v268_v18  ;;  %v2990_v18 = vld [vmem:[%s4483_s4 + $0x20] sm:$0xff]  }
 0x253   :  { %1817 = vmatprep.subr.bf16.mxu1 %v893_v44  ;;  %v956_v44 = vunpack.c.h.s8.bf16 %v332_v55 }
 0x254   :  { %v1867_v30 = vrot.slane %v4189_v37, %v1866_v36 }
 0x255   :  { %1777 = vmatpush1.bf16.msra.mxu0 %v764_v24  ;;  %v949_v24 = vunpack.c.l.s8.bf16 %v333_v46 }
 0x256   :  { %1818 = vmatpush1.bf16.msra.mxu1 %v892_v45  ;;  %1778 = vmatprep.subr.bf16.mxu0 %v757_v50  ;;  %v1859_v45 = vrot.slane %v4189_v37, %v1858_v35  ;;  %v261_v50 = vld [vmem:[%s4481_s1 + $0x738] sm:$0xff] }
 0x257   :  { %1819 = vmatprep.subr.bf16.mxu1 %v885_v51  ;;  %v325_v51 = vld [vmem:[%s4481_s1 + $0x938] sm:$0xff] }
 0x259   :  { %1779 = vmatpush1.bf16.msra.mxu0 %v756_v31  ;;  %v948_v31 = vunpack.c.l.s8.bf16 %v332_v55  ;;  %v1854_v55 = vsub.s32 0, %v4176_v38 }
 0x25a   :  { %1820 = vmatpush1.bf16.msra.mxu1 %v884_v53  ;;  %1780 = vmatprep.subr.bf16.mxu0 %v749_v56  ;;  %v4202_v53 = vld [vmem:[%s4485_s3] sm:$0xff]  ;;  %v813_v56 = vunpack.c.h.s8.bf16 %v261_v50 }
 0x25b   :  { %1821 = vmatprep.subr.bf16.mxu1 %v877_v57  ;;  %v941_v57 = vunpack.c.h.s8.bf16 %v325_v51 }
 0x25d   :  { %1781 = vmatpush1.bf16.msra.mxu0 %v748_v60  ;;  %v1893_v60 = vmul.f32 %v1859_v45, %v3802_v22  ;;  %v932_v22 = vunpack.c.l.s8.bf16 %v324_v59  ;;  %v2995_v45 = vld [vmem:[%s4483_s4 + $0x98] sm:$0xff]  }
 0x25e   :  { %1822 = vmatpush1.bf16.msra.mxu1 %v876_v61  ;;  %1782 = vmatprep.subr.bf16.mxu0 %v741_v62  ;;  %v1909_v61 = vrot.slane %v4202_v53, %v1858_v35  ;;  %v1895_v62 = vmul.f32 %v1867_v30, %v4016_v40  ;;  %v2976_v40 = vld [vmem:[%s4483_s4 + $0x78] sm:$0xff]   ;;  %v2991_v35 = vld [vmem:[%s4483_s4 + $0xa0] sm:$0xff]   ;;  %v2997_v30 = vld [vmem:[%s4483_s4 + $0xd0] sm:$0xff]  }
 0x25f   :  { %1823 = vmatprep.subr.bf16.mxu1 %v869_v63  ;;  %v1917_v63 = vrot.slane %v4202_v53, %v1866_v36  ;;  %v2992_v36 = vld [vmem:[%s4483_s4 + $0x58] sm:$0xff]  }
 0x261   :  { %1783 = vmatpush1.bf16.msra.mxu0 %v740_v2  ;;  %v805_v2 = vunpack.c.l.s8.bf16 %v261_v50  ;;  %v2996_v50 = vld [vmem:[%s4483_s4 + $0x50] sm:$0xff]  }
 0x262   :  { %1824 = vmatpush1.bf16.msra.mxu1 %v868_v3  ;;  %1784 = vmatprep.subr.bf16.mxu0 %v861_v4  ;;  %v933_v3 = vunpack.c.l.s8.bf16 %v325_v51  ;;  %v1943_v4 = vadd.f32 %v1909_v61, %v1893_v60  ;;  %v3002_v61 = vld [vmem:[%s4483_s4 + $0x8] sm:$0xff]  }
 0x263   :  { %1825 = vmatprep.subr.bf16.mxu1 %v989_v5  ;;  %v1945_v5 = vadd.f32 %v1917_v63, %v1895_v62  ;;  %v3003_v63 = vld [vmem:[%s4483_s4 + $0x88] sm:$0xff]  }
 0x265   :  { %1785 = vmatpush2.bf16.msra.mxu0 %v860_v8  ;;  %v1951_v8 = vmax.f32 %v1943_v4, 0.0  ;;  %v3007_v4 = vld [vmem:[%s4483_s4 + $0x80] sm:$0xff]  }
 0x266   :  { %1826 = vmatpush2.bf16.msra.mxu1 %v988_v9  ;;  %1786 = vmatprep.subr.bf16.mxu0 %v853_v11  ;;  %v1953_v9 = vmax.f32 %v1945_v5, 0.0  ;;  %v2978_v11 = vld [vmem:[%s4483_s4 + $0x38] sm:$0xff]  }
 0x267   :  { %1827 = vmatprep.subr.bf16.mxu1 %v981_v15  ;;  %v2979_v15 = vld [vmem:[%s4483_s4 + $0xb8] sm:$0xff]   ;;  %v1959_v16 = vpack.c.bf16 %v1951_v8, %v1951_v8  ;;  %v3010_v8 = vld [vmem:[%s4483_s4 + $0x170] sm:$0xff]  }
 0x268   :  { %v3008_v5 = vld [vmem:[%s4483_s4 + $0x178] sm:$0xff]  }
 0x269   :  { %1787 = vmatpush2.bf16.msra.mxu0 %v852_v19  ;;  %v2981_v19 = vld [vmem:[%s4483_s4 + $0xf0] sm:$0xff]  }
 0x26a   :  { %1828 = vmatpush2.bf16.msra.mxu1 %v980_v28  ;;  %1788 = vmatprep.subr.bf16.mxu0 %v845_v21 }
 0x26b   :  { %1829 = vmatprep.subr.bf16.mxu1 %v973_v23  ;;  %v1961_v23 = vpack.c.bf16 %v1953_v9, %v1953_v9  ;;  %v3025_v9 = vld [vmem:[%s4483_s4 + $0x1b8] sm:$0xff]  }
 0x26d   :  { %1789 = vmatpush2.bf16.msra.mxu0 %v844_v33 }
 0x26e   :  { %1830 = vmatpush2.bf16.msra.mxu1 %v972_v12  ;;  %1790 = vmatprep.subr.bf16.mxu0 %v837_v47  ;;  %v2985_v12 = vld [vmem:[%s4483_s4 + $0xe8] sm:$0xff]  }
 0x26f   :  { %1831 = vmatprep.subr.bf16.mxu1 %v965_v48 }
 0x271   :  { %1791 = vmatpush2.bf16.msra.mxu0 %v836_v34 }
 0x272   :  { %1832 = vmatpush2.bf16.msra.mxu1 %v964_v39  ;;  %1792 = vmatprep.subr.bf16.mxu0 %v829_v41  ;;  %v2987_v39 = vld [vmem:[%s4483_s4 + $0xa8] sm:$0xff]   ;;  %v2988_v41 = vld [vmem:[%s4483_s4 + $0x60] sm:$0xff]  }
 0x273   :  { %1833 = vmatprep.subr.bf16.mxu1 %v957_v42  ;;  %v2989_v42 = vld [vmem:[%s4483_s4 + $0xe0] sm:$0xff]  }
 0x275   :  { %1793 = vmatpush2.bf16.msra.mxu0 %v828_v43  ;;  %v1862_v43 = vsub.s32 2, %v4176_v38 }
 0x276   :  { %1834 = vmatpush2.bf16.msra.mxu1 %v956_v44  ;;  %1794 = vmatprep.subr.bf16.mxu0 %v821_v54  ;;  %v2993_v44 = vld [vmem:[%s4483_s4 + $0xd8] sm:$0xff]  }
 0x277   :  { %1835 = vmatprep.subr.bf16.mxu1 %v949_v24  ;;  %v2994_v54 = vld [vmem:[%s4483_s4 + $0x18] sm:$0xff]   ;;  %v1855_v24 = vrot.slane %v4189_v37, %v1854_v55  ;;  %v1863_v51 = vrot.slane %v4189_v37, %v1862_v43  ;;  %v1913_v60 = vrot.slane %v4202_v53, %v1862_v43 }
 0x279   :  { %1795 = vmatpush2.bf16.msra.mxu0 %v820_v52  ;;  %v2998_v52 = vld [vmem:[%s4483_s4 + $0x10] sm:$0xff]   ;;  %v1894_v59 = vmul.f32 %v1863_v51, %v4011_v49  ;;  %v3004_v49 = vld [vmem:[%s4483_s4 + $0x40] sm:$0xff]  }
 0x27a   :  { %1836 = vmatpush2.bf16.msra.mxu1 %v948_v31  ;;  %1796 = vmatprep.subr.bf16.mxu0 %v813_v56  ;;  %v1892_v31 = vmul.f32 %v1855_v24, %v3791_v13  ;;  %v1905_v56 = vrot.slane %v4202_v53, %v1854_v55  ;;  %v3001_v13 = vld [vmem:[%s4483_s4 + $0xc8] sm:$0xff]   ;;  %v1874_v55 = vsub.s32 5, %v4176_v38 }
 0x27b   :  { %1837 = vmatprep.subr.bf16.mxu1 %v941_v57  ;;  %v2999_v57 = vld [vmem:[%s4483_s4 + $0x90] sm:$0xff]  }
 0x27c   :  { %v1942_v62 = vadd.f32 %v1905_v56, %v1892_v31  ;;  %v1925_v31 = vrot.slane %v4202_v53, %v1874_v55  ;;  %v3034_v56 = vld [vmem:[%s4483_s4 + $0x1d0] sm:$0xff]  }
 0x27d   :  { %1797 = vmatpush2.bf16.msra.mxu0 %v812_v0  ;;  %v1944_v0 = vadd.f32 %v1913_v60, %v1894_v59 }
 0x27e   :  { %1838 = vmatpush2.bf16.msra.mxu1 %v940_v1  ;;  %1798 = vmatprep.subr.bf16.mxu0 %v805_v2  ;;  %v3005_v1 = vld [vmem:[%s4483_s4 + $0xc0] sm:$0xff]  }
 0x27f   :  { %1839 = vmatprep.subr.bf16.mxu1 %v933_v3  ;;  %v3006_v2 = vld [vmem:[%s4483_s4] sm:$0xff]   ;;  %v1950_v3 = vmax.f32 %v1942_v62, 0.0  ;;  %v3036_v62 = vld [vmem:[%s4483_s4 + $0x1c8] sm:$0xff]  }
 0x281   :  { %1799 = vmatpush2.bf16.msra.mxu0 %v804_v6  ;;  %v1952_v6 = vmax.f32 %v1944_v0, 0.0 }
 0x282   :  { %1840 = vmatpush2.bf16.msra.mxu1 %v932_v22  ;;  %2847 = vmatprep.subr.bf16.mxu0 %v2976_v40  ;;  %v3024_v22 = vld [vmem:[%s4483_s4 + $0x1f8] sm:$0xff]  }
 0x283   :  { %2869 = vmatprep.subr.bf16.mxu1 %v2977_v7  ;;  %v3009_v40 = vld [vmem:[%s4483_s4 + $0x138] sm:$0xff]   ;;  %v1958_v7 = vpack.c.bf16 %v1950_v3, %v1950_v3  ;;  %v3039_v3 = vld [vmem:[%s4483_s4 + $0x180] sm:$0xff]  }
 0x284   :  { %v1556_v28 = vpop.f32.mrf.mxu0  ;;  %1801 = vmatmul.mubr.bf16.vlgmr.msra.gmra.mxu0 %v3355_v27  ;;  %v2983_v27 = vld [vmem:[%s4483_s4 + $0xb0] sm:$0xff]  }
 0x285   :  { %v1597_v21 = vpop.f32.mrf.mxu1  ;;  %1842 = vmatmul.mubr.bf16.vlgmr.msra.gmra.mxu1 %v3468_v14  ;;  %v1557_v25 = vadd.f32 %v1556_v28, %v4110_v10  ;;  %2848 = vmatpush3.bf16.msra.mxu0 %v2978_v11  ;;  %v2984_v14 = vld [vmem:[%s4483_s4 + $0x68] sm:$0xff]   ;;  %v1960_v11 = vpack.c.bf16 %v1952_v6, %v1952_v6 }
 0x286   :  { %2517 = vmatprep.mubr.bf16.mxu0 %v1959_v16  ;;  %2870 = vmatpush3.bf16.msra.mxu1 %v2979_v15  ;;  %v4238_v32 = vpop.f32.mrf.mxu0  ;;  %v3026_v15 = vld [vmem:[%s4483_s4 + $0x1f0] sm:$0xff]   ;;  %v3028_v28 = vld [vmem:[%s4483_s4 + $0x1e8] sm:$0xff]  }
 0x287   :  { %2557 = vmatprep.mubr.bf16.mxu1 %v1961_v23  ;;  %v4240_v33 = vpop.f32.mrf.mxu1  ;;  %v4248_v10 = vadd.f32 %v1597_v21, %v1557_v25  ;;  %2849 = vmatprep.subr.bf16.mxu0 %v2980_v17  ;;  %v3011_v16 = vld [vmem:[%s4483_s4 + $0x130] sm:$0xff]   ;;  %v3012_v17 = vld [vmem:[%s4483_s4 + $0x168] sm:$0xff]   ;;  %v3014_v23 = vld [vmem:[%s4483_s4 + $0x160] sm:$0xff]  }
 0x288   :  { %2871 = vmatprep.subr.bf16.mxu1 %v2981_v19  ;;  %v1560_v47 = vpop.f32.mrf.mxu0  ;;  %v3027_v19 = vld [vmem:[%s4483_s4 + $0x1b0] sm:$0xff]   ;;  %v3013_v21 = vld [vmem:[%s4483_s4 + $0x128] sm:$0xff]  }
 0x289   :  { %v1601_v48 = vpop.f32.mrf.mxu1  ;;  %2850 = vmatpush3.bf16.msra.mxu0 %v2982_v29  ;;  %v3029_v25 = vld [vmem:[%s4483_s4 + $0x1a8] sm:$0xff]   ;;  %v3030_v29 = vld [vmem:[%s4483_s4 + $0x1e0] sm:$0xff]   ;;  %v3017_v47 = vld [vmem:[%s4483_s4 + $0x118] sm:$0xff]  }
 0x28a   :  { %2872 = vmatpush3.bf16.msra.mxu1 %v2983_v27  ;;  %v1561_v46 = vpop.f32.mrf.mxu0  ;;  %2851 = vmatprep.subr.bf16.mxu0 %v2984_v14  ;;  %v3015_v27 = vld [vmem:[%s4483_s4 + $0x120] sm:$0xff]   ;;  %v3016_v14 = vld [vmem:[%s4483_s4 + $0x158] sm:$0xff]   ;;  %v3018_v48 = vld [vmem:[%s4483_s4 + $0x150] sm:$0xff]  }
 0x28b   :  { %v1602_v34 = vpop.f32.mrf.mxu1  ;;  %2873 = vmatprep.subr.bf16.mxu1 %v2985_v12  ;;  %v3031_v12 = vld [vmem:[%s4483_s4 + $0x1a0] sm:$0xff]   ;;  %v3020_v46 = vld [vmem:[%s4483_s4 + $0x148] sm:$0xff]  }
 0x28c   :  { %v3021_v34 = vld [vmem:[%s4483_s4 + $0x108] sm:$0xff]  }
 0x28d   :  { %2852 = vmatpush3.bf16.msra.mxu0 %v2986_v20  ;;  %v3019_v20 = vld [vmem:[%s4483_s4 + $0x110] sm:$0xff]  }
 0x28e   :  { %2874 = vmatpush3.bf16.msra.mxu1 %v2987_v39  ;;  %2853 = vmatprep.subr.bf16.mxu0 %v2988_v41  ;;  %v3022_v39 = vld [vmem:[%s4483_s4 + $0x140] sm:$0xff]  }
 0x28f   :  { %2875 = vmatprep.subr.bf16.mxu1 %v2989_v42  ;;  %v3023_v41 = vld [vmem:[%s4483_s4 + $0x100] sm:$0xff]   ;;  %v1870_v42 = vsub.s32 4, %v4176_v38 }
 0x291   :  { %2854 = vmatpush3.bf16.msra.mxu0 %v2990_v18  ;;  %v1559_v18 = vadd.f32 %v4238_v32, %v4118_v26  ;;  %v1921_v26 = vrot.slane %v4202_v53, %v1870_v42  ;;  %v1875_v32 = vrot.slane %v4189_v37, %v1874_v55 }
 0x292   :  { %2876 = vmatpush3.bf16.msra.mxu1 %v2991_v35  ;;  %2855 = vmatprep.subr.bf16.mxu0 %v2992_v36  ;;  %v1871_v35 = vrot.slane %v4189_v37, %v1870_v42  ;;  %v3032_v36 = vld [vmem:[%s4483_s4 + $0x1d8] sm:$0xff]  }
 0x293   :  { %2877 = vmatprep.subr.bf16.mxu1 %v2993_v44  ;;  %v1600_v24 = vadd.f32 %v4240_v33, %v1559_v18 }
 0x295   :  { %2856 = vmatpush3.bf16.msra.mxu0 %v2994_v54  ;;  %v3033_v54 = vld [vmem:[%s4483_s4 + $0x198] sm:$0xff]  }
 0x296   :  { %2878 = vmatpush3.bf16.msra.mxu1 %v2995_v45  ;;  %2857 = vmatprep.subr.bf16.mxu0 %v2996_v50 }
 0x297   :  { %2879 = vmatprep.subr.bf16.mxu1 %v2997_v30 }
 0x299   :  { %2858 = vmatpush3.bf16.msra.mxu0 %v2998_v52 }
 0x29a   :  { %2880 = vmatpush3.bf16.msra.mxu1 %v2999_v57  ;;  %2859 = vmatprep.subr.bf16.mxu0 %v3000_v58 }
 0x29b   :  { %2881 = vmatprep.subr.bf16.mxu1 %v3001_v13 }
 0x29d   :  { %2860 = vmatpush3.bf16.msra.mxu0 %v3002_v61 }
 0x29e   :  { %2882 = vmatpush3.bf16.msra.mxu1 %v3003_v63  ;;  %2861 = vmatprep.subr.bf16.mxu0 %v3004_v49  ;;  %v3037_v49 = vld [vmem:[%s4483_s4 + $0x188] sm:$0xff]  }
 0x29f   :  { %2883 = vmatprep.subr.bf16.mxu1 %v3005_v1 }
 0x2a1   :  { %2862 = vmatpush3.bf16.msra.mxu0 %v3006_v2  ;;  %v3038_v2 = vld [vmem:[%s4483_s4 + $0x1c0] sm:$0xff]  }
 0x2a2   :  { %2884 = vmatpush3.bf16.msra.mxu1 %v3007_v4  ;;  %2891 = vmatprep.subr.bf16.mxu0 %v3008_v5 }
 0x2a3   :  { %2913 = vmatprep.subr.bf16.mxu1 %v3024_v22 }
 0x2a4   :  { %2518 = vmatmul.mubr.bf16.vlgmr.msra.gmra.mxu0 %v1958_v7 }
 0x2a5   :  { %2558 = vmatmul.mubr.bf16.vlgmr.msra.gmra.mxu1 %v1960_v11  ;;  %2892 = vmatpush3.bf16.msra.mxu0 %v3009_v40 }
 0x2a6   :  { %2893 = vmatprep.subr.bf16.mxu0 %v3010_v8  ;;  %2914 = vmatpush3.bf16.msra.mxu1 %v3025_v9 }
 0x2a7   :  { %2915 = vmatprep.subr.bf16.mxu1 %v3026_v15 }
 0x2a9   :  { %2894 = vmatpush3.bf16.msra.mxu0 %v3011_v16 }
 0x2aa   :  { %2895 = vmatprep.subr.bf16.mxu0 %v3012_v17  ;;  %2916 = vmatpush3.bf16.msra.mxu1 %v3027_v19  ;;  %v3048_v17 = vmov 0.0   ;;  %v3040_v19 = vld [vmem:[%s4486_s6 + $0x38] sm:$0xff]  }
 0x2ab   :  { %2917 = vmatprep.subr.bf16.mxu1 %v3028_v28  ;;  %v3041_v28 = vld [vmem:[%s4486_s6 + $0x30] sm:$0xff]  }
 0x2ad   :  { %2896 = vmatpush3.bf16.msra.mxu0 %v3013_v21  ;;  %v3042_v21 = vld [vmem:[%s4486_s6 + $0x28] sm:$0xff]  }
 0x2ae   :  { %2897 = vmatprep.subr.bf16.mxu0 %v3014_v23  ;;  %2918 = vmatpush3.bf16.msra.mxu1 %v3029_v25  ;;  %v3043_v23 = vld [vmem:[%s4486_s6 + $0x20] sm:$0xff]   ;;  %v3044_v25 = vld [vmem:[%s4486_s6 + $0x18] sm:$0xff]  }
 0x2af   :  { %2919 = vmatprep.subr.bf16.mxu1 %v3030_v29 }
 0x2b1   :  { %2898 = vmatpush3.bf16.msra.mxu0 %v3015_v27  ;;  %v1878_v27 = vsub.s32 6, %v4176_v38 }
 0x2b2   :  { %2899 = vmatprep.subr.bf16.mxu0 %v3016_v14  ;;  %2920 = vmatpush3.bf16.msra.mxu1 %v3031_v12  ;;  %v1882_v14 = vsub.s32 7, %v4176_v38 }
 0x2b3   :  { %2921 = vmatprep.subr.bf16.mxu1 %v3032_v36  ;;  %v1929_v42 = vrot.slane %v4202_v53, %v1878_v27 }
 0x2b4   :  { %v1883_v55 = vrot.slane %v4189_v37, %v1882_v14  ;;  %v1933_v38 = vrot.slane %v4202_v53, %v1882_v14 }
 0x2b5   :  { %2900 = vmatpush3.bf16.msra.mxu0 %v3017_v47 }
 0x2b6   :  { %2901 = vmatprep.subr.bf16.mxu0 %v3018_v48  ;;  %2922 = vmatpush3.bf16.msra.mxu1 %v3033_v54 }
 0x2b7   :  { %2923 = vmatprep.subr.bf16.mxu1 %v3034_v56 }
 0x2b9   :  { %2902 = vmatpush3.bf16.msra.mxu0 %v3019_v20 }
 0x2ba   :  { %2903 = vmatprep.subr.bf16.mxu0 %v3020_v46  ;;  %v1879_v46 = vrot.slane %v4189_v37, %v1878_v27  ;;  %v2773_v37 = vld [vmem:[%s4487_s5] ss:$0 sm:$0xff] }
 0x2bd   :  { %2904 = vmatpush3.bf16.msra.mxu0 %v3021_v34 }
 0x2be   :  { %2905 = vmatprep.subr.bf16.mxu0 %v3022_v39 }
 0x2c1   :  { %2906 = vmatpush3.bf16.msra.mxu0 %v3023_v41 }
 0x2c2   :  { %2944 = vmatprep.subr.bf16.mxu0 %v3048_v17 }
 0x2c4   :  { %v1638_v43 = vpop.f32.mrf.mxu0 }
 0x2c5   :  { %v1679_v44 = vpop.f32.mrf.mxu1  ;;  %v1639_v45 = vadd.f32 %v1638_v43, %v4248_v10  ;;  %v3035_v10 = vld [vmem:[%s4483_s4 + $0x190] sm:$0xff]  }
 0x2c6   :  { %v1640_v50 = vpop.f32.mrf.mxu0  ;;  %2924 = vmatpush3.bf16.msra.mxu1 %v3035_v10 }
 0x2c7   :  { %v1681_v51 = vpop.f32.mrf.mxu1  ;;  %v1896_v30 = vmul.f32 %v1871_v35, %v1639_v45  ;;  %v1641_v52 = vadd.f32 %v1640_v50, %v1600_v24  ;;  %2925 = vmatprep.subr.bf16.mxu1 %v3036_v62 }
 0x2c8   :  { %v1642_v57 = vpop.f32.mrf.mxu0 }
 0x2c9   :  { %v1683_v33 = vpop.f32.mrf.mxu1  ;;  %v1946_v58 = vadd.f32 %v1921_v26, %v1896_v30  ;;  %v1897_v59 = vmul.f32 %v1875_v32, %v1641_v52 }
 0x2ca   :  { %v1643_v60 = vpop.f32.mrf.mxu0  ;;  %2926 = vmatpush3.bf16.msra.mxu1 %v3037_v49  ;;  %v3045_v49 = vld [vmem:[%s4486_s6 + $0x10] sm:$0xff]  }
 0x2cb   :  { %v1684_v13 = vpop.f32.mrf.mxu1  ;;  %v1947_v61 = vadd.f32 %v1925_v31, %v1897_v59  ;;  %v1954_v63 = vmax.f32 %v1946_v58, 0.0  ;;  %2927 = vmatprep.subr.bf16.mxu1 %v3038_v2 }
 0x2cd   :  { %v1955_v0 = vmax.f32 %v1947_v61, 0.0  ;;  %v1962_v4 = vpack.c.bf16 %v1954_v63, %v1954_v63 }
 0x2ce   :  { %2928 = vmatpush3.bf16.msra.mxu1 %v3039_v3 }
 0x2cf   :  { %v1963_v1 = vpack.c.bf16 %v1955_v0, %v1955_v0 }
 0x2d1   :  { %2597 = vmatprep.mubr.bf16.mxu0 %v1963_v1 }
 0x2d2   :  { %2598 = vmatmul.mubr.bf16.vlgmr.msra.gmra.mxu0 %v1962_v4  ;;  %v3046_v4 = vld [vmem:[%s4486_s6 + $0x8] sm:$0xff]  }
 0x2d3   :  { %2945 = vmatpush3.bf16.msra.mxu0 %v3040_v19  ;;  %2960 = vmatprep.mubr.msk.bf16.mxu0 %vm3049_vm0, %v3048_v17  ;;  %v2838_v19 = vld [vmem:[%s4488_s7] ss:$0 sm:$0xff] }
 0x2d4   :  { %2946 = vmatprep.subr.bf16.mxu0 %v3048_v17 }
 0x2d7   :  { %2947 = vmatpush3.bf16.msra.mxu0 %v3041_v28 }
 0x2d8   :  { %2948 = vmatprep.subr.bf16.mxu0 %v3048_v17 }
 0x2db   :  { %2949 = vmatpush3.bf16.msra.mxu0 %v3042_v21 }
 0x2dc   :  { %2950 = vmatprep.subr.bf16.mxu0 %v3048_v17 }
 0x2df   :  { %2951 = vmatpush3.bf16.msra.mxu0 %v3043_v23 }
 0x2e0   :  { %2952 = vmatprep.subr.bf16.mxu0 %v3048_v17 }
 0x2e3   :  { %2953 = vmatpush3.bf16.msra.mxu0 %v3044_v25 }
 0x2e4   :  { %2954 = vmatprep.subr.bf16.mxu0 %v3048_v17 }
 0x2e7   :  { %2955 = vmatpush3.bf16.msra.mxu0 %v3045_v49 }
 0x2e8   :  { %2956 = vmatprep.subr.bf16.mxu0 %v3048_v17 }
 0x2eb   :  { %2957 = vmatpush3.bf16.msra.mxu0 %v3046_v4 }
 0x2ec   :  { %2958 = vmatprep.subr.bf16.mxu0 %v3048_v17 }
 0x304   :  { %v1720_v5 = vpop.f32.mrf.mxu0 }
 0x305   :  { %v1761_v6 = vpop.f32.mrf.mxu1  ;;  %v1721_v22 = vadd.f32 %v1720_v5, %v1679_v44 }
 0x306   :  { %v1722_v40 = vpop.f32.mrf.mxu0 }
 0x307   :  { %v1763_v7 = vpop.f32.mrf.mxu1  ;;  %v1762_v8 = vadd.f32 %v1761_v6, %v1721_v22  ;;  %v1723_v29 = vadd.f32 %v1722_v40, %v1681_v51  ;;  %v3047_v6 = vld [vmem:[%s4486_s6] sm:$0xff]  }
 0x308   :  { %v1724_v9 = vpop.f32.mrf.mxu0  ;;  %2959 = vmatpush3.bf16.msra.mxu0 %v3047_v6 }
 0x309   :  { %v1765_v11 = vpop.f32.mrf.mxu1  ;;  %v1764_v48 = vadd.f32 %v1763_v7, %v1723_v29 }
 0x30a   :  { %v1725_v15 = vpop.f32.mrf.mxu0 }
 0x30b   :  { %v1766_v16 = vpop.f32.mrf.mxu1 }
 0x344   :  { %v1802_v12 = vpop.f32.mrf.mxu0 }
 0x345   :  { %v1843_v47 = vpop.f32.mrf.mxu1  ;;  %v1803_v20 = vadd.f32 %v1802_v12, %v1762_v8 }
 0x346   :  { %v1804_v34 = vpop.f32.mrf.mxu0 }
 0x347   :  { %v1845_v39 = vpop.f32.mrf.mxu1  ;;  %v1844_v41 = vadd.f32 %v1843_v47, %v1803_v20  ;;  %v1805_v18 = vadd.f32 %v1804_v34, %v1764_v48 }
 0x348   :  { %v1806_v35 = vpop.f32.mrf.mxu0 }
 0x349   :  { %v1847_v36 = vpop.f32.mrf.mxu1  ;;  %v1898_v43 = vmul.f32 %v1879_v46, %v1844_v41  ;;  %v1846_v44 = vadd.f32 %v1845_v39, %v1805_v18 }
 0x34a   :  { %v1807_v54 = vpop.f32.mrf.mxu0 }
 0x34b   :  { %v1848_v24 = vpop.f32.mrf.mxu1  ;;  %v1948_v45 = vadd.f32 %v1929_v42, %v1898_v43  ;;  %v1899_v26 = vmul.f32 %v1883_v55, %v1846_v44 }
 0x34d   :  { %v1949_v32 = vadd.f32 %v1933_v38, %v1899_v26  ;;  %v1956_v50 = vmax.f32 %v1948_v45, 0.0 }
 0x34f   :  { %v1957_v51 = vmax.f32 %v1949_v32, 0.0  ;;  %v1964_v52 = vpack.c.bf16 %v1956_v50, %v1956_v50 }
 0x351   :  { %v1965_v30 = vpack.c.bf16 %v1957_v51, %v1957_v51 }
 0x353   :  { %2637 = vmatprep.mubr.bf16.mxu1 %v1965_v30 }
 0x354   :  { %2638 = vmatmul.mubr.bf16.vlgmr.msra.gmra.mxu1 %v1964_v52 }
 0x364   :  { %v2863_v31 = vpop.f32.mrf.mxu0 }
 0x365   :  { %v2885_v56 = vpop.f32.mrf.mxu1 }
 0x366   :  { %v2864_v57 = vpop.f32.mrf.mxu0 }
 0x367   :  { %v2865_v33 = vadd.f32 %v2864_v57, %v2863_v31  ;;  %v2886_v53 = vpop.f32.mrf.mxu1 }
 0x368   :  { %v2887_v10 = vadd.f32 %v2886_v53, %v2885_v56  ;;  %v2866_v58 = vpop.f32.mrf.mxu0 }
 0x369   :  { %v2520_v59 = vadd.f32 %v2865_v33, %v2773_v37  ;;  %v2888_v60 = vpop.f32.mrf.mxu1 }
 0x36a   :  { %v2867_v13 = vpop.f32.mrf.mxu0 }
 0x36b   :  { %v2560_v61 = vadd.f32 %v2887_v10, %v2520_v59  ;;  %v2889_v62 = vpop.f32.mrf.mxu1 }
 0x392   :  { %v2907_v63 = vpop.f32.mrf.mxu0 }
 0x394   :  { %v2908_v0 = vpop.f32.mrf.mxu0 }
 0x395   :  { %v2909_v1 = vadd.f32 %v2908_v0, %v2907_v63 }
 0x396   :  { %v2910_v2 = vpop.f32.mrf.mxu0 }
 0x397   :  { %v2600_v3 = vadd.f32 %v2909_v1, %v2560_v61 }
 0x398   :  { %v2911_v5 = vpop.f32.mrf.mxu0 }
 0x414   :  { %v2929_v22 = vpop.f32.mrf.mxu1 }
 0x416   :  { %v2930_v40 = vpop.f32.mrf.mxu1 }
 0x417   :  { %v2931_v7 = vadd.f32 %v2930_v40, %v2929_v22 }
 0x418   :  { %v2932_v8 = vpop.f32.mrf.mxu1 }
 0x419   :  { %v2640_v9 = vadd.f32 %v2931_v7, %v2600_v3 }
 0x41a   :  { %v2933_v11 = vpop.f32.mrf.mxu1 }
 0x41b   :  { %v2645_v15 = vmax.f32 %v2640_v9, 0.0 }
 0x41d   :  { %v2646_v16 = vpack.c.bf16 %v2645_v15, %v2645_v15 }
 0x41f   :  { %2961 = vmatmul.mubr.bf16.vlgmr.msra.gmra.mxu0 %v2646_v16 }
 0x4df   :  { %v2752_v28 = vpop.f32.mrf.mxu0 }
 0x4e0   :  { %v2753_v21 = vadd.f32 %v2838_v19, %v2752_v28 }
 0x4e1   :  { %v2962_v23 = vpop.f32.mrf.mxu0 }
 0x4e2   :  { %2758 = vst [vmem:[%s4489_s8] sm:$0xff] %v2753_v21 }
 0x4e3   :  { %v2755_v17 = vpop.f32.mrf.mxu0 }
 0x4e5   :  { %v2963_v25 = vpop.f32.mrf.mxu0 }

</bundles_post_ra>
